<compile_context>
chip_gen: v7x
topology: tpu7x:2x2x1
jax: 0.10.0
libtpu: 0.0.40
codegen_flags: <defaults>
</compile_context>

<pallas_src>
import math

import jax
import jax.numpy as jnp
from jax import lax
from jax.experimental import pallas as pl
from jax.experimental.pallas import tpu as pltpu

CUTS = 8          # dMaSIFConv.Cuts (hidden width of the 3D filter MLP)
_LANE = 128
_TILE_I = 128     # i rows handled per grid step (sublane axis)
_SUB_I = 8        # i sub-rows per inner iteration (one vreg of sublanes)
_SUB_J = 256      # j columns per inner iteration (two vregs of lanes)


# ----------------------------------------------------------------------------
# Pallas kernel: quasi-geodesic point convolution
#   out[i, :] = sum_j exp(-||xj-xi||^2 (2 - <ni,nj>)^2) * MLP(nuv_i @ (xj-xi)) * f_j
# ----------------------------------------------------------------------------
def _pair_conv_kernel(xi_ref, nuvi_ref, xjT_ref, njT_ref, fjT_ref,
                      a1_ref, b1_ref, a2_ref, b2_ref, out_ref):
    C = a1_ref.shape[0]
    H = fjT_ref.shape[0]
    n_ii = xi_ref.shape[0] // _SUB_I
    n_jj = xjT_ref.shape[1] // _SUB_J

    # hoisted lane-index masks used to place the H reduced columns
    h_ids = lax.broadcasted_iota(jnp.int32, (1, H), 1)
    h_masks = [h_ids == h for h in range(H)]

    def ii_body(ii, carry):
        r0 = pl.multiple_of(ii * _SUB_I, _SUB_I)
        xi = xi_ref[pl.ds(r0, _SUB_I), :]          # (8, 3)  i-side xyz
        nuvi = nuvi_ref[pl.ds(r0, _SUB_I), :]      # (8, 9)  i-side frames [n|u|v]

        # Hoist the (lane-direction, expensive) i-side broadcasts out of the
        # j loop: they are j-invariant, 12 slabs of 2 vregs each.
        xi_b = [jnp.broadcast_to(xi[:, k:k + 1], (_SUB_I, _SUB_J)) for k in range(3)]
        nuv_b = [jnp.broadcast_to(nuvi[:, k:k + 1], (_SUB_I, _SUB_J)) for k in range(9)]

        def jj_body(jj, acc):
            c0 = pl.multiple_of(jj * _SUB_J, _SUB_J)
            js = pl.ds(c0, _SUB_J)

            # pseudo-geodesic window exp(-|xj-xi|^2 (2-<ni,nj>)^2), (8,SUB_J) slabs
            dx0 = xjT_ref[0:1, js] - xi_b[0]
            dx1 = xjT_ref[1:2, js] - xi_b[1]
            dx2 = xjT_ref[2:3, js] - xi_b[2]
            d2 = dx0 * dx0 + dx1 * dx1 + dx2 * dx2
            ndot = (nuv_b[0] * njT_ref[0:1, js] + nuv_b[1] * njT_ref[1:2, js]
                    + nuv_b[2] * njT_ref[2:3, js])
            gap = 2.0 - ndot
            window = jnp.exp(-(d2 * (gap * gap)))            # exp -> EUP slot

            # local tangent-frame coordinates X_ij[k] = <nuv_i[k], xj - xi>
            xloc = [nuv_b[3 * k + 0] * dx0 + nuv_b[3 * k + 1] * dx1
                    + nuv_b[3 * k + 2] * dx2 for k in range(3)]

            # filter MLP layer 1: Linear(3, C) + ReLU (SMEM scalar weights)
            h1 = []
            for c in range(C):
                v = (xloc[0] * a1_ref[c, 0] + xloc[1] * a1_ref[c, 1]
                     + xloc[2] * a1_ref[c, 2] + b1_ref[c])
                h1.append(jnp.maximum(v, 0.0))

            # layer 2 + window * f_j, reduced over the j (lane) axis
            contrib = None
            for h in range(H):
                v = h1[0] * a2_ref[0, h]
                for c in range(1, C):
                    v = v + h1[c] * a2_ref[c, h]
                h2 = jnp.maximum(v + b2_ref[h], 0.0)
                col = jnp.sum(window * h2 * fjT_ref[h:h + 1, js],
                              axis=1, keepdims=True)          # (8, 1)
                sel = jnp.where(h_masks[h], col, 0.0)         # place col at lane h
                contrib = sel if contrib is None else contrib + sel
            return acc + contrib                              # (8, H)

        acc = lax.fori_loop(0, n_jj, jj_body,
                            jnp.zeros((_SUB_I, H), jnp.float32))
        out_ref[pl.ds(r0, _SUB_I), :] = acc.astype(out_ref.dtype)
        return carry

    lax.fori_loop(0, n_ii, ii_body, 0)


def _round_up(x, m):
    return (x + m - 1) // m * m


def pairwise_quasi_geodesic_conv(points_scaled, nuv_flat, normals, feats,
                                 conv_w1, conv_b1, conv_w2, conv_b2):
    """points_scaled (N,3), nuv_flat (N,9), normals (N,3), feats (N,H) -> (N,H)."""
    N, H = feats.shape
    f32 = jnp.float32

    # pad N to a multiple of lcm(TILE_I, SUB_J)=256 and keep >= 2 i-tiles
    n_pad = _round_up(max(N, 2 * _TILE_I), _SUB_J)
    pad = n_pad - N
    pts = jnp.pad(points_scaled.astype(f32), ((0, pad), (0, 0)))
    nuv = jnp.pad(nuv_flat.astype(f32), ((0, pad), (0, 0)))
    nrm = jnp.pad(normals.astype(f32), ((0, pad), (0, 0)))
    fts = jnp.pad(feats.astype(f32), ((0, pad), (0, 0)))   # zero pad -> padded j adds 0

    # j-side operands transposed so the j index lands on the 128-wide lane axis
    xjT = pts.T                     # (3, n_pad)
    njT = nrm.T                     # (3, n_pad)
    fjT = fts.T                     # (H, n_pad)

    # tiny filter-MLP weights -> SMEM (consumed as scalar broadcasts)
    a1 = conv_w1.astype(f32)        # (C, 3)
    b1 = conv_b1.astype(f32)        # (C,)
    a2 = conv_w2.T.astype(f32)      # (C, H)   torch weight is (H, C)
    b2 = conv_b2.astype(f32)        # (H,)

    smem = pl.BlockSpec(memory_space=pltpu.MemorySpace.SMEM)
    grid = (n_pad // _TILE_I,)

    out = pl.pallas_call(
        _pair_conv_kernel,
        out_shape=jax.ShapeDtypeStruct((n_pad, H), f32),
        grid_spec=pltpu.PrefetchScalarGridSpec(
            num_scalar_prefetch=0,
            grid=grid,
            in_specs=[
                pl.BlockSpec((_TILE_I, 3), lambda i: (i, 0)),    # x_i
                pl.BlockSpec((_TILE_I, 9), lambda i: (i, 0)),    # nuv_i
                pl.BlockSpec((3, n_pad), lambda i: (0, 0)),      # x_j^T (resident)
                pl.BlockSpec((3, n_pad), lambda i: (0, 0)),      # n_j^T (resident)
                pl.BlockSpec((H, n_pad), lambda i: (0, 0)),      # f_j^T (resident)
                smem, smem, smem, smem,                          # MLP weights
            ],
            out_specs=pl.BlockSpec((_TILE_I, H), lambda i: (i, 0)),
        ),
        compiler_params=pltpu.CompilerParams(
            dimension_semantics=("parallel",),
            vmem_limit_bytes=32 * 1024 * 1024,
        ),
    )(pts, nuv, xjT, njT, fjT, a1, b1, a2, b2)
    return out[:N]


# ----------------------------------------------------------------------------
# Plain-JAX glue (MLPs, GroupNorm) reproducing the PyTorch module semantics
# ----------------------------------------------------------------------------
def linear(x, w, b):
    # torch nn.Linear: y = x @ W^T + b, W: (out, in)
    return x @ w.T + b


def leaky_relu(x, slope=0.2):
    return jnp.where(x >= 0, x, slope * x)


def group_norm(x, weight, bias, num_groups=4, eps=1e-5):
    # matches torch.nn.GroupNorm applied to a (1, C, N) tensor
    N, Ch = x.shape
    g = num_groups
    xt = x.T.reshape(g, Ch // g, N)
    mean = xt.mean(axis=(1, 2), keepdims=True)
    var = xt.var(axis=(1, 2), keepdims=True)
    xt = (xt - mean) / jnp.sqrt(var + eps)
    xn = xt.reshape(Ch, N).T
    return xn * weight[None, :] + bias[None, :]


def dmasif_conv_apply(p, points, nuv_flat, normals, feats, radius):
    # 1. net_in (Linear, LeakyReLU, Linear, LeakyReLU) + GroupNorm(4, H)
    f = leaky_relu(linear(feats, p["in_w1"], p["in_b1"]))
    f = leaky_relu(linear(f, p["in_w2"], p["in_b2"]))
    f = group_norm(f, p["gn_in_w"], p["gn_in_b"])
    # 2. quasi-geodesic point convolution (Pallas kernel)
    pts = points / (math.sqrt(2.0) * radius)
    f = pairwise_quasi_geodesic_conv(pts, nuv_flat, normals, f,
                                     p["conv_w1"], p["conv_b1"],
                                     p["conv_w2"], p["conv_b2"])
    # 3. net_out (Linear, LeakyReLU, Linear, LeakyReLU) + GroupNorm(4, O)
    f = leaky_relu(linear(f, p["out_w1"], p["out_b1"]))
    f = leaky_relu(linear(f, p["out_w2"], p["out_b2"]))
    f = group_norm(f, p["gn_out_w"], p["gn_out_b"])
    return f


def dmasif_conv_seg_forward(params, points, nuv, features, radius=9.0, residue=True):
    N = points.shape[0]
    normals = nuv[:, 0, :]
    nuv_flat = nuv.reshape(N, 9)
    x = features
    for lp, ll, lt in zip(params["layers"], params["linear_layers"],
                          params["linear_transform"]):
        x_i = dmasif_conv_apply(lp, points, nuv_flat, normals, x, radius)
        x_i = linear(jax.nn.relu(linear(x_i, ll["w1"], ll["b1"])), ll["w2"], ll["b2"])
        x = linear(x, lt["w"], lt["b"])
        x = x + x_i
    if residue:
        x = x + linear(features, params["res_w"], params["res_b"])
    return x


# ----------------------------------------------------------------------------
# Deterministic parameter init (mimics the PyTorch module's shapes / init style)
# ----------------------------------------------------------------------------
def _init_linear(key, out_dim, in_dim):
    kw, kb = jax.random.split(key)
    bound = 1.0 / math.sqrt(in_dim)
    w = jax.random.uniform(kw, (out_dim, in_dim), jnp.float32, -bound, bound)
    b = jax.random.uniform(kb, (out_dim,), jnp.float32, -bound, bound)
    return w, b


def init_params(key, in_channels, out_channels, n_layers):
    I, O = in_channels, out_channels
    H = O  # dMaSIFConv(..., hidden_units=O)
    params = {"layers": [], "linear_layers": [], "linear_transform": []}
    for i in range(n_layers):
        key, *ks = jax.random.split(key, 12)
        in_dim = I if i == 0 else O
        p = {}
        p["in_w1"], p["in_b1"] = _init_linear(ks[0], H, in_dim)
        p["in_w2"], p["in_b2"] = _init_linear(ks[1], H, H)
        p["gn_in_w"], p["gn_in_b"] = jnp.ones((H,), jnp.float32), jnp.zeros((H,), jnp.float32)
        # filter MLP Linear(3, C) -> ReLU -> Linear(C, H), dMaSIF-style init
        w1 = jax.random.normal(ks[2], (CUTS, 3), jnp.float32)
        b1 = jax.random.uniform(ks[3], (CUTS,), jnp.float32) * 0.8 * jnp.sqrt(jnp.sum(w1 ** 2, -1))
        w2 = jax.random.uniform(ks[4], (H, CUTS), jnp.float32,
                                -1.0 / math.sqrt(CUTS), 1.0 / math.sqrt(CUTS))
        b2 = jax.random.normal(ks[5], (H,), jnp.float32) * 0.5 * jnp.sqrt(jnp.sum(w2 ** 2, -1))
        p["conv_w1"], p["conv_b1"], p["conv_w2"], p["conv_b2"] = w1, b1, w2, b2
        p["out_w1"], p["out_b1"] = _init_linear(ks[6], O, H)
        p["out_w2"], p["out_b2"] = _init_linear(ks[7], O, O)
        p["gn_out_w"], p["gn_out_b"] = jnp.ones((O,), jnp.float32), jnp.zeros((O,), jnp.float32)
        params["layers"].append(p)

        ll = {}
        ll["w1"], ll["b1"] = _init_linear(ks[8], O, O)
        ll["w2"], ll["b2"] = _init_linear(ks[9], O, O)
        params["linear_layers"].append(ll)

        lt = {}
        lt["w"], lt["b"] = _init_linear(ks[10], O, in_dim)
        params["linear_transform"].append(lt)

    key, kr = jax.random.split(key)
    params["res_w"], params["res_b"] = _init_linear(kr, O, I)
    return params


def tangent_vectors(normals):
    x, y, z = normals[:, 0], normals[:, 1], normals[:, 2]
    s = jnp.where(z >= 0, 1.0, -1.0)
    a = -1.0 / (s + z)
    b = x * y * a
    u = jnp.stack([1.0 + s * x * x * a, s * b, -s * x], axis=-1)
    v = jnp.stack([b, s + y * y * a, -y], axis=-1)
    return u, v


def _pairwise_reference(pts, nuv, normals, f, w1, b1, w2, b2):
    # dense pure-JAX reference of the KeOps reduction (sanity check)
    dx = pts[None, :, :] - pts[:, None, :]
    d2 = jnp.sum(dx * dx, axis=-1)
    ndot = normals @ normals.T
    window = jnp.exp(-d2 * (2.0 - ndot) ** 2)
    X = jnp.einsum('ikc,ijc->ijk', nuv, dx)
    h1 = jax.nn.relu(jnp.einsum('ck,ijk->ijc', w1, X) + b1)
    h2 = jax.nn.relu(jnp.einsum('hc,ijc->ijh', w2, h1) + b2)
    return jnp.sum(window[:, :, None] * h2 * f[None, :, :], axis=1)


if __name__ == "__main__":
    key = jax.random.PRNGKey(0)
    # N deliberately not a multiple of 128 to exercise the padding/masking path
    N, I, O, n_layers, radius = 200, 16, 16, 2, 9.0

    kpts, kn, kf, kp = jax.random.split(key, 4)
    points = jax.random.uniform(kpts, (N, 3), jnp.float32) * 10.0
    normals = jax.random.normal(kn, (N, 3), jnp.float32)
    normals = normals / jnp.linalg.norm(normals, axis=-1, keepdims=True)
    u, v = tangent_vectors(normals)
    nuv = jnp.stack([normals, u, v], axis=1)            # (N, 3, 3)
    features = jax.random.normal(kf, (N, I), jnp.float32)

    params = init_params(kp, I, O, n_layers)

    out = dmasif_conv_seg_forward(params, points, nuv, features,
                                  radius=radius, residue=True)
    out = jax.block_until_ready(out)
    assert out.shape == (N, O)

    # sanity: compare the Pallas pairwise interaction of layer 0 against a
    # dense pure-JAX reference (also validates the zero-pad masking)
    p0 = params["layers"][0]
    f0 = group_norm(
        leaky_relu(linear(leaky_relu(linear(features, p0["in_w1"], p0["in_b1"])),
                          p0["in_w2"], p0["in_b2"])),
        p0["gn_in_w"], p0["gn_in_b"])
    pts_s = points / (math.sqrt(2.0) * radius)
    ker = pairwise_quasi_geodesic_conv(pts_s, nuv.reshape(N, 9), normals, f0,
                                       p0["conv_w1"], p0["conv_b1"],
                                       p0["conv_w2"], p0["conv_b2"])
    ref = _pairwise_reference(pts_s, nuv, normals, f0,
                              p0["conv_w1"], p0["conv_b1"],
                              p0["conv_w2"], p0["conv_b2"])
    ker, ref = jax.block_until_ready((ker, ref))
    assert jnp.allclose(ker, ref, rtol=2e-3, atol=1e-2), \
        float(jnp.max(jnp.abs(ker - ref)))

    print("KERNEL_OK")
</pallas_src>

<mosaic_0001>
module attributes {stable_mosaic.version = 11 : i64} {
  func.func @_pair_conv_kernel(%arg0: i32, %arg1: memref<128x3xf32, #tpu.memory_space<vmem>>, %arg2: memref<128x9xf32, #tpu.memory_space<vmem>>, %arg3: memref<3x256xf32, #tpu.memory_space<vmem>>, %arg4: memref<3x256xf32, #tpu.memory_space<vmem>>, %arg5: memref<16x256xf32, #tpu.memory_space<vmem>>, %arg6: memref<8x3xf32, #tpu.memory_space<smem>>, %arg7: memref<8xf32, #tpu.memory_space<smem>>, %arg8: memref<8x16xf32, #tpu.memory_space<smem>>, %arg9: memref<16xf32, #tpu.memory_space<smem>>, %arg10: memref<128x16xf32, #tpu.memory_space<vmem>>) attributes {dimension_semantics = [#tpu.dimension_semantics<parallel>], iteration_bounds = array<i64: 2>, scalar_prefetch = 0 : i64, scratch_operands = 0 : i64, tpu.core_type = #tpu.core_type<tc>, window_params = [{transform_indices = @transform_0, window_bounds = array<i64: 128, 3>}, {transform_indices = @transform_1, window_bounds = array<i64: 128, 9>}, {pipeline_mode = #tpu.pipeline_mode<synchronous>, transform_indices = @transform_2, window_bounds = array<i64: 3, 256>}, {pipeline_mode = #tpu.pipeline_mode<synchronous>, transform_indices = @transform_3, window_bounds = array<i64: 3, 256>}, {pipeline_mode = #tpu.pipeline_mode<synchronous>, transform_indices = @transform_4, window_bounds = array<i64: 16, 256>}, {transform_indices = @transform_5, window_bounds = array<i64: 8, 3>}, {transform_indices = @transform_6, window_bounds = array<i64: 8>}, {transform_indices = @transform_7, window_bounds = array<i64: 8, 16>}, {transform_indices = @transform_8, window_bounds = array<i64: 16>}, {transform_indices = @transform_9, window_bounds = array<i64: 128, 16>}]} {
    %0 = tpu.iota {dimensions = array<i32: 1>} : vector<1x16xi32>
    %c0_i32 = arith.constant 0 : i32
    %1 = vector.broadcast %c0_i32 : i32 to vector<1x16xi32>
    %2 = arith.cmpi eq, %0, %1 : vector<1x16xi32>
    %c1_i32 = arith.constant 1 : i32
    %3 = vector.broadcast %c1_i32 : i32 to vector<1x16xi32>
    %4 = arith.cmpi eq, %0, %3 : vector<1x16xi32>
    %c2_i32 = arith.constant 2 : i32
    %5 = vector.broadcast %c2_i32 : i32 to vector<1x16xi32>
    %6 = arith.cmpi eq, %0, %5 : vector<1x16xi32>
    %c3_i32 = arith.constant 3 : i32
    %7 = vector.broadcast %c3_i32 : i32 to vector<1x16xi32>
    %8 = arith.cmpi eq, %0, %7 : vector<1x16xi32>
    %c4_i32 = arith.constant 4 : i32
    %9 = vector.broadcast %c4_i32 : i32 to vector<1x16xi32>
    %10 = arith.cmpi eq, %0, %9 : vector<1x16xi32>
    %c5_i32 = arith.constant 5 : i32
    %11 = vector.broadcast %c5_i32 : i32 to vector<1x16xi32>
    %12 = arith.cmpi eq, %0, %11 : vector<1x16xi32>
    %c6_i32 = arith.constant 6 : i32
    %13 = vector.broadcast %c6_i32 : i32 to vector<1x16xi32>
    %14 = arith.cmpi eq, %0, %13 : vector<1x16xi32>
    %c7_i32 = arith.constant 7 : i32
    %15 = vector.broadcast %c7_i32 : i32 to vector<1x16xi32>
    %16 = arith.cmpi eq, %0, %15 : vector<1x16xi32>
    %c8_i32 = arith.constant 8 : i32
    %17 = vector.broadcast %c8_i32 : i32 to vector<1x16xi32>
    %18 = arith.cmpi eq, %0, %17 : vector<1x16xi32>
    %c9_i32 = arith.constant 9 : i32
    %19 = vector.broadcast %c9_i32 : i32 to vector<1x16xi32>
    %20 = arith.cmpi eq, %0, %19 : vector<1x16xi32>
    %c10_i32 = arith.constant 10 : i32
    %21 = vector.broadcast %c10_i32 : i32 to vector<1x16xi32>
    %22 = arith.cmpi eq, %0, %21 : vector<1x16xi32>
    %c11_i32 = arith.constant 11 : i32
    %23 = vector.broadcast %c11_i32 : i32 to vector<1x16xi32>
    %24 = arith.cmpi eq, %0, %23 : vector<1x16xi32>
    %c12_i32 = arith.constant 12 : i32
    %25 = vector.broadcast %c12_i32 : i32 to vector<1x16xi32>
    %26 = arith.cmpi eq, %0, %25 : vector<1x16xi32>
    %c13_i32 = arith.constant 13 : i32
    %27 = vector.broadcast %c13_i32 : i32 to vector<1x16xi32>
    %28 = arith.cmpi eq, %0, %27 : vector<1x16xi32>
    %c14_i32 = arith.constant 14 : i32
    %29 = vector.broadcast %c14_i32 : i32 to vector<1x16xi32>
    %30 = arith.cmpi eq, %0, %29 : vector<1x16xi32>
    %c15_i32 = arith.constant 15 : i32
    %31 = vector.broadcast %c15_i32 : i32 to vector<1x16xi32>
    %32 = arith.cmpi eq, %0, %31 : vector<1x16xi32>
    %c0_i32_0 = arith.constant 0 : i32
    %c16_i32 = arith.constant 16 : i32
    %33 = arith.addi %c0_i32_0, %c16_i32 : i32
    %c1_i32_1 = arith.constant 1 : i32
    scf.for %arg11 = %c0_i32_0 to %33 step %c1_i32_1  : i32 {
      %c8_i32_3 = arith.constant 8 : i32
      %34 = arith.muli %arg11, %c8_i32_3 : i32
      %35 = tpu.assume_multiple %34, 8 : i32
      %36 = arith.index_cast %35 : i32 to index
      %c0 = arith.constant 0 : index
      %37 = vector.load %arg1[%36, %c0] : memref<128x3xf32, #tpu.memory_space<vmem>>, vector<8x3xf32>
      %38 = arith.index_cast %35 : i32 to index
      %c0_4 = arith.constant 0 : index
      %39 = vector.load %arg2[%38, %c0_4] : memref<128x9xf32, #tpu.memory_space<vmem>>, vector<8x9xf32>
      %40 = vector.extract_strided_slice %37 {offsets = [0, 0], sizes = [8, 1], strides = [1, 1]} : vector<8x3xf32> to vector<8x1xf32>
      %41 = vector.shape_cast %40 : vector<8x1xf32> to vector<8x1xf32>
      %42 = vector.broadcast %41 : vector<8x1xf32> to vector<8x256xf32>
      %43 = vector.extract_strided_slice %37 {offsets = [0, 1], sizes = [8, 1], strides = [1, 1]} : vector<8x3xf32> to vector<8x1xf32>
      %44 = vector.shape_cast %43 : vector<8x1xf32> to vector<8x1xf32>
      %45 = vector.broadcast %44 : vector<8x1xf32> to vector<8x256xf32>
      %46 = vector.extract_strided_slice %37 {offsets = [0, 2], sizes = [8, 1], strides = [1, 1]} : vector<8x3xf32> to vector<8x1xf32>
      %47 = vector.shape_cast %46 : vector<8x1xf32> to vector<8x1xf32>
      %48 = vector.broadcast %47 : vector<8x1xf32> to vector<8x256xf32>
      %49 = vector.extract_strided_slice %39 {offsets = [0, 0], sizes = [8, 1], strides = [1, 1]} : vector<8x9xf32> to vector<8x1xf32>
      %50 = vector.shape_cast %49 : vector<8x1xf32> to vector<8x1xf32>
      %51 = vector.broadcast %50 : vector<8x1xf32> to vector<8x256xf32>
      %52 = vector.extract_strided_slice %39 {offsets = [0, 1], sizes = [8, 1], strides = [1, 1]} : vector<8x9xf32> to vector<8x1xf32>
      %53 = vector.shape_cast %52 : vector<8x1xf32> to vector<8x1xf32>
      %54 = vector.broadcast %53 : vector<8x1xf32> to vector<8x256xf32>
      %55 = vector.extract_strided_slice %39 {offsets = [0, 2], sizes = [8, 1], strides = [1, 1]} : vector<8x9xf32> to vector<8x1xf32>
      %56 = vector.shape_cast %55 : vector<8x1xf32> to vector<8x1xf32>
      %57 = vector.broadcast %56 : vector<8x1xf32> to vector<8x256xf32>
      %58 = vector.extract_strided_slice %39 {offsets = [0, 3], sizes = [8, 1], strides = [1, 1]} : vector<8x9xf32> to vector<8x1xf32>
      %59 = vector.shape_cast %58 : vector<8x1xf32> to vector<8x1xf32>
      %60 = vector.broadcast %59 : vector<8x1xf32> to vector<8x256xf32>
      %61 = vector.extract_strided_slice %39 {offsets = [0, 4], sizes = [8, 1], strides = [1, 1]} : vector<8x9xf32> to vector<8x1xf32>
      %62 = vector.shape_cast %61 : vector<8x1xf32> to vector<8x1xf32>
      %63 = vector.broadcast %62 : vector<8x1xf32> to vector<8x256xf32>
      %64 = vector.extract_strided_slice %39 {offsets = [0, 5], sizes = [8, 1], strides = [1, 1]} : vector<8x9xf32> to vector<8x1xf32>
      %65 = vector.shape_cast %64 : vector<8x1xf32> to vector<8x1xf32>
      %66 = vector.broadcast %65 : vector<8x1xf32> to vector<8x256xf32>
      %67 = vector.extract_strided_slice %39 {offsets = [0, 6], sizes = [8, 1], strides = [1, 1]} : vector<8x9xf32> to vector<8x1xf32>
      %68 = vector.shape_cast %67 : vector<8x1xf32> to vector<8x1xf32>
      %69 = vector.broadcast %68 : vector<8x1xf32> to vector<8x256xf32>
      %70 = vector.extract_strided_slice %39 {offsets = [0, 7], sizes = [8, 1], strides = [1, 1]} : vector<8x9xf32> to vector<8x1xf32>
      %71 = vector.shape_cast %70 : vector<8x1xf32> to vector<8x1xf32>
      %72 = vector.broadcast %71 : vector<8x1xf32> to vector<8x256xf32>
      %73 = vector.extract_strided_slice %39 {offsets = [0, 8], sizes = [8, 1], strides = [1, 1]} : vector<8x9xf32> to vector<8x1xf32>
      %74 = vector.shape_cast %73 : vector<8x1xf32> to vector<8x1xf32>
      %75 = vector.broadcast %74 : vector<8x1xf32> to vector<8x256xf32>
      %cst = arith.constant 0.000000e+00 : f32
      %76 = vector.broadcast %cst : f32 to vector<8x16xf32>
      %c0_i32_5 = arith.constant 0 : i32
      %c256_i32 = arith.constant 256 : i32
      %77 = arith.muli %c0_i32_5, %c256_i32 : i32
      %78 = tpu.assume_multiple %77, 256 : i32
      %c0_6 = arith.constant 0 : index
      %79 = arith.index_cast %78 : i32 to index
      %80 = vector.load %arg3[%c0_6, %79] : memref<3x256xf32, #tpu.memory_space<vmem>>, vector<1x256xf32>
      %81 = vector.broadcast %80 : vector<1x256xf32> to vector<8x256xf32>
      %82 = arith.subf %81, %42 : vector<8x256xf32>
      %c1 = arith.constant 1 : index
      %83 = arith.index_cast %78 : i32 to index
      %84 = vector.load %arg3[%c1, %83] : memref<3x256xf32, #tpu.memory_space<vmem>>, vector<1x256xf32>
      %85 = vector.broadcast %84 : vector<1x256xf32> to vector<8x256xf32>
      %86 = arith.subf %85, %45 : vector<8x256xf32>
      %c2 = arith.constant 2 : index
      %87 = arith.index_cast %78 : i32 to index
      %88 = vector.load %arg3[%c2, %87] : memref<3x256xf32, #tpu.memory_space<vmem>>, vector<1x256xf32>
      %89 = vector.broadcast %88 : vector<1x256xf32> to vector<8x256xf32>
      %90 = arith.subf %89, %48 : vector<8x256xf32>
      %91 = arith.mulf %82, %82 : vector<8x256xf32>
      %92 = arith.mulf %86, %86 : vector<8x256xf32>
      %93 = arith.addf %91, %92 : vector<8x256xf32>
      %94 = arith.mulf %90, %90 : vector<8x256xf32>
      %95 = arith.addf %93, %94 : vector<8x256xf32>
      %c0_7 = arith.constant 0 : index
      %96 = arith.index_cast %78 : i32 to index
      %97 = vector.load %arg4[%c0_7, %96] : memref<3x256xf32, #tpu.memory_space<vmem>>, vector<1x256xf32>
      %98 = vector.broadcast %97 : vector<1x256xf32> to vector<8x256xf32>
      %99 = arith.mulf %51, %98 : vector<8x256xf32>
      %c1_8 = arith.constant 1 : index
      %100 = arith.index_cast %78 : i32 to index
      %101 = vector.load %arg4[%c1_8, %100] : memref<3x256xf32, #tpu.memory_space<vmem>>, vector<1x256xf32>
      %102 = vector.broadcast %101 : vector<1x256xf32> to vector<8x256xf32>
      %103 = arith.mulf %54, %102 : vector<8x256xf32>
      %104 = arith.addf %99, %103 : vector<8x256xf32>
      %c2_9 = arith.constant 2 : index
      %105 = arith.index_cast %78 : i32 to index
      %106 = vector.load %arg4[%c2_9, %105] : memref<3x256xf32, #tpu.memory_space<vmem>>, vector<1x256xf32>
      %107 = vector.broadcast %106 : vector<1x256xf32> to vector<8x256xf32>
      %108 = arith.mulf %57, %107 : vector<8x256xf32>
      %109 = arith.addf %104, %108 : vector<8x256xf32>
      %cst_10 = arith.constant 2.000000e+00 : f32
      %110 = vector.broadcast %cst_10 : f32 to vector<8x256xf32>
      %111 = arith.subf %110, %109 : vector<8x256xf32>
      %112 = arith.mulf %111, %111 : vector<8x256xf32>
      %113 = arith.mulf %95, %112 : vector<8x256xf32>
      %cst_11 = arith.constant 0.000000e+00 : f32
      %114 = vector.broadcast %cst_11 : f32 to vector<8x256xf32>
      %115 = arith.subf %114, %113 : vector<8x256xf32>
      %116 = math.exp %115 : vector<8x256xf32>
      %117 = arith.mulf %51, %82 : vector<8x256xf32>
      %118 = arith.mulf %54, %86 : vector<8x256xf32>
      %119 = arith.addf %117, %118 : vector<8x256xf32>
      %120 = arith.mulf %57, %90 : vector<8x256xf32>
      %121 = arith.addf %119, %120 : vector<8x256xf32>
      %122 = arith.mulf %60, %82 : vector<8x256xf32>
      %123 = arith.mulf %63, %86 : vector<8x256xf32>
      %124 = arith.addf %122, %123 : vector<8x256xf32>
      %125 = arith.mulf %66, %90 : vector<8x256xf32>
      %126 = arith.addf %124, %125 : vector<8x256xf32>
      %127 = arith.mulf %69, %82 : vector<8x256xf32>
      %128 = arith.mulf %72, %86 : vector<8x256xf32>
      %129 = arith.addf %127, %128 : vector<8x256xf32>
      %130 = arith.mulf %75, %90 : vector<8x256xf32>
      %131 = arith.addf %129, %130 : vector<8x256xf32>
      %c0_12 = arith.constant 0 : index
      %c0_13 = arith.constant 0 : index
      %132 = memref.load %arg6[%c0_12, %c0_13] : memref<8x3xf32, #tpu.memory_space<smem>>
      %133 = vector.broadcast %132 : f32 to vector<8x256xf32>
      %134 = arith.mulf %121, %133 : vector<8x256xf32>
      %c0_14 = arith.constant 0 : index
      %c1_15 = arith.constant 1 : index
      %135 = memref.load %arg6[%c0_14, %c1_15] : memref<8x3xf32, #tpu.memory_space<smem>>
      %136 = vector.broadcast %135 : f32 to vector<8x256xf32>
      %137 = arith.mulf %126, %136 : vector<8x256xf32>
      %138 = arith.addf %134, %137 : vector<8x256xf32>
      %c0_16 = arith.constant 0 : index
      %c2_17 = arith.constant 2 : index
      %139 = memref.load %arg6[%c0_16, %c2_17] : memref<8x3xf32, #tpu.memory_space<smem>>
      %140 = vector.broadcast %139 : f32 to vector<8x256xf32>
      %141 = arith.mulf %131, %140 : vector<8x256xf32>
      %142 = arith.addf %138, %141 : vector<8x256xf32>
      %c0_18 = arith.constant 0 : index
      %143 = memref.load %arg7[%c0_18] : memref<8xf32, #tpu.memory_space<smem>>
      %144 = vector.broadcast %143 : f32 to vector<8x256xf32>
      %145 = arith.addf %142, %144 : vector<8x256xf32>
      %cst_19 = arith.constant 0.000000e+00 : f32
      %146 = vector.broadcast %cst_19 : f32 to vector<8x256xf32>
      %147 = arith.maximumf %145, %146 : vector<8x256xf32>
      %c1_20 = arith.constant 1 : index
      %c0_21 = arith.constant 0 : index
      %148 = memref.load %arg6[%c1_20, %c0_21] : memref<8x3xf32, #tpu.memory_space<smem>>
      %149 = vector.broadcast %148 : f32 to vector<8x256xf32>
      %150 = arith.mulf %121, %149 : vector<8x256xf32>
      %c1_22 = arith.constant 1 : index
      %c1_23 = arith.constant 1 : index
      %151 = memref.load %arg6[%c1_22, %c1_23] : memref<8x3xf32, #tpu.memory_space<smem>>
      %152 = vector.broadcast %151 : f32 to vector<8x256xf32>
      %153 = arith.mulf %126, %152 : vector<8x256xf32>
      %154 = arith.addf %150, %153 : vector<8x256xf32>
      %c1_24 = arith.constant 1 : index
      %c2_25 = arith.constant 2 : index
      %155 = memref.load %arg6[%c1_24, %c2_25] : memref<8x3xf32, #tpu.memory_space<smem>>
      %156 = vector.broadcast %155 : f32 to vector<8x256xf32>
      %157 = arith.mulf %131, %156 : vector<8x256xf32>
      %158 = arith.addf %154, %157 : vector<8x256xf32>
      %c1_26 = arith.constant 1 : index
      %159 = memref.load %arg7[%c1_26] : memref<8xf32, #tpu.memory_space<smem>>
      %160 = vector.broadcast %159 : f32 to vector<8x256xf32>
      %161 = arith.addf %158, %160 : vector<8x256xf32>
      %cst_27 = arith.constant 0.000000e+00 : f32
      %162 = vector.broadcast %cst_27 : f32 to vector<8x256xf32>
      %163 = arith.maximumf %161, %162 : vector<8x256xf32>
      %c2_28 = arith.constant 2 : index
      %c0_29 = arith.constant 0 : index
      %164 = memref.load %arg6[%c2_28, %c0_29] : memref<8x3xf32, #tpu.memory_space<smem>>
      %165 = vector.broadcast %164 : f32 to vector<8x256xf32>
      %166 = arith.mulf %121, %165 : vector<8x256xf32>
      %c2_30 = arith.constant 2 : index
      %c1_31 = arith.constant 1 : index
      %167 = memref.load %arg6[%c2_30, %c1_31] : memref<8x3xf32, #tpu.memory_space<smem>>
      %168 = vector.broadcast %167 : f32 to vector<8x256xf32>
      %169 = arith.mulf %126, %168 : vector<8x256xf32>
      %170 = arith.addf %166, %169 : vector<8x256xf32>
      %c2_32 = arith.constant 2 : index
      %c2_33 = arith.constant 2 : index
      %171 = memref.load %arg6[%c2_32, %c2_33] : memref<8x3xf32, #tpu.memory_space<smem>>
      %172 = vector.broadcast %171 : f32 to vector<8x256xf32>
      %173 = arith.mulf %131, %172 : vector<8x256xf32>
      %174 = arith.addf %170, %173 : vector<8x256xf32>
      %c2_34 = arith.constant 2 : index
      %175 = memref.load %arg7[%c2_34] : memref<8xf32, #tpu.memory_space<smem>>
      %176 = vector.broadcast %175 : f32 to vector<8x256xf32>
      %177 = arith.addf %174, %176 : vector<8x256xf32>
      %cst_35 = arith.constant 0.000000e+00 : f32
      %178 = vector.broadcast %cst_35 : f32 to vector<8x256xf32>
      %179 = arith.maximumf %177, %178 : vector<8x256xf32>
      %c3 = arith.constant 3 : index
      %c0_36 = arith.constant 0 : index
      %180 = memref.load %arg6[%c3, %c0_36] : memref<8x3xf32, #tpu.memory_space<smem>>
      %181 = vector.broadcast %180 : f32 to vector<8x256xf32>
      %182 = arith.mulf %121, %181 : vector<8x256xf32>
      %c3_37 = arith.constant 3 : index
      %c1_38 = arith.constant 1 : index
      %183 = memref.load %arg6[%c3_37, %c1_38] : memref<8x3xf32, #tpu.memory_space<smem>>
      %184 = vector.broadcast %183 : f32 to vector<8x256xf32>
      %185 = arith.mulf %126, %184 : vector<8x256xf32>
      %186 = arith.addf %182, %185 : vector<8x256xf32>
      %c3_39 = arith.constant 3 : index
      %c2_40 = arith.constant 2 : index
      %187 = memref.load %arg6[%c3_39, %c2_40] : memref<8x3xf32, #tpu.memory_space<smem>>
      %188 = vector.broadcast %187 : f32 to vector<8x256xf32>
      %189 = arith.mulf %131, %188 : vector<8x256xf32>
      %190 = arith.addf %186, %189 : vector<8x256xf32>
      %c3_41 = arith.constant 3 : index
      %191 = memref.load %arg7[%c3_41] : memref<8xf32, #tpu.memory_space<smem>>
      %192 = vector.broadcast %191 : f32 to vector<8x256xf32>
      %193 = arith.addf %190, %192 : vector<8x256xf32>
      %cst_42 = arith.constant 0.000000e+00 : f32
      %194 = vector.broadcast %cst_42 : f32 to vector<8x256xf32>
      %195 = arith.maximumf %193, %194 : vector<8x256xf32>
      %c4 = arith.constant 4 : index
      %c0_43 = arith.constant 0 : index
      %196 = memref.load %arg6[%c4, %c0_43] : memref<8x3xf32, #tpu.memory_space<smem>>
      %197 = vector.broadcast %196 : f32 to vector<8x256xf32>
      %198 = arith.mulf %121, %197 : vector<8x256xf32>
      %c4_44 = arith.constant 4 : index
      %c1_45 = arith.constant 1 : index
      %199 = memref.load %arg6[%c4_44, %c1_45] : memref<8x3xf32, #tpu.memory_space<smem>>
      %200 = vector.broadcast %199 : f32 to vector<8x256xf32>
      %201 = arith.mulf %126, %200 : vector<8x256xf32>
      %202 = arith.addf %198, %201 : vector<8x256xf32>
      %c4_46 = arith.constant 4 : index
      %c2_47 = arith.constant 2 : index
      %203 = memref.load %arg6[%c4_46, %c2_47] : memref<8x3xf32, #tpu.memory_space<smem>>
      %204 = vector.broadcast %203 : f32 to vector<8x256xf32>
      %205 = arith.mulf %131, %204 : vector<8x256xf32>
      %206 = arith.addf %202, %205 : vector<8x256xf32>
      %c4_48 = arith.constant 4 : index
      %207 = memref.load %arg7[%c4_48] : memref<8xf32, #tpu.memory_space<smem>>
      %208 = vector.broadcast %207 : f32 to vector<8x256xf32>
      %209 = arith.addf %206, %208 : vector<8x256xf32>
      %cst_49 = arith.constant 0.000000e+00 : f32
      %210 = vector.broadcast %cst_49 : f32 to vector<8x256xf32>
      %211 = arith.maximumf %209, %210 : vector<8x256xf32>
      %c5 = arith.constant 5 : index
      %c0_50 = arith.constant 0 : index
      %212 = memref.load %arg6[%c5, %c0_50] : memref<8x3xf32, #tpu.memory_space<smem>>
      %213 = vector.broadcast %212 : f32 to vector<8x256xf32>
      %214 = arith.mulf %121, %213 : vector<8x256xf32>
      %c5_51 = arith.constant 5 : index
      %c1_52 = arith.constant 1 : index
      %215 = memref.load %arg6[%c5_51, %c1_52] : memref<8x3xf32, #tpu.memory_space<smem>>
      %216 = vector.broadcast %215 : f32 to vector<8x256xf32>
      %217 = arith.mulf %126, %216 : vector<8x256xf32>
      %218 = arith.addf %214, %217 : vector<8x256xf32>
      %c5_53 = arith.constant 5 : index
      %c2_54 = arith.constant 2 : index
      %219 = memref.load %arg6[%c5_53, %c2_54] : memref<8x3xf32, #tpu.memory_space<smem>>
      %220 = vector.broadcast %219 : f32 to vector<8x256xf32>
      %221 = arith.mulf %131, %220 : vector<8x256xf32>
      %222 = arith.addf %218, %221 : vector<8x256xf32>
      %c5_55 = arith.constant 5 : index
      %223 = memref.load %arg7[%c5_55] : memref<8xf32, #tpu.memory_space<smem>>
      %224 = vector.broadcast %223 : f32 to vector<8x256xf32>
      %225 = arith.addf %222, %224 : vector<8x256xf32>
      %cst_56 = arith.constant 0.000000e+00 : f32
      %226 = vector.broadcast %cst_56 : f32 to vector<8x256xf32>
      %227 = arith.maximumf %225, %226 : vector<8x256xf32>
      %c6 = arith.constant 6 : index
      %c0_57 = arith.constant 0 : index
      %228 = memref.load %arg6[%c6, %c0_57] : memref<8x3xf32, #tpu.memory_space<smem>>
      %229 = vector.broadcast %228 : f32 to vector<8x256xf32>
      %230 = arith.mulf %121, %229 : vector<8x256xf32>
      %c6_58 = arith.constant 6 : index
      %c1_59 = arith.constant 1 : index
      %231 = memref.load %arg6[%c6_58, %c1_59] : memref<8x3xf32, #tpu.memory_space<smem>>
      %232 = vector.broadcast %231 : f32 to vector<8x256xf32>
      %233 = arith.mulf %126, %232 : vector<8x256xf32>
      %234 = arith.addf %230, %233 : vector<8x256xf32>
      %c6_60 = arith.constant 6 : index
      %c2_61 = arith.constant 2 : index
      %235 = memref.load %arg6[%c6_60, %c2_61] : memref<8x3xf32, #tpu.memory_space<smem>>
      %236 = vector.broadcast %235 : f32 to vector<8x256xf32>
      %237 = arith.mulf %131, %236 : vector<8x256xf32>
      %238 = arith.addf %234, %237 : vector<8x256xf32>
      %c6_62 = arith.constant 6 : index
      %239 = memref.load %arg7[%c6_62] : memref<8xf32, #tpu.memory_space<smem>>
      %240 = vector.broadcast %239 : f32 to vector<8x256xf32>
      %241 = arith.addf %238, %240 : vector<8x256xf32>
      %cst_63 = arith.constant 0.000000e+00 : f32
      %242 = vector.broadcast %cst_63 : f32 to vector<8x256xf32>
      %243 = arith.maximumf %241, %242 : vector<8x256xf32>
      %c7 = arith.constant 7 : index
      %c0_64 = arith.constant 0 : index
      %244 = memref.load %arg6[%c7, %c0_64] : memref<8x3xf32, #tpu.memory_space<smem>>
      %245 = vector.broadcast %244 : f32 to vector<8x256xf32>
      %246 = arith.mulf %121, %245 : vector<8x256xf32>
      %c7_65 = arith.constant 7 : index
      %c1_66 = arith.constant 1 : index
      %247 = memref.load %arg6[%c7_65, %c1_66] : memref<8x3xf32, #tpu.memory_space<smem>>
      %248 = vector.broadcast %247 : f32 to vector<8x256xf32>
      %249 = arith.mulf %126, %248 : vector<8x256xf32>
      %250 = arith.addf %246, %249 : vector<8x256xf32>
      %c7_67 = arith.constant 7 : index
      %c2_68 = arith.constant 2 : index
      %251 = memref.load %arg6[%c7_67, %c2_68] : memref<8x3xf32, #tpu.memory_space<smem>>
      %252 = vector.broadcast %251 : f32 to vector<8x256xf32>
      %253 = arith.mulf %131, %252 : vector<8x256xf32>
      %254 = arith.addf %250, %253 : vector<8x256xf32>
      %c7_69 = arith.constant 7 : index
      %255 = memref.load %arg7[%c7_69] : memref<8xf32, #tpu.memory_space<smem>>
      %256 = vector.broadcast %255 : f32 to vector<8x256xf32>
      %257 = arith.addf %254, %256 : vector<8x256xf32>
      %cst_70 = arith.constant 0.000000e+00 : f32
      %258 = vector.broadcast %cst_70 : f32 to vector<8x256xf32>
      %259 = arith.maximumf %257, %258 : vector<8x256xf32>
      %c0_71 = arith.constant 0 : index
      %c0_72 = arith.constant 0 : index
      %260 = memref.load %arg8[%c0_71, %c0_72] : memref<8x16xf32, #tpu.memory_space<smem>>
      %261 = vector.broadcast %260 : f32 to vector<8x256xf32>
      %262 = arith.mulf %147, %261 : vector<8x256xf32>
      %c1_73 = arith.constant 1 : index
      %c0_74 = arith.constant 0 : index
      %263 = memref.load %arg8[%c1_73, %c0_74] : memref<8x16xf32, #tpu.memory_space<smem>>
      %264 = vector.broadcast %263 : f32 to vector<8x256xf32>
      %265 = arith.mulf %163, %264 : vector<8x256xf32>
      %266 = arith.addf %262, %265 : vector<8x256xf32>
      %c2_75 = arith.constant 2 : index
      %c0_76 = arith.constant 0 : index
      %267 = memref.load %arg8[%c2_75, %c0_76] : memref<8x16xf32, #tpu.memory_space<smem>>
      %268 = vector.broadcast %267 : f32 to vector<8x256xf32>
      %269 = arith.mulf %179, %268 : vector<8x256xf32>
      %270 = arith.addf %266, %269 : vector<8x256xf32>
      %c3_77 = arith.constant 3 : index
      %c0_78 = arith.constant 0 : index
      %271 = memref.load %arg8[%c3_77, %c0_78] : memref<8x16xf32, #tpu.memory_space<smem>>
      %272 = vector.broadcast %271 : f32 to vector<8x256xf32>
      %273 = arith.mulf %195, %272 : vector<8x256xf32>
      %274 = arith.addf %270, %273 : vector<8x256xf32>
      %c4_79 = arith.constant 4 : index
      %c0_80 = arith.constant 0 : index
      %275 = memref.load %arg8[%c4_79, %c0_80] : memref<8x16xf32, #tpu.memory_space<smem>>
      %276 = vector.broadcast %275 : f32 to vector<8x256xf32>
      %277 = arith.mulf %211, %276 : vector<8x256xf32>
      %278 = arith.addf %274, %277 : vector<8x256xf32>
      %c5_81 = arith.constant 5 : index
      %c0_82 = arith.constant 0 : index
      %279 = memref.load %arg8[%c5_81, %c0_82] : memref<8x16xf32, #tpu.memory_space<smem>>
      %280 = vector.broadcast %279 : f32 to vector<8x256xf32>
      %281 = arith.mulf %227, %280 : vector<8x256xf32>
      %282 = arith.addf %278, %281 : vector<8x256xf32>
      %c6_83 = arith.constant 6 : index
      %c0_84 = arith.constant 0 : index
      %283 = memref.load %arg8[%c6_83, %c0_84] : memref<8x16xf32, #tpu.memory_space<smem>>
      %284 = vector.broadcast %283 : f32 to vector<8x256xf32>
      %285 = arith.mulf %243, %284 : vector<8x256xf32>
      %286 = arith.addf %282, %285 : vector<8x256xf32>
      %c7_85 = arith.constant 7 : index
      %c0_86 = arith.constant 0 : index
      %287 = memref.load %arg8[%c7_85, %c0_86] : memref<8x16xf32, #tpu.memory_space<smem>>
      %288 = vector.broadcast %287 : f32 to vector<8x256xf32>
      %289 = arith.mulf %259, %288 : vector<8x256xf32>
      %290 = arith.addf %286, %289 : vector<8x256xf32>
      %c0_87 = arith.constant 0 : index
      %291 = memref.load %arg9[%c0_87] : memref<16xf32, #tpu.memory_space<smem>>
      %292 = vector.broadcast %291 : f32 to vector<8x256xf32>
      %293 = arith.addf %290, %292 : vector<8x256xf32>
      %cst_88 = arith.constant 0.000000e+00 : f32
      %294 = vector.broadcast %cst_88 : f32 to vector<8x256xf32>
      %295 = arith.maximumf %293, %294 : vector<8x256xf32>
      %296 = arith.mulf %116, %295 : vector<8x256xf32>
      %c0_89 = arith.constant 0 : index
      %297 = arith.index_cast %78 : i32 to index
      %298 = vector.load %arg5[%c0_89, %297] : memref<16x256xf32, #tpu.memory_space<vmem>>, vector<1x256xf32>
      %299 = vector.broadcast %298 : vector<1x256xf32> to vector<8x256xf32>
      %300 = arith.mulf %296, %299 : vector<8x256xf32>
      %cst_90 = arith.constant dense<0.000000e+00> : vector<8xf32>
      %301 = vector.multi_reduction <add>, %300, %cst_90 [1] : vector<8x256xf32> to vector<8xf32>
      %302 = vector.shape_cast %301 : vector<8xf32> to vector<8x1xf32>
      %cst_91 = arith.constant 0.000000e+00 : f32
      %303 = vector.shape_cast %2 : vector<1x16xi1> to vector<1x16xi1>
      %304 = vector.broadcast %303 : vector<1x16xi1> to vector<8x16xi1>
      %305 = vector.shape_cast %302 : vector<8x1xf32> to vector<8x1xf32>
      %306 = vector.broadcast %305 : vector<8x1xf32> to vector<8x16xf32>
      %307 = vector.broadcast %cst_91 : f32 to vector<8x16xf32>
      %308 = arith.select %304, %306, %307 : vector<8x16xi1>, vector<8x16xf32>
      %c0_92 = arith.constant 0 : index
      %c1_93 = arith.constant 1 : index
      %309 = memref.load %arg8[%c0_92, %c1_93] : memref<8x16xf32, #tpu.memory_space<smem>>
      %310 = vector.broadcast %309 : f32 to vector<8x256xf32>
      %311 = arith.mulf %147, %310 : vector<8x256xf32>
      %c1_94 = arith.constant 1 : index
      %c1_95 = arith.constant 1 : index
      %312 = memref.load %arg8[%c1_94, %c1_95] : memref<8x16xf32, #tpu.memory_space<smem>>
      %313 = vector.broadcast %312 : f32 to vector<8x256xf32>
      %314 = arith.mulf %163, %313 : vector<8x256xf32>
      %315 = arith.addf %311, %314 : vector<8x256xf32>
      %c2_96 = arith.constant 2 : index
      %c1_97 = arith.constant 1 : index
      %316 = memref.load %arg8[%c2_96, %c1_97] : memref<8x16xf32, #tpu.memory_space<smem>>
      %317 = vector.broadcast %316 : f32 to vector<8x256xf32>
      %318 = arith.mulf %179, %317 : vector<8x256xf32>
      %319 = arith.addf %315, %318 : vector<8x256xf32>
      %c3_98 = arith.constant 3 : index
      %c1_99 = arith.constant 1 : index
      %320 = memref.load %arg8[%c3_98, %c1_99] : memref<8x16xf32, #tpu.memory_space<smem>>
      %321 = vector.broadcast %320 : f32 to vector<8x256xf32>
      %322 = arith.mulf %195, %321 : vector<8x256xf32>
      %323 = arith.addf %319, %322 : vector<8x256xf32>
      %c4_100 = arith.constant 4 : index
      %c1_101 = arith.constant 1 : index
      %324 = memref.load %arg8[%c4_100, %c1_101] : memref<8x16xf32, #tpu.memory_space<smem>>
      %325 = vector.broadcast %324 : f32 to vector<8x256xf32>
      %326 = arith.mulf %211, %325 : vector<8x256xf32>
      %327 = arith.addf %323, %326 : vector<8x256xf32>
      %c5_102 = arith.constant 5 : index
      %c1_103 = arith.constant 1 : index
      %328 = memref.load %arg8[%c5_102, %c1_103] : memref<8x16xf32, #tpu.memory_space<smem>>
      %329 = vector.broadcast %328 : f32 to vector<8x256xf32>
      %330 = arith.mulf %227, %329 : vector<8x256xf32>
      %331 = arith.addf %327, %330 : vector<8x256xf32>
      %c6_104 = arith.constant 6 : index
      %c1_105 = arith.constant 1 : index
      %332 = memref.load %arg8[%c6_104, %c1_105] : memref<8x16xf32, #tpu.memory_space<smem>>
      %333 = vector.broadcast %332 : f32 to vector<8x256xf32>
      %334 = arith.mulf %243, %333 : vector<8x256xf32>
      %335 = arith.addf %331, %334 : vector<8x256xf32>
      %c7_106 = arith.constant 7 : index
      %c1_107 = arith.constant 1 : index
      %336 = memref.load %arg8[%c7_106, %c1_107] : memref<8x16xf32, #tpu.memory_space<smem>>
      %337 = vector.broadcast %336 : f32 to vector<8x256xf32>
      %338 = arith.mulf %259, %337 : vector<8x256xf32>
      %339 = arith.addf %335, %338 : vector<8x256xf32>
      %c1_108 = arith.constant 1 : index
      %340 = memref.load %arg9[%c1_108] : memref<16xf32, #tpu.memory_space<smem>>
      %341 = vector.broadcast %340 : f32 to vector<8x256xf32>
      %342 = arith.addf %339, %341 : vector<8x256xf32>
      %cst_109 = arith.constant 0.000000e+00 : f32
      %343 = vector.broadcast %cst_109 : f32 to vector<8x256xf32>
      %344 = arith.maximumf %342, %343 : vector<8x256xf32>
      %345 = arith.mulf %116, %344 : vector<8x256xf32>
      %c1_110 = arith.constant 1 : index
      %346 = arith.index_cast %78 : i32 to index
      %347 = vector.load %arg5[%c1_110, %346] : memref<16x256xf32, #tpu.memory_space<vmem>>, vector<1x256xf32>
      %348 = vector.broadcast %347 : vector<1x256xf32> to vector<8x256xf32>
      %349 = arith.mulf %345, %348 : vector<8x256xf32>
      %cst_111 = arith.constant dense<0.000000e+00> : vector<8xf32>
      %350 = vector.multi_reduction <add>, %349, %cst_111 [1] : vector<8x256xf32> to vector<8xf32>
      %351 = vector.shape_cast %350 : vector<8xf32> to vector<8x1xf32>
      %cst_112 = arith.constant 0.000000e+00 : f32
      %352 = vector.shape_cast %4 : vector<1x16xi1> to vector<1x16xi1>
      %353 = vector.broadcast %352 : vector<1x16xi1> to vector<8x16xi1>
      %354 = vector.shape_cast %351 : vector<8x1xf32> to vector<8x1xf32>
      %355 = vector.broadcast %354 : vector<8x1xf32> to vector<8x16xf32>
      %356 = vector.broadcast %cst_112 : f32 to vector<8x16xf32>
      %357 = arith.select %353, %355, %356 : vector<8x16xi1>, vector<8x16xf32>
      %358 = arith.addf %308, %357 : vector<8x16xf32>
      %c0_113 = arith.constant 0 : index
      %c2_114 = arith.constant 2 : index
      %359 = memref.load %arg8[%c0_113, %c2_114] : memref<8x16xf32, #tpu.memory_space<smem>>
      %360 = vector.broadcast %359 : f32 to vector<8x256xf32>
      %361 = arith.mulf %147, %360 : vector<8x256xf32>
      %c1_115 = arith.constant 1 : index
      %c2_116 = arith.constant 2 : index
      %362 = memref.load %arg8[%c1_115, %c2_116] : memref<8x16xf32, #tpu.memory_space<smem>>
      %363 = vector.broadcast %362 : f32 to vector<8x256xf32>
      %364 = arith.mulf %163, %363 : vector<8x256xf32>
      %365 = arith.addf %361, %364 : vector<8x256xf32>
      %c2_117 = arith.constant 2 : index
      %c2_118 = arith.constant 2 : index
      %366 = memref.load %arg8[%c2_117, %c2_118] : memref<8x16xf32, #tpu.memory_space<smem>>
      %367 = vector.broadcast %366 : f32 to vector<8x256xf32>
      %368 = arith.mulf %179, %367 : vector<8x256xf32>
      %369 = arith.addf %365, %368 : vector<8x256xf32>
      %c3_119 = arith.constant 3 : index
      %c2_120 = arith.constant 2 : index
      %370 = memref.load %arg8[%c3_119, %c2_120] : memref<8x16xf32, #tpu.memory_space<smem>>
      %371 = vector.broadcast %370 : f32 to vector<8x256xf32>
      %372 = arith.mulf %195, %371 : vector<8x256xf32>
      %373 = arith.addf %369, %372 : vector<8x256xf32>
      %c4_121 = arith.constant 4 : index
      %c2_122 = arith.constant 2 : index
      %374 = memref.load %arg8[%c4_121, %c2_122] : memref<8x16xf32, #tpu.memory_space<smem>>
      %375 = vector.broadcast %374 : f32 to vector<8x256xf32>
      %376 = arith.mulf %211, %375 : vector<8x256xf32>
      %377 = arith.addf %373, %376 : vector<8x256xf32>
      %c5_123 = arith.constant 5 : index
      %c2_124 = arith.constant 2 : index
      %378 = memref.load %arg8[%c5_123, %c2_124] : memref<8x16xf32, #tpu.memory_space<smem>>
      %379 = vector.broadcast %378 : f32 to vector<8x256xf32>
      %380 = arith.mulf %227, %379 : vector<8x256xf32>
      %381 = arith.addf %377, %380 : vector<8x256xf32>
      %c6_125 = arith.constant 6 : index
      %c2_126 = arith.constant 2 : index
      %382 = memref.load %arg8[%c6_125, %c2_126] : memref<8x16xf32, #tpu.memory_space<smem>>
      %383 = vector.broadcast %382 : f32 to vector<8x256xf32>
      %384 = arith.mulf %243, %383 : vector<8x256xf32>
      %385 = arith.addf %381, %384 : vector<8x256xf32>
      %c7_127 = arith.constant 7 : index
      %c2_128 = arith.constant 2 : index
      %386 = memref.load %arg8[%c7_127, %c2_128] : memref<8x16xf32, #tpu.memory_space<smem>>
      %387 = vector.broadcast %386 : f32 to vector<8x256xf32>
      %388 = arith.mulf %259, %387 : vector<8x256xf32>
      %389 = arith.addf %385, %388 : vector<8x256xf32>
      %c2_129 = arith.constant 2 : index
      %390 = memref.load %arg9[%c2_129] : memref<16xf32, #tpu.memory_space<smem>>
      %391 = vector.broadcast %390 : f32 to vector<8x256xf32>
      %392 = arith.addf %389, %391 : vector<8x256xf32>
      %cst_130 = arith.constant 0.000000e+00 : f32
      %393 = vector.broadcast %cst_130 : f32 to vector<8x256xf32>
      %394 = arith.maximumf %392, %393 : vector<8x256xf32>
      %395 = arith.mulf %116, %394 : vector<8x256xf32>
      %c2_131 = arith.constant 2 : index
      %396 = arith.index_cast %78 : i32 to index
      %397 = vector.load %arg5[%c2_131, %396] : memref<16x256xf32, #tpu.memory_space<vmem>>, vector<1x256xf32>
      %398 = vector.broadcast %397 : vector<1x256xf32> to vector<8x256xf32>
      %399 = arith.mulf %395, %398 : vector<8x256xf32>
      %cst_132 = arith.constant dense<0.000000e+00> : vector<8xf32>
      %400 = vector.multi_reduction <add>, %399, %cst_132 [1] : vector<8x256xf32> to vector<8xf32>
      %401 = vector.shape_cast %400 : vector<8xf32> to vector<8x1xf32>
      %cst_133 = arith.constant 0.000000e+00 : f32
      %402 = vector.shape_cast %6 : vector<1x16xi1> to vector<1x16xi1>
      %403 = vector.broadcast %402 : vector<1x16xi1> to vector<8x16xi1>
      %404 = vector.shape_cast %401 : vector<8x1xf32> to vector<8x1xf32>
      %405 = vector.broadcast %404 : vector<8x1xf32> to vector<8x16xf32>
      %406 = vector.broadcast %cst_133 : f32 to vector<8x16xf32>
      %407 = arith.select %403, %405, %406 : vector<8x16xi1>, vector<8x16xf32>
      %408 = arith.addf %358, %407 : vector<8x16xf32>
      %c0_134 = arith.constant 0 : index
      %c3_135 = arith.constant 3 : index
      %409 = memref.load %arg8[%c0_134, %c3_135] : memref<8x16xf32, #tpu.memory_space<smem>>
      %410 = vector.broadcast %409 : f32 to vector<8x256xf32>
      %411 = arith.mulf %147, %410 : vector<8x256xf32>
      %c1_136 = arith.constant 1 : index
      %c3_137 = arith.constant 3 : index
      %412 = memref.load %arg8[%c1_136, %c3_137] : memref<8x16xf32, #tpu.memory_space<smem>>
      %413 = vector.broadcast %412 : f32 to vector<8x256xf32>
      %414 = arith.mulf %163, %413 : vector<8x256xf32>
      %415 = arith.addf %411, %414 : vector<8x256xf32>
      %c2_138 = arith.constant 2 : index
      %c3_139 = arith.constant 3 : index
      %416 = memref.load %arg8[%c2_138, %c3_139] : memref<8x16xf32, #tpu.memory_space<smem>>
      %417 = vector.broadcast %416 : f32 to vector<8x256xf32>
      %418 = arith.mulf %179, %417 : vector<8x256xf32>
      %419 = arith.addf %415, %418 : vector<8x256xf32>
      %c3_140 = arith.constant 3 : index
      %c3_141 = arith.constant 3 : index
      %420 = memref.load %arg8[%c3_140, %c3_141] : memref<8x16xf32, #tpu.memory_space<smem>>
      %421 = vector.broadcast %420 : f32 to vector<8x256xf32>
      %422 = arith.mulf %195, %421 : vector<8x256xf32>
      %423 = arith.addf %419, %422 : vector<8x256xf32>
      %c4_142 = arith.constant 4 : index
      %c3_143 = arith.constant 3 : index
      %424 = memref.load %arg8[%c4_142, %c3_143] : memref<8x16xf32, #tpu.memory_space<smem>>
      %425 = vector.broadcast %424 : f32 to vector<8x256xf32>
      %426 = arith.mulf %211, %425 : vector<8x256xf32>
      %427 = arith.addf %423, %426 : vector<8x256xf32>
      %c5_144 = arith.constant 5 : index
      %c3_145 = arith.constant 3 : index
      %428 = memref.load %arg8[%c5_144, %c3_145] : memref<8x16xf32, #tpu.memory_space<smem>>
      %429 = vector.broadcast %428 : f32 to vector<8x256xf32>
      %430 = arith.mulf %227, %429 : vector<8x256xf32>
      %431 = arith.addf %427, %430 : vector<8x256xf32>
      %c6_146 = arith.constant 6 : index
      %c3_147 = arith.constant 3 : index
      %432 = memref.load %arg8[%c6_146, %c3_147] : memref<8x16xf32, #tpu.memory_space<smem>>
      %433 = vector.broadcast %432 : f32 to vector<8x256xf32>
      %434 = arith.mulf %243, %433 : vector<8x256xf32>
      %435 = arith.addf %431, %434 : vector<8x256xf32>
      %c7_148 = arith.constant 7 : index
      %c3_149 = arith.constant 3 : index
      %436 = memref.load %arg8[%c7_148, %c3_149] : memref<8x16xf32, #tpu.memory_space<smem>>
      %437 = vector.broadcast %436 : f32 to vector<8x256xf32>
      %438 = arith.mulf %259, %437 : vector<8x256xf32>
      %439 = arith.addf %435, %438 : vector<8x256xf32>
      %c3_150 = arith.constant 3 : index
      %440 = memref.load %arg9[%c3_150] : memref<16xf32, #tpu.memory_space<smem>>
      %441 = vector.broadcast %440 : f32 to vector<8x256xf32>
      %442 = arith.addf %439, %441 : vector<8x256xf32>
      %cst_151 = arith.constant 0.000000e+00 : f32
      %443 = vector.broadcast %cst_151 : f32 to vector<8x256xf32>
      %444 = arith.maximumf %442, %443 : vector<8x256xf32>
      %445 = arith.mulf %116, %444 : vector<8x256xf32>
      %c3_152 = arith.constant 3 : index
      %446 = arith.index_cast %78 : i32 to index
      %447 = vector.load %arg5[%c3_152, %446] : memref<16x256xf32, #tpu.memory_space<vmem>>, vector<1x256xf32>
      %448 = vector.broadcast %447 : vector<1x256xf32> to vector<8x256xf32>
      %449 = arith.mulf %445, %448 : vector<8x256xf32>
      %cst_153 = arith.constant dense<0.000000e+00> : vector<8xf32>
      %450 = vector.multi_reduction <add>, %449, %cst_153 [1] : vector<8x256xf32> to vector<8xf32>
      %451 = vector.shape_cast %450 : vector<8xf32> to vector<8x1xf32>
      %cst_154 = arith.constant 0.000000e+00 : f32
      %452 = vector.shape_cast %8 : vector<1x16xi1> to vector<1x16xi1>
      %453 = vector.broadcast %452 : vector<1x16xi1> to vector<8x16xi1>
      %454 = vector.shape_cast %451 : vector<8x1xf32> to vector<8x1xf32>
      %455 = vector.broadcast %454 : vector<8x1xf32> to vector<8x16xf32>
      %456 = vector.broadcast %cst_154 : f32 to vector<8x16xf32>
      %457 = arith.select %453, %455, %456 : vector<8x16xi1>, vector<8x16xf32>
      %458 = arith.addf %408, %457 : vector<8x16xf32>
      %c0_155 = arith.constant 0 : index
      %c4_156 = arith.constant 4 : index
      %459 = memref.load %arg8[%c0_155, %c4_156] : memref<8x16xf32, #tpu.memory_space<smem>>
      %460 = vector.broadcast %459 : f32 to vector<8x256xf32>
      %461 = arith.mulf %147, %460 : vector<8x256xf32>
      %c1_157 = arith.constant 1 : index
      %c4_158 = arith.constant 4 : index
      %462 = memref.load %arg8[%c1_157, %c4_158] : memref<8x16xf32, #tpu.memory_space<smem>>
      %463 = vector.broadcast %462 : f32 to vector<8x256xf32>
      %464 = arith.mulf %163, %463 : vector<8x256xf32>
      %465 = arith.addf %461, %464 : vector<8x256xf32>
      %c2_159 = arith.constant 2 : index
      %c4_160 = arith.constant 4 : index
      %466 = memref.load %arg8[%c2_159, %c4_160] : memref<8x16xf32, #tpu.memory_space<smem>>
      %467 = vector.broadcast %466 : f32 to vector<8x256xf32>
      %468 = arith.mulf %179, %467 : vector<8x256xf32>
      %469 = arith.addf %465, %468 : vector<8x256xf32>
      %c3_161 = arith.constant 3 : index
      %c4_162 = arith.constant 4 : index
      %470 = memref.load %arg8[%c3_161, %c4_162] : memref<8x16xf32, #tpu.memory_space<smem>>
      %471 = vector.broadcast %470 : f32 to vector<8x256xf32>
      %472 = arith.mulf %195, %471 : vector<8x256xf32>
      %473 = arith.addf %469, %472 : vector<8x256xf32>
      %c4_163 = arith.constant 4 : index
      %c4_164 = arith.constant 4 : index
      %474 = memref.load %arg8[%c4_163, %c4_164] : memref<8x16xf32, #tpu.memory_space<smem>>
      %475 = vector.broadcast %474 : f32 to vector<8x256xf32>
      %476 = arith.mulf %211, %475 : vector<8x256xf32>
      %477 = arith.addf %473, %476 : vector<8x256xf32>
      %c5_165 = arith.constant 5 : index
      %c4_166 = arith.constant 4 : index
      %478 = memref.load %arg8[%c5_165, %c4_166] : memref<8x16xf32, #tpu.memory_space<smem>>
      %479 = vector.broadcast %478 : f32 to vector<8x256xf32>
      %480 = arith.mulf %227, %479 : vector<8x256xf32>
      %481 = arith.addf %477, %480 : vector<8x256xf32>
      %c6_167 = arith.constant 6 : index
      %c4_168 = arith.constant 4 : index
      %482 = memref.load %arg8[%c6_167, %c4_168] : memref<8x16xf32, #tpu.memory_space<smem>>
      %483 = vector.broadcast %482 : f32 to vector<8x256xf32>
      %484 = arith.mulf %243, %483 : vector<8x256xf32>
      %485 = arith.addf %481, %484 : vector<8x256xf32>
      %c7_169 = arith.constant 7 : index
      %c4_170 = arith.constant 4 : index
      %486 = memref.load %arg8[%c7_169, %c4_170] : memref<8x16xf32, #tpu.memory_space<smem>>
      %487 = vector.broadcast %486 : f32 to vector<8x256xf32>
      %488 = arith.mulf %259, %487 : vector<8x256xf32>
      %489 = arith.addf %485, %488 : vector<8x256xf32>
      %c4_171 = arith.constant 4 : index
      %490 = memref.load %arg9[%c4_171] : memref<16xf32, #tpu.memory_space<smem>>
      %491 = vector.broadcast %490 : f32 to vector<8x256xf32>
      %492 = arith.addf %489, %491 : vector<8x256xf32>
      %cst_172 = arith.constant 0.000000e+00 : f32
      %493 = vector.broadcast %cst_172 : f32 to vector<8x256xf32>
      %494 = arith.maximumf %492, %493 : vector<8x256xf32>
      %495 = arith.mulf %116, %494 : vector<8x256xf32>
      %c4_173 = arith.constant 4 : index
      %496 = arith.index_cast %78 : i32 to index
      %497 = vector.load %arg5[%c4_173, %496] : memref<16x256xf32, #tpu.memory_space<vmem>>, vector<1x256xf32>
      %498 = vector.broadcast %497 : vector<1x256xf32> to vector<8x256xf32>
      %499 = arith.mulf %495, %498 : vector<8x256xf32>
      %cst_174 = arith.constant dense<0.000000e+00> : vector<8xf32>
      %500 = vector.multi_reduction <add>, %499, %cst_174 [1] : vector<8x256xf32> to vector<8xf32>
      %501 = vector.shape_cast %500 : vector<8xf32> to vector<8x1xf32>
      %cst_175 = arith.constant 0.000000e+00 : f32
      %502 = vector.shape_cast %10 : vector<1x16xi1> to vector<1x16xi1>
      %503 = vector.broadcast %502 : vector<1x16xi1> to vector<8x16xi1>
      %504 = vector.shape_cast %501 : vector<8x1xf32> to vector<8x1xf32>
      %505 = vector.broadcast %504 : vector<8x1xf32> to vector<8x16xf32>
      %506 = vector.broadcast %cst_175 : f32 to vector<8x16xf32>
      %507 = arith.select %503, %505, %506 : vector<8x16xi1>, vector<8x16xf32>
      %508 = arith.addf %458, %507 : vector<8x16xf32>
      %c0_176 = arith.constant 0 : index
      %c5_177 = arith.constant 5 : index
      %509 = memref.load %arg8[%c0_176, %c5_177] : memref<8x16xf32, #tpu.memory_space<smem>>
      %510 = vector.broadcast %509 : f32 to vector<8x256xf32>
      %511 = arith.mulf %147, %510 : vector<8x256xf32>
      %c1_178 = arith.constant 1 : index
      %c5_179 = arith.constant 5 : index
      %512 = memref.load %arg8[%c1_178, %c5_179] : memref<8x16xf32, #tpu.memory_space<smem>>
      %513 = vector.broadcast %512 : f32 to vector<8x256xf32>
      %514 = arith.mulf %163, %513 : vector<8x256xf32>
      %515 = arith.addf %511, %514 : vector<8x256xf32>
      %c2_180 = arith.constant 2 : index
      %c5_181 = arith.constant 5 : index
      %516 = memref.load %arg8[%c2_180, %c5_181] : memref<8x16xf32, #tpu.memory_space<smem>>
      %517 = vector.broadcast %516 : f32 to vector<8x256xf32>
      %518 = arith.mulf %179, %517 : vector<8x256xf32>
      %519 = arith.addf %515, %518 : vector<8x256xf32>
      %c3_182 = arith.constant 3 : index
      %c5_183 = arith.constant 5 : index
      %520 = memref.load %arg8[%c3_182, %c5_183] : memref<8x16xf32, #tpu.memory_space<smem>>
      %521 = vector.broadcast %520 : f32 to vector<8x256xf32>
      %522 = arith.mulf %195, %521 : vector<8x256xf32>
      %523 = arith.addf %519, %522 : vector<8x256xf32>
      %c4_184 = arith.constant 4 : index
      %c5_185 = arith.constant 5 : index
      %524 = memref.load %arg8[%c4_184, %c5_185] : memref<8x16xf32, #tpu.memory_space<smem>>
      %525 = vector.broadcast %524 : f32 to vector<8x256xf32>
      %526 = arith.mulf %211, %525 : vector<8x256xf32>
      %527 = arith.addf %523, %526 : vector<8x256xf32>
      %c5_186 = arith.constant 5 : index
      %c5_187 = arith.constant 5 : index
      %528 = memref.load %arg8[%c5_186, %c5_187] : memref<8x16xf32, #tpu.memory_space<smem>>
      %529 = vector.broadcast %528 : f32 to vector<8x256xf32>
      %530 = arith.mulf %227, %529 : vector<8x256xf32>
      %531 = arith.addf %527, %530 : vector<8x256xf32>
      %c6_188 = arith.constant 6 : index
      %c5_189 = arith.constant 5 : index
      %532 = memref.load %arg8[%c6_188, %c5_189] : memref<8x16xf32, #tpu.memory_space<smem>>
      %533 = vector.broadcast %532 : f32 to vector<8x256xf32>
      %534 = arith.mulf %243, %533 : vector<8x256xf32>
      %535 = arith.addf %531, %534 : vector<8x256xf32>
      %c7_190 = arith.constant 7 : index
      %c5_191 = arith.constant 5 : index
      %536 = memref.load %arg8[%c7_190, %c5_191] : memref<8x16xf32, #tpu.memory_space<smem>>
      %537 = vector.broadcast %536 : f32 to vector<8x256xf32>
      %538 = arith.mulf %259, %537 : vector<8x256xf32>
      %539 = arith.addf %535, %538 : vector<8x256xf32>
      %c5_192 = arith.constant 5 : index
      %540 = memref.load %arg9[%c5_192] : memref<16xf32, #tpu.memory_space<smem>>
      %541 = vector.broadcast %540 : f32 to vector<8x256xf32>
      %542 = arith.addf %539, %541 : vector<8x256xf32>
      %cst_193 = arith.constant 0.000000e+00 : f32
      %543 = vector.broadcast %cst_193 : f32 to vector<8x256xf32>
      %544 = arith.maximumf %542, %543 : vector<8x256xf32>
      %545 = arith.mulf %116, %544 : vector<8x256xf32>
      %c5_194 = arith.constant 5 : index
      %546 = arith.index_cast %78 : i32 to index
      %547 = vector.load %arg5[%c5_194, %546] : memref<16x256xf32, #tpu.memory_space<vmem>>, vector<1x256xf32>
      %548 = vector.broadcast %547 : vector<1x256xf32> to vector<8x256xf32>
      %549 = arith.mulf %545, %548 : vector<8x256xf32>
      %cst_195 = arith.constant dense<0.000000e+00> : vector<8xf32>
      %550 = vector.multi_reduction <add>, %549, %cst_195 [1] : vector<8x256xf32> to vector<8xf32>
      %551 = vector.shape_cast %550 : vector<8xf32> to vector<8x1xf32>
      %cst_196 = arith.constant 0.000000e+00 : f32
      %552 = vector.shape_cast %12 : vector<1x16xi1> to vector<1x16xi1>
      %553 = vector.broadcast %552 : vector<1x16xi1> to vector<8x16xi1>
      %554 = vector.shape_cast %551 : vector<8x1xf32> to vector<8x1xf32>
      %555 = vector.broadcast %554 : vector<8x1xf32> to vector<8x16xf32>
      %556 = vector.broadcast %cst_196 : f32 to vector<8x16xf32>
      %557 = arith.select %553, %555, %556 : vector<8x16xi1>, vector<8x16xf32>
      %558 = arith.addf %508, %557 : vector<8x16xf32>
      %c0_197 = arith.constant 0 : index
      %c6_198 = arith.constant 6 : index
      %559 = memref.load %arg8[%c0_197, %c6_198] : memref<8x16xf32, #tpu.memory_space<smem>>
      %560 = vector.broadcast %559 : f32 to vector<8x256xf32>
      %561 = arith.mulf %147, %560 : vector<8x256xf32>
      %c1_199 = arith.constant 1 : index
      %c6_200 = arith.constant 6 : index
      %562 = memref.load %arg8[%c1_199, %c6_200] : memref<8x16xf32, #tpu.memory_space<smem>>
      %563 = vector.broadcast %562 : f32 to vector<8x256xf32>
      %564 = arith.mulf %163, %563 : vector<8x256xf32>
      %565 = arith.addf %561, %564 : vector<8x256xf32>
      %c2_201 = arith.constant 2 : index
      %c6_202 = arith.constant 6 : index
      %566 = memref.load %arg8[%c2_201, %c6_202] : memref<8x16xf32, #tpu.memory_space<smem>>
      %567 = vector.broadcast %566 : f32 to vector<8x256xf32>
      %568 = arith.mulf %179, %567 : vector<8x256xf32>
      %569 = arith.addf %565, %568 : vector<8x256xf32>
      %c3_203 = arith.constant 3 : index
      %c6_204 = arith.constant 6 : index
      %570 = memref.load %arg8[%c3_203, %c6_204] : memref<8x16xf32, #tpu.memory_space<smem>>
      %571 = vector.broadcast %570 : f32 to vector<8x256xf32>
      %572 = arith.mulf %195, %571 : vector<8x256xf32>
      %573 = arith.addf %569, %572 : vector<8x256xf32>
      %c4_205 = arith.constant 4 : index
      %c6_206 = arith.constant 6 : index
      %574 = memref.load %arg8[%c4_205, %c6_206] : memref<8x16xf32, #tpu.memory_space<smem>>
      %575 = vector.broadcast %574 : f32 to vector<8x256xf32>
      %576 = arith.mulf %211, %575 : vector<8x256xf32>
      %577 = arith.addf %573, %576 : vector<8x256xf32>
      %c5_207 = arith.constant 5 : index
      %c6_208 = arith.constant 6 : index
      %578 = memref.load %arg8[%c5_207, %c6_208] : memref<8x16xf32, #tpu.memory_space<smem>>
      %579 = vector.broadcast %578 : f32 to vector<8x256xf32>
      %580 = arith.mulf %227, %579 : vector<8x256xf32>
      %581 = arith.addf %577, %580 : vector<8x256xf32>
      %c6_209 = arith.constant 6 : index
      %c6_210 = arith.constant 6 : index
      %582 = memref.load %arg8[%c6_209, %c6_210] : memref<8x16xf32, #tpu.memory_space<smem>>
      %583 = vector.broadcast %582 : f32 to vector<8x256xf32>
      %584 = arith.mulf %243, %583 : vector<8x256xf32>
      %585 = arith.addf %581, %584 : vector<8x256xf32>
      %c7_211 = arith.constant 7 : index
      %c6_212 = arith.constant 6 : index
      %586 = memref.load %arg8[%c7_211, %c6_212] : memref<8x16xf32, #tpu.memory_space<smem>>
      %587 = vector.broadcast %586 : f32 to vector<8x256xf32>
      %588 = arith.mulf %259, %587 : vector<8x256xf32>
      %589 = arith.addf %585, %588 : vector<8x256xf32>
      %c6_213 = arith.constant 6 : index
      %590 = memref.load %arg9[%c6_213] : memref<16xf32, #tpu.memory_space<smem>>
      %591 = vector.broadcast %590 : f32 to vector<8x256xf32>
      %592 = arith.addf %589, %591 : vector<8x256xf32>
      %cst_214 = arith.constant 0.000000e+00 : f32
      %593 = vector.broadcast %cst_214 : f32 to vector<8x256xf32>
      %594 = arith.maximumf %592, %593 : vector<8x256xf32>
      %595 = arith.mulf %116, %594 : vector<8x256xf32>
      %c6_215 = arith.constant 6 : index
      %596 = arith.index_cast %78 : i32 to index
      %597 = vector.load %arg5[%c6_215, %596] : memref<16x256xf32, #tpu.memory_space<vmem>>, vector<1x256xf32>
      %598 = vector.broadcast %597 : vector<1x256xf32> to vector<8x256xf32>
      %599 = arith.mulf %595, %598 : vector<8x256xf32>
      %cst_216 = arith.constant dense<0.000000e+00> : vector<8xf32>
      %600 = vector.multi_reduction <add>, %599, %cst_216 [1] : vector<8x256xf32> to vector<8xf32>
      %601 = vector.shape_cast %600 : vector<8xf32> to vector<8x1xf32>
      %cst_217 = arith.constant 0.000000e+00 : f32
      %602 = vector.shape_cast %14 : vector<1x16xi1> to vector<1x16xi1>
      %603 = vector.broadcast %602 : vector<1x16xi1> to vector<8x16xi1>
      %604 = vector.shape_cast %601 : vector<8x1xf32> to vector<8x1xf32>
      %605 = vector.broadcast %604 : vector<8x1xf32> to vector<8x16xf32>
      %606 = vector.broadcast %cst_217 : f32 to vector<8x16xf32>
      %607 = arith.select %603, %605, %606 : vector<8x16xi1>, vector<8x16xf32>
      %608 = arith.addf %558, %607 : vector<8x16xf32>
      %c0_218 = arith.constant 0 : index
      %c7_219 = arith.constant 7 : index
      %609 = memref.load %arg8[%c0_218, %c7_219] : memref<8x16xf32, #tpu.memory_space<smem>>
      %610 = vector.broadcast %609 : f32 to vector<8x256xf32>
      %611 = arith.mulf %147, %610 : vector<8x256xf32>
      %c1_220 = arith.constant 1 : index
      %c7_221 = arith.constant 7 : index
      %612 = memref.load %arg8[%c1_220, %c7_221] : memref<8x16xf32, #tpu.memory_space<smem>>
      %613 = vector.broadcast %612 : f32 to vector<8x256xf32>
      %614 = arith.mulf %163, %613 : vector<8x256xf32>
      %615 = arith.addf %611, %614 : vector<8x256xf32>
      %c2_222 = arith.constant 2 : index
      %c7_223 = arith.constant 7 : index
      %616 = memref.load %arg8[%c2_222, %c7_223] : memref<8x16xf32, #tpu.memory_space<smem>>
      %617 = vector.broadcast %616 : f32 to vector<8x256xf32>
      %618 = arith.mulf %179, %617 : vector<8x256xf32>
      %619 = arith.addf %615, %618 : vector<8x256xf32>
      %c3_224 = arith.constant 3 : index
      %c7_225 = arith.constant 7 : index
      %620 = memref.load %arg8[%c3_224, %c7_225] : memref<8x16xf32, #tpu.memory_space<smem>>
      %621 = vector.broadcast %620 : f32 to vector<8x256xf32>
      %622 = arith.mulf %195, %621 : vector<8x256xf32>
      %623 = arith.addf %619, %622 : vector<8x256xf32>
      %c4_226 = arith.constant 4 : index
      %c7_227 = arith.constant 7 : index
      %624 = memref.load %arg8[%c4_226, %c7_227] : memref<8x16xf32, #tpu.memory_space<smem>>
      %625 = vector.broadcast %624 : f32 to vector<8x256xf32>
      %626 = arith.mulf %211, %625 : vector<8x256xf32>
      %627 = arith.addf %623, %626 : vector<8x256xf32>
      %c5_228 = arith.constant 5 : index
      %c7_229 = arith.constant 7 : index
      %628 = memref.load %arg8[%c5_228, %c7_229] : memref<8x16xf32, #tpu.memory_space<smem>>
      %629 = vector.broadcast %628 : f32 to vector<8x256xf32>
      %630 = arith.mulf %227, %629 : vector<8x256xf32>
      %631 = arith.addf %627, %630 : vector<8x256xf32>
      %c6_230 = arith.constant 6 : index
      %c7_231 = arith.constant 7 : index
      %632 = memref.load %arg8[%c6_230, %c7_231] : memref<8x16xf32, #tpu.memory_space<smem>>
      %633 = vector.broadcast %632 : f32 to vector<8x256xf32>
      %634 = arith.mulf %243, %633 : vector<8x256xf32>
      %635 = arith.addf %631, %634 : vector<8x256xf32>
      %c7_232 = arith.constant 7 : index
      %c7_233 = arith.constant 7 : index
      %636 = memref.load %arg8[%c7_232, %c7_233] : memref<8x16xf32, #tpu.memory_space<smem>>
      %637 = vector.broadcast %636 : f32 to vector<8x256xf32>
      %638 = arith.mulf %259, %637 : vector<8x256xf32>
      %639 = arith.addf %635, %638 : vector<8x256xf32>
      %c7_234 = arith.constant 7 : index
      %640 = memref.load %arg9[%c7_234] : memref<16xf32, #tpu.memory_space<smem>>
      %641 = vector.broadcast %640 : f32 to vector<8x256xf32>
      %642 = arith.addf %639, %641 : vector<8x256xf32>
      %cst_235 = arith.constant 0.000000e+00 : f32
      %643 = vector.broadcast %cst_235 : f32 to vector<8x256xf32>
      %644 = arith.maximumf %642, %643 : vector<8x256xf32>
      %645 = arith.mulf %116, %644 : vector<8x256xf32>
      %c7_236 = arith.constant 7 : index
      %646 = arith.index_cast %78 : i32 to index
      %647 = vector.load %arg5[%c7_236, %646] : memref<16x256xf32, #tpu.memory_space<vmem>>, vector<1x256xf32>
      %648 = vector.broadcast %647 : vector<1x256xf32> to vector<8x256xf32>
      %649 = arith.mulf %645, %648 : vector<8x256xf32>
      %cst_237 = arith.constant dense<0.000000e+00> : vector<8xf32>
      %650 = vector.multi_reduction <add>, %649, %cst_237 [1] : vector<8x256xf32> to vector<8xf32>
      %651 = vector.shape_cast %650 : vector<8xf32> to vector<8x1xf32>
      %cst_238 = arith.constant 0.000000e+00 : f32
      %652 = vector.shape_cast %16 : vector<1x16xi1> to vector<1x16xi1>
      %653 = vector.broadcast %652 : vector<1x16xi1> to vector<8x16xi1>
      %654 = vector.shape_cast %651 : vector<8x1xf32> to vector<8x1xf32>
      %655 = vector.broadcast %654 : vector<8x1xf32> to vector<8x16xf32>
      %656 = vector.broadcast %cst_238 : f32 to vector<8x16xf32>
      %657 = arith.select %653, %655, %656 : vector<8x16xi1>, vector<8x16xf32>
      %658 = arith.addf %608, %657 : vector<8x16xf32>
      %c0_239 = arith.constant 0 : index
      %c8 = arith.constant 8 : index
      %659 = memref.load %arg8[%c0_239, %c8] : memref<8x16xf32, #tpu.memory_space<smem>>
      %660 = vector.broadcast %659 : f32 to vector<8x256xf32>
      %661 = arith.mulf %147, %660 : vector<8x256xf32>
      %c1_240 = arith.constant 1 : index
      %c8_241 = arith.constant 8 : index
      %662 = memref.load %arg8[%c1_240, %c8_241] : memref<8x16xf32, #tpu.memory_space<smem>>
      %663 = vector.broadcast %662 : f32 to vector<8x256xf32>
      %664 = arith.mulf %163, %663 : vector<8x256xf32>
      %665 = arith.addf %661, %664 : vector<8x256xf32>
      %c2_242 = arith.constant 2 : index
      %c8_243 = arith.constant 8 : index
      %666 = memref.load %arg8[%c2_242, %c8_243] : memref<8x16xf32, #tpu.memory_space<smem>>
      %667 = vector.broadcast %666 : f32 to vector<8x256xf32>
      %668 = arith.mulf %179, %667 : vector<8x256xf32>
      %669 = arith.addf %665, %668 : vector<8x256xf32>
      %c3_244 = arith.constant 3 : index
      %c8_245 = arith.constant 8 : index
      %670 = memref.load %arg8[%c3_244, %c8_245] : memref<8x16xf32, #tpu.memory_space<smem>>
      %671 = vector.broadcast %670 : f32 to vector<8x256xf32>
      %672 = arith.mulf %195, %671 : vector<8x256xf32>
      %673 = arith.addf %669, %672 : vector<8x256xf32>
      %c4_246 = arith.constant 4 : index
      %c8_247 = arith.constant 8 : index
      %674 = memref.load %arg8[%c4_246, %c8_247] : memref<8x16xf32, #tpu.memory_space<smem>>
      %675 = vector.broadcast %674 : f32 to vector<8x256xf32>
      %676 = arith.mulf %211, %675 : vector<8x256xf32>
      %677 = arith.addf %673, %676 : vector<8x256xf32>
      %c5_248 = arith.constant 5 : index
      %c8_249 = arith.constant 8 : index
      %678 = memref.load %arg8[%c5_248, %c8_249] : memref<8x16xf32, #tpu.memory_space<smem>>
      %679 = vector.broadcast %678 : f32 to vector<8x256xf32>
      %680 = arith.mulf %227, %679 : vector<8x256xf32>
      %681 = arith.addf %677, %680 : vector<8x256xf32>
      %c6_250 = arith.constant 6 : index
      %c8_251 = arith.constant 8 : index
      %682 = memref.load %arg8[%c6_250, %c8_251] : memref<8x16xf32, #tpu.memory_space<smem>>
      %683 = vector.broadcast %682 : f32 to vector<8x256xf32>
      %684 = arith.mulf %243, %683 : vector<8x256xf32>
      %685 = arith.addf %681, %684 : vector<8x256xf32>
      %c7_252 = arith.constant 7 : index
      %c8_253 = arith.constant 8 : index
      %686 = memref.load %arg8[%c7_252, %c8_253] : memref<8x16xf32, #tpu.memory_space<smem>>
      %687 = vector.broadcast %686 : f32 to vector<8x256xf32>
      %688 = arith.mulf %259, %687 : vector<8x256xf32>
      %689 = arith.addf %685, %688 : vector<8x256xf32>
      %c8_254 = arith.constant 8 : index
      %690 = memref.load %arg9[%c8_254] : memref<16xf32, #tpu.memory_space<smem>>
      %691 = vector.broadcast %690 : f32 to vector<8x256xf32>
      %692 = arith.addf %689, %691 : vector<8x256xf32>
      %cst_255 = arith.constant 0.000000e+00 : f32
      %693 = vector.broadcast %cst_255 : f32 to vector<8x256xf32>
      %694 = arith.maximumf %692, %693 : vector<8x256xf32>
      %695 = arith.mulf %116, %694 : vector<8x256xf32>
      %c8_256 = arith.constant 8 : index
      %696 = arith.index_cast %78 : i32 to index
      %697 = vector.load %arg5[%c8_256, %696] : memref<16x256xf32, #tpu.memory_space<vmem>>, vector<1x256xf32>
      %698 = vector.broadcast %697 : vector<1x256xf32> to vector<8x256xf32>
      %699 = arith.mulf %695, %698 : vector<8x256xf32>
      %cst_257 = arith.constant dense<0.000000e+00> : vector<8xf32>
      %700 = vector.multi_reduction <add>, %699, %cst_257 [1] : vector<8x256xf32> to vector<8xf32>
      %701 = vector.shape_cast %700 : vector<8xf32> to vector<8x1xf32>
      %cst_258 = arith.constant 0.000000e+00 : f32
      %702 = vector.shape_cast %18 : vector<1x16xi1> to vector<1x16xi1>
      %703 = vector.broadcast %702 : vector<1x16xi1> to vector<8x16xi1>
      %704 = vector.shape_cast %701 : vector<8x1xf32> to vector<8x1xf32>
      %705 = vector.broadcast %704 : vector<8x1xf32> to vector<8x16xf32>
      %706 = vector.broadcast %cst_258 : f32 to vector<8x16xf32>
      %707 = arith.select %703, %705, %706 : vector<8x16xi1>, vector<8x16xf32>
      %708 = arith.addf %658, %707 : vector<8x16xf32>
      %c0_259 = arith.constant 0 : index
      %c9 = arith.constant 9 : index
      %709 = memref.load %arg8[%c0_259, %c9] : memref<8x16xf32, #tpu.memory_space<smem>>
      %710 = vector.broadcast %709 : f32 to vector<8x256xf32>
      %711 = arith.mulf %147, %710 : vector<8x256xf32>
      %c1_260 = arith.constant 1 : index
      %c9_261 = arith.constant 9 : index
      %712 = memref.load %arg8[%c1_260, %c9_261] : memref<8x16xf32, #tpu.memory_space<smem>>
      %713 = vector.broadcast %712 : f32 to vector<8x256xf32>
      %714 = arith.mulf %163, %713 : vector<8x256xf32>
      %715 = arith.addf %711, %714 : vector<8x256xf32>
      %c2_262 = arith.constant 2 : index
      %c9_263 = arith.constant 9 : index
      %716 = memref.load %arg8[%c2_262, %c9_263] : memref<8x16xf32, #tpu.memory_space<smem>>
      %717 = vector.broadcast %716 : f32 to vector<8x256xf32>
      %718 = arith.mulf %179, %717 : vector<8x256xf32>
      %719 = arith.addf %715, %718 : vector<8x256xf32>
      %c3_264 = arith.constant 3 : index
      %c9_265 = arith.constant 9 : index
      %720 = memref.load %arg8[%c3_264, %c9_265] : memref<8x16xf32, #tpu.memory_space<smem>>
      %721 = vector.broadcast %720 : f32 to vector<8x256xf32>
      %722 = arith.mulf %195, %721 : vector<8x256xf32>
      %723 = arith.addf %719, %722 : vector<8x256xf32>
      %c4_266 = arith.constant 4 : index
      %c9_267 = arith.constant 9 : index
      %724 = memref.load %arg8[%c4_266, %c9_267] : memref<8x16xf32, #tpu.memory_space<smem>>
      %725 = vector.broadcast %724 : f32 to vector<8x256xf32>
      %726 = arith.mulf %211, %725 : vector<8x256xf32>
      %727 = arith.addf %723, %726 : vector<8x256xf32>
      %c5_268 = arith.constant 5 : index
      %c9_269 = arith.constant 9 : index
      %728 = memref.load %arg8[%c5_268, %c9_269] : memref<8x16xf32, #tpu.memory_space<smem>>
      %729 = vector.broadcast %728 : f32 to vector<8x256xf32>
      %730 = arith.mulf %227, %729 : vector<8x256xf32>
      %731 = arith.addf %727, %730 : vector<8x256xf32>
      %c6_270 = arith.constant 6 : index
      %c9_271 = arith.constant 9 : index
      %732 = memref.load %arg8[%c6_270, %c9_271] : memref<8x16xf32, #tpu.memory_space<smem>>
      %733 = vector.broadcast %732 : f32 to vector<8x256xf32>
      %734 = arith.mulf %243, %733 : vector<8x256xf32>
      %735 = arith.addf %731, %734 : vector<8x256xf32>
      %c7_272 = arith.constant 7 : index
      %c9_273 = arith.constant 9 : index
      %736 = memref.load %arg8[%c7_272, %c9_273] : memref<8x16xf32, #tpu.memory_space<smem>>
      %737 = vector.broadcast %736 : f32 to vector<8x256xf32>
      %738 = arith.mulf %259, %737 : vector<8x256xf32>
      %739 = arith.addf %735, %738 : vector<8x256xf32>
      %c9_274 = arith.constant 9 : index
      %740 = memref.load %arg9[%c9_274] : memref<16xf32, #tpu.memory_space<smem>>
      %741 = vector.broadcast %740 : f32 to vector<8x256xf32>
      %742 = arith.addf %739, %741 : vector<8x256xf32>
      %cst_275 = arith.constant 0.000000e+00 : f32
      %743 = vector.broadcast %cst_275 : f32 to vector<8x256xf32>
      %744 = arith.maximumf %742, %743 : vector<8x256xf32>
      %745 = arith.mulf %116, %744 : vector<8x256xf32>
      %c9_276 = arith.constant 9 : index
      %746 = arith.index_cast %78 : i32 to index
      %747 = vector.load %arg5[%c9_276, %746] : memref<16x256xf32, #tpu.memory_space<vmem>>, vector<1x256xf32>
      %748 = vector.broadcast %747 : vector<1x256xf32> to vector<8x256xf32>
      %749 = arith.mulf %745, %748 : vector<8x256xf32>
      %cst_277 = arith.constant dense<0.000000e+00> : vector<8xf32>
      %750 = vector.multi_reduction <add>, %749, %cst_277 [1] : vector<8x256xf32> to vector<8xf32>
      %751 = vector.shape_cast %750 : vector<8xf32> to vector<8x1xf32>
      %cst_278 = arith.constant 0.000000e+00 : f32
      %752 = vector.shape_cast %20 : vector<1x16xi1> to vector<1x16xi1>
      %753 = vector.broadcast %752 : vector<1x16xi1> to vector<8x16xi1>
      %754 = vector.shape_cast %751 : vector<8x1xf32> to vector<8x1xf32>
      %755 = vector.broadcast %754 : vector<8x1xf32> to vector<8x16xf32>
      %756 = vector.broadcast %cst_278 : f32 to vector<8x16xf32>
      %757 = arith.select %753, %755, %756 : vector<8x16xi1>, vector<8x16xf32>
      %758 = arith.addf %708, %757 : vector<8x16xf32>
      %c0_279 = arith.constant 0 : index
      %c10 = arith.constant 10 : index
      %759 = memref.load %arg8[%c0_279, %c10] : memref<8x16xf32, #tpu.memory_space<smem>>
      %760 = vector.broadcast %759 : f32 to vector<8x256xf32>
      %761 = arith.mulf %147, %760 : vector<8x256xf32>
      %c1_280 = arith.constant 1 : index
      %c10_281 = arith.constant 10 : index
      %762 = memref.load %arg8[%c1_280, %c10_281] : memref<8x16xf32, #tpu.memory_space<smem>>
      %763 = vector.broadcast %762 : f32 to vector<8x256xf32>
      %764 = arith.mulf %163, %763 : vector<8x256xf32>
      %765 = arith.addf %761, %764 : vector<8x256xf32>
      %c2_282 = arith.constant 2 : index
      %c10_283 = arith.constant 10 : index
      %766 = memref.load %arg8[%c2_282, %c10_283] : memref<8x16xf32, #tpu.memory_space<smem>>
      %767 = vector.broadcast %766 : f32 to vector<8x256xf32>
      %768 = arith.mulf %179, %767 : vector<8x256xf32>
      %769 = arith.addf %765, %768 : vector<8x256xf32>
      %c3_284 = arith.constant 3 : index
      %c10_285 = arith.constant 10 : index
      %770 = memref.load %arg8[%c3_284, %c10_285] : memref<8x16xf32, #tpu.memory_space<smem>>
      %771 = vector.broadcast %770 : f32 to vector<8x256xf32>
      %772 = arith.mulf %195, %771 : vector<8x256xf32>
      %773 = arith.addf %769, %772 : vector<8x256xf32>
      %c4_286 = arith.constant 4 : index
      %c10_287 = arith.constant 10 : index
      %774 = memref.load %arg8[%c4_286, %c10_287] : memref<8x16xf32, #tpu.memory_space<smem>>
      %775 = vector.broadcast %774 : f32 to vector<8x256xf32>
      %776 = arith.mulf %211, %775 : vector<8x256xf32>
      %777 = arith.addf %773, %776 : vector<8x256xf32>
      %c5_288 = arith.constant 5 : index
      %c10_289 = arith.constant 10 : index
      %778 = memref.load %arg8[%c5_288, %c10_289] : memref<8x16xf32, #tpu.memory_space<smem>>
      %779 = vector.broadcast %778 : f32 to vector<8x256xf32>
      %780 = arith.mulf %227, %779 : vector<8x256xf32>
      %781 = arith.addf %777, %780 : vector<8x256xf32>
      %c6_290 = arith.constant 6 : index
      %c10_291 = arith.constant 10 : index
      %782 = memref.load %arg8[%c6_290, %c10_291] : memref<8x16xf32, #tpu.memory_space<smem>>
      %783 = vector.broadcast %782 : f32 to vector<8x256xf32>
      %784 = arith.mulf %243, %783 : vector<8x256xf32>
      %785 = arith.addf %781, %784 : vector<8x256xf32>
      %c7_292 = arith.constant 7 : index
      %c10_293 = arith.constant 10 : index
      %786 = memref.load %arg8[%c7_292, %c10_293] : memref<8x16xf32, #tpu.memory_space<smem>>
      %787 = vector.broadcast %786 : f32 to vector<8x256xf32>
      %788 = arith.mulf %259, %787 : vector<8x256xf32>
      %789 = arith.addf %785, %788 : vector<8x256xf32>
      %c10_294 = arith.constant 10 : index
      %790 = memref.load %arg9[%c10_294] : memref<16xf32, #tpu.memory_space<smem>>
      %791 = vector.broadcast %790 : f32 to vector<8x256xf32>
      %792 = arith.addf %789, %791 : vector<8x256xf32>
      %cst_295 = arith.constant 0.000000e+00 : f32
      %793 = vector.broadcast %cst_295 : f32 to vector<8x256xf32>
      %794 = arith.maximumf %792, %793 : vector<8x256xf32>
      %795 = arith.mulf %116, %794 : vector<8x256xf32>
      %c10_296 = arith.constant 10 : index
      %796 = arith.index_cast %78 : i32 to index
      %797 = vector.load %arg5[%c10_296, %796] : memref<16x256xf32, #tpu.memory_space<vmem>>, vector<1x256xf32>
      %798 = vector.broadcast %797 : vector<1x256xf32> to vector<8x256xf32>
      %799 = arith.mulf %795, %798 : vector<8x256xf32>
      %cst_297 = arith.constant dense<0.000000e+00> : vector<8xf32>
      %800 = vector.multi_reduction <add>, %799, %cst_297 [1] : vector<8x256xf32> to vector<8xf32>
      %801 = vector.shape_cast %800 : vector<8xf32> to vector<8x1xf32>
      %cst_298 = arith.constant 0.000000e+00 : f32
      %802 = vector.shape_cast %22 : vector<1x16xi1> to vector<1x16xi1>
      %803 = vector.broadcast %802 : vector<1x16xi1> to vector<8x16xi1>
      %804 = vector.shape_cast %801 : vector<8x1xf32> to vector<8x1xf32>
      %805 = vector.broadcast %804 : vector<8x1xf32> to vector<8x16xf32>
      %806 = vector.broadcast %cst_298 : f32 to vector<8x16xf32>
      %807 = arith.select %803, %805, %806 : vector<8x16xi1>, vector<8x16xf32>
      %808 = arith.addf %758, %807 : vector<8x16xf32>
      %c0_299 = arith.constant 0 : index
      %c11 = arith.constant 11 : index
      %809 = memref.load %arg8[%c0_299, %c11] : memref<8x16xf32, #tpu.memory_space<smem>>
      %810 = vector.broadcast %809 : f32 to vector<8x256xf32>
      %811 = arith.mulf %147, %810 : vector<8x256xf32>
      %c1_300 = arith.constant 1 : index
      %c11_301 = arith.constant 11 : index
      %812 = memref.load %arg8[%c1_300, %c11_301] : memref<8x16xf32, #tpu.memory_space<smem>>
      %813 = vector.broadcast %812 : f32 to vector<8x256xf32>
      %814 = arith.mulf %163, %813 : vector<8x256xf32>
      %815 = arith.addf %811, %814 : vector<8x256xf32>
      %c2_302 = arith.constant 2 : index
      %c11_303 = arith.constant 11 : index
      %816 = memref.load %arg8[%c2_302, %c11_303] : memref<8x16xf32, #tpu.memory_space<smem>>
      %817 = vector.broadcast %816 : f32 to vector<8x256xf32>
      %818 = arith.mulf %179, %817 : vector<8x256xf32>
      %819 = arith.addf %815, %818 : vector<8x256xf32>
      %c3_304 = arith.constant 3 : index
      %c11_305 = arith.constant 11 : index
      %820 = memref.load %arg8[%c3_304, %c11_305] : memref<8x16xf32, #tpu.memory_space<smem>>
      %821 = vector.broadcast %820 : f32 to vector<8x256xf32>
      %822 = arith.mulf %195, %821 : vector<8x256xf32>
      %823 = arith.addf %819, %822 : vector<8x256xf32>
      %c4_306 = arith.constant 4 : index
      %c11_307 = arith.constant 11 : index
      %824 = memref.load %arg8[%c4_306, %c11_307] : memref<8x16xf32, #tpu.memory_space<smem>>
      %825 = vector.broadcast %824 : f32 to vector<8x256xf32>
      %826 = arith.mulf %211, %825 : vector<8x256xf32>
      %827 = arith.addf %823, %826 : vector<8x256xf32>
      %c5_308 = arith.constant 5 : index
      %c11_309 = arith.constant 11 : index
      %828 = memref.load %arg8[%c5_308, %c11_309] : memref<8x16xf32, #tpu.memory_space<smem>>
      %829 = vector.broadcast %828 : f32 to vector<8x256xf32>
      %830 = arith.mulf %227, %829 : vector<8x256xf32>
      %831 = arith.addf %827, %830 : vector<8x256xf32>
      %c6_310 = arith.constant 6 : index
      %c11_311 = arith.constant 11 : index
      %832 = memref.load %arg8[%c6_310, %c11_311] : memref<8x16xf32, #tpu.memory_space<smem>>
      %833 = vector.broadcast %832 : f32 to vector<8x256xf32>
      %834 = arith.mulf %243, %833 : vector<8x256xf32>
      %835 = arith.addf %831, %834 : vector<8x256xf32>
      %c7_312 = arith.constant 7 : index
      %c11_313 = arith.constant 11 : index
      %836 = memref.load %arg8[%c7_312, %c11_313] : memref<8x16xf32, #tpu.memory_space<smem>>
      %837 = vector.broadcast %836 : f32 to vector<8x256xf32>
      %838 = arith.mulf %259, %837 : vector<8x256xf32>
      %839 = arith.addf %835, %838 : vector<8x256xf32>
      %c11_314 = arith.constant 11 : index
      %840 = memref.load %arg9[%c11_314] : memref<16xf32, #tpu.memory_space<smem>>
      %841 = vector.broadcast %840 : f32 to vector<8x256xf32>
      %842 = arith.addf %839, %841 : vector<8x256xf32>
      %cst_315 = arith.constant 0.000000e+00 : f32
      %843 = vector.broadcast %cst_315 : f32 to vector<8x256xf32>
      %844 = arith.maximumf %842, %843 : vector<8x256xf32>
      %845 = arith.mulf %116, %844 : vector<8x256xf32>
      %c11_316 = arith.constant 11 : index
      %846 = arith.index_cast %78 : i32 to index
      %847 = vector.load %arg5[%c11_316, %846] : memref<16x256xf32, #tpu.memory_space<vmem>>, vector<1x256xf32>
      %848 = vector.broadcast %847 : vector<1x256xf32> to vector<8x256xf32>
      %849 = arith.mulf %845, %848 : vector<8x256xf32>
      %cst_317 = arith.constant dense<0.000000e+00> : vector<8xf32>
      %850 = vector.multi_reduction <add>, %849, %cst_317 [1] : vector<8x256xf32> to vector<8xf32>
      %851 = vector.shape_cast %850 : vector<8xf32> to vector<8x1xf32>
      %cst_318 = arith.constant 0.000000e+00 : f32
      %852 = vector.shape_cast %24 : vector<1x16xi1> to vector<1x16xi1>
      %853 = vector.broadcast %852 : vector<1x16xi1> to vector<8x16xi1>
      %854 = vector.shape_cast %851 : vector<8x1xf32> to vector<8x1xf32>
      %855 = vector.broadcast %854 : vector<8x1xf32> to vector<8x16xf32>
      %856 = vector.broadcast %cst_318 : f32 to vector<8x16xf32>
      %857 = arith.select %853, %855, %856 : vector<8x16xi1>, vector<8x16xf32>
      %858 = arith.addf %808, %857 : vector<8x16xf32>
      %c0_319 = arith.constant 0 : index
      %c12 = arith.constant 12 : index
      %859 = memref.load %arg8[%c0_319, %c12] : memref<8x16xf32, #tpu.memory_space<smem>>
      %860 = vector.broadcast %859 : f32 to vector<8x256xf32>
      %861 = arith.mulf %147, %860 : vector<8x256xf32>
      %c1_320 = arith.constant 1 : index
      %c12_321 = arith.constant 12 : index
      %862 = memref.load %arg8[%c1_320, %c12_321] : memref<8x16xf32, #tpu.memory_space<smem>>
      %863 = vector.broadcast %862 : f32 to vector<8x256xf32>
      %864 = arith.mulf %163, %863 : vector<8x256xf32>
      %865 = arith.addf %861, %864 : vector<8x256xf32>
      %c2_322 = arith.constant 2 : index
      %c12_323 = arith.constant 12 : index
      %866 = memref.load %arg8[%c2_322, %c12_323] : memref<8x16xf32, #tpu.memory_space<smem>>
      %867 = vector.broadcast %866 : f32 to vector<8x256xf32>
      %868 = arith.mulf %179, %867 : vector<8x256xf32>
      %869 = arith.addf %865, %868 : vector<8x256xf32>
      %c3_324 = arith.constant 3 : index
      %c12_325 = arith.constant 12 : index
      %870 = memref.load %arg8[%c3_324, %c12_325] : memref<8x16xf32, #tpu.memory_space<smem>>
      %871 = vector.broadcast %870 : f32 to vector<8x256xf32>
      %872 = arith.mulf %195, %871 : vector<8x256xf32>
      %873 = arith.addf %869, %872 : vector<8x256xf32>
      %c4_326 = arith.constant 4 : index
      %c12_327 = arith.constant 12 : index
      %874 = memref.load %arg8[%c4_326, %c12_327] : memref<8x16xf32, #tpu.memory_space<smem>>
      %875 = vector.broadcast %874 : f32 to vector<8x256xf32>
      %876 = arith.mulf %211, %875 : vector<8x256xf32>
      %877 = arith.addf %873, %876 : vector<8x256xf32>
      %c5_328 = arith.constant 5 : index
      %c12_329 = arith.constant 12 : index
      %878 = memref.load %arg8[%c5_328, %c12_329] : memref<8x16xf32, #tpu.memory_space<smem>>
      %879 = vector.broadcast %878 : f32 to vector<8x256xf32>
      %880 = arith.mulf %227, %879 : vector<8x256xf32>
      %881 = arith.addf %877, %880 : vector<8x256xf32>
      %c6_330 = arith.constant 6 : index
      %c12_331 = arith.constant 12 : index
      %882 = memref.load %arg8[%c6_330, %c12_331] : memref<8x16xf32, #tpu.memory_space<smem>>
      %883 = vector.broadcast %882 : f32 to vector<8x256xf32>
      %884 = arith.mulf %243, %883 : vector<8x256xf32>
      %885 = arith.addf %881, %884 : vector<8x256xf32>
      %c7_332 = arith.constant 7 : index
      %c12_333 = arith.constant 12 : index
      %886 = memref.load %arg8[%c7_332, %c12_333] : memref<8x16xf32, #tpu.memory_space<smem>>
      %887 = vector.broadcast %886 : f32 to vector<8x256xf32>
      %888 = arith.mulf %259, %887 : vector<8x256xf32>
      %889 = arith.addf %885, %888 : vector<8x256xf32>
      %c12_334 = arith.constant 12 : index
      %890 = memref.load %arg9[%c12_334] : memref<16xf32, #tpu.memory_space<smem>>
      %891 = vector.broadcast %890 : f32 to vector<8x256xf32>
      %892 = arith.addf %889, %891 : vector<8x256xf32>
      %cst_335 = arith.constant 0.000000e+00 : f32
      %893 = vector.broadcast %cst_335 : f32 to vector<8x256xf32>
      %894 = arith.maximumf %892, %893 : vector<8x256xf32>
      %895 = arith.mulf %116, %894 : vector<8x256xf32>
      %c12_336 = arith.constant 12 : index
      %896 = arith.index_cast %78 : i32 to index
      %897 = vector.load %arg5[%c12_336, %896] : memref<16x256xf32, #tpu.memory_space<vmem>>, vector<1x256xf32>
      %898 = vector.broadcast %897 : vector<1x256xf32> to vector<8x256xf32>
      %899 = arith.mulf %895, %898 : vector<8x256xf32>
      %cst_337 = arith.constant dense<0.000000e+00> : vector<8xf32>
      %900 = vector.multi_reduction <add>, %899, %cst_337 [1] : vector<8x256xf32> to vector<8xf32>
      %901 = vector.shape_cast %900 : vector<8xf32> to vector<8x1xf32>
      %cst_338 = arith.constant 0.000000e+00 : f32
      %902 = vector.shape_cast %26 : vector<1x16xi1> to vector<1x16xi1>
      %903 = vector.broadcast %902 : vector<1x16xi1> to vector<8x16xi1>
      %904 = vector.shape_cast %901 : vector<8x1xf32> to vector<8x1xf32>
      %905 = vector.broadcast %904 : vector<8x1xf32> to vector<8x16xf32>
      %906 = vector.broadcast %cst_338 : f32 to vector<8x16xf32>
      %907 = arith.select %903, %905, %906 : vector<8x16xi1>, vector<8x16xf32>
      %908 = arith.addf %858, %907 : vector<8x16xf32>
      %c0_339 = arith.constant 0 : index
      %c13 = arith.constant 13 : index
      %909 = memref.load %arg8[%c0_339, %c13] : memref<8x16xf32, #tpu.memory_space<smem>>
      %910 = vector.broadcast %909 : f32 to vector<8x256xf32>
      %911 = arith.mulf %147, %910 : vector<8x256xf32>
      %c1_340 = arith.constant 1 : index
      %c13_341 = arith.constant 13 : index
      %912 = memref.load %arg8[%c1_340, %c13_341] : memref<8x16xf32, #tpu.memory_space<smem>>
      %913 = vector.broadcast %912 : f32 to vector<8x256xf32>
      %914 = arith.mulf %163, %913 : vector<8x256xf32>
      %915 = arith.addf %911, %914 : vector<8x256xf32>
      %c2_342 = arith.constant 2 : index
      %c13_343 = arith.constant 13 : index
      %916 = memref.load %arg8[%c2_342, %c13_343] : memref<8x16xf32, #tpu.memory_space<smem>>
      %917 = vector.broadcast %916 : f32 to vector<8x256xf32>
      %918 = arith.mulf %179, %917 : vector<8x256xf32>
      %919 = arith.addf %915, %918 : vector<8x256xf32>
      %c3_344 = arith.constant 3 : index
      %c13_345 = arith.constant 13 : index
      %920 = memref.load %arg8[%c3_344, %c13_345] : memref<8x16xf32, #tpu.memory_space<smem>>
      %921 = vector.broadcast %920 : f32 to vector<8x256xf32>
      %922 = arith.mulf %195, %921 : vector<8x256xf32>
      %923 = arith.addf %919, %922 : vector<8x256xf32>
      %c4_346 = arith.constant 4 : index
      %c13_347 = arith.constant 13 : index
      %924 = memref.load %arg8[%c4_346, %c13_347] : memref<8x16xf32, #tpu.memory_space<smem>>
      %925 = vector.broadcast %924 : f32 to vector<8x256xf32>
      %926 = arith.mulf %211, %925 : vector<8x256xf32>
      %927 = arith.addf %923, %926 : vector<8x256xf32>
      %c5_348 = arith.constant 5 : index
      %c13_349 = arith.constant 13 : index
      %928 = memref.load %arg8[%c5_348, %c13_349] : memref<8x16xf32, #tpu.memory_space<smem>>
      %929 = vector.broadcast %928 : f32 to vector<8x256xf32>
      %930 = arith.mulf %227, %929 : vector<8x256xf32>
      %931 = arith.addf %927, %930 : vector<8x256xf32>
      %c6_350 = arith.constant 6 : index
      %c13_351 = arith.constant 13 : index
      %932 = memref.load %arg8[%c6_350, %c13_351] : memref<8x16xf32, #tpu.memory_space<smem>>
      %933 = vector.broadcast %932 : f32 to vector<8x256xf32>
      %934 = arith.mulf %243, %933 : vector<8x256xf32>
      %935 = arith.addf %931, %934 : vector<8x256xf32>
      %c7_352 = arith.constant 7 : index
      %c13_353 = arith.constant 13 : index
      %936 = memref.load %arg8[%c7_352, %c13_353] : memref<8x16xf32, #tpu.memory_space<smem>>
      %937 = vector.broadcast %936 : f32 to vector<8x256xf32>
      %938 = arith.mulf %259, %937 : vector<8x256xf32>
      %939 = arith.addf %935, %938 : vector<8x256xf32>
      %c13_354 = arith.constant 13 : index
      %940 = memref.load %arg9[%c13_354] : memref<16xf32, #tpu.memory_space<smem>>
      %941 = vector.broadcast %940 : f32 to vector<8x256xf32>
      %942 = arith.addf %939, %941 : vector<8x256xf32>
      %cst_355 = arith.constant 0.000000e+00 : f32
      %943 = vector.broadcast %cst_355 : f32 to vector<8x256xf32>
      %944 = arith.maximumf %942, %943 : vector<8x256xf32>
      %945 = arith.mulf %116, %944 : vector<8x256xf32>
      %c13_356 = arith.constant 13 : index
      %946 = arith.index_cast %78 : i32 to index
      %947 = vector.load %arg5[%c13_356, %946] : memref<16x256xf32, #tpu.memory_space<vmem>>, vector<1x256xf32>
      %948 = vector.broadcast %947 : vector<1x256xf32> to vector<8x256xf32>
      %949 = arith.mulf %945, %948 : vector<8x256xf32>
      %cst_357 = arith.constant dense<0.000000e+00> : vector<8xf32>
      %950 = vector.multi_reduction <add>, %949, %cst_357 [1] : vector<8x256xf32> to vector<8xf32>
      %951 = vector.shape_cast %950 : vector<8xf32> to vector<8x1xf32>
      %cst_358 = arith.constant 0.000000e+00 : f32
      %952 = vector.shape_cast %28 : vector<1x16xi1> to vector<1x16xi1>
      %953 = vector.broadcast %952 : vector<1x16xi1> to vector<8x16xi1>
      %954 = vector.shape_cast %951 : vector<8x1xf32> to vector<8x1xf32>
      %955 = vector.broadcast %954 : vector<8x1xf32> to vector<8x16xf32>
      %956 = vector.broadcast %cst_358 : f32 to vector<8x16xf32>
      %957 = arith.select %953, %955, %956 : vector<8x16xi1>, vector<8x16xf32>
      %958 = arith.addf %908, %957 : vector<8x16xf32>
      %c0_359 = arith.constant 0 : index
      %c14 = arith.constant 14 : index
      %959 = memref.load %arg8[%c0_359, %c14] : memref<8x16xf32, #tpu.memory_space<smem>>
      %960 = vector.broadcast %959 : f32 to vector<8x256xf32>
      %961 = arith.mulf %147, %960 : vector<8x256xf32>
      %c1_360 = arith.constant 1 : index
      %c14_361 = arith.constant 14 : index
      %962 = memref.load %arg8[%c1_360, %c14_361] : memref<8x16xf32, #tpu.memory_space<smem>>
      %963 = vector.broadcast %962 : f32 to vector<8x256xf32>
      %964 = arith.mulf %163, %963 : vector<8x256xf32>
      %965 = arith.addf %961, %964 : vector<8x256xf32>
      %c2_362 = arith.constant 2 : index
      %c14_363 = arith.constant 14 : index
      %966 = memref.load %arg8[%c2_362, %c14_363] : memref<8x16xf32, #tpu.memory_space<smem>>
      %967 = vector.broadcast %966 : f32 to vector<8x256xf32>
      %968 = arith.mulf %179, %967 : vector<8x256xf32>
      %969 = arith.addf %965, %968 : vector<8x256xf32>
      %c3_364 = arith.constant 3 : index
      %c14_365 = arith.constant 14 : index
      %970 = memref.load %arg8[%c3_364, %c14_365] : memref<8x16xf32, #tpu.memory_space<smem>>
      %971 = vector.broadcast %970 : f32 to vector<8x256xf32>
      %972 = arith.mulf %195, %971 : vector<8x256xf32>
      %973 = arith.addf %969, %972 : vector<8x256xf32>
      %c4_366 = arith.constant 4 : index
      %c14_367 = arith.constant 14 : index
      %974 = memref.load %arg8[%c4_366, %c14_367] : memref<8x16xf32, #tpu.memory_space<smem>>
      %975 = vector.broadcast %974 : f32 to vector<8x256xf32>
      %976 = arith.mulf %211, %975 : vector<8x256xf32>
      %977 = arith.addf %973, %976 : vector<8x256xf32>
      %c5_368 = arith.constant 5 : index
      %c14_369 = arith.constant 14 : index
      %978 = memref.load %arg8[%c5_368, %c14_369] : memref<8x16xf32, #tpu.memory_space<smem>>
      %979 = vector.broadcast %978 : f32 to vector<8x256xf32>
      %980 = arith.mulf %227, %979 : vector<8x256xf32>
      %981 = arith.addf %977, %980 : vector<8x256xf32>
      %c6_370 = arith.constant 6 : index
      %c14_371 = arith.constant 14 : index
      %982 = memref.load %arg8[%c6_370, %c14_371] : memref<8x16xf32, #tpu.memory_space<smem>>
      %983 = vector.broadcast %982 : f32 to vector<8x256xf32>
      %984 = arith.mulf %243, %983 : vector<8x256xf32>
      %985 = arith.addf %981, %984 : vector<8x256xf32>
      %c7_372 = arith.constant 7 : index
      %c14_373 = arith.constant 14 : index
      %986 = memref.load %arg8[%c7_372, %c14_373] : memref<8x16xf32, #tpu.memory_space<smem>>
      %987 = vector.broadcast %986 : f32 to vector<8x256xf32>
      %988 = arith.mulf %259, %987 : vector<8x256xf32>
      %989 = arith.addf %985, %988 : vector<8x256xf32>
      %c14_374 = arith.constant 14 : index
      %990 = memref.load %arg9[%c14_374] : memref<16xf32, #tpu.memory_space<smem>>
      %991 = vector.broadcast %990 : f32 to vector<8x256xf32>
      %992 = arith.addf %989, %991 : vector<8x256xf32>
      %cst_375 = arith.constant 0.000000e+00 : f32
      %993 = vector.broadcast %cst_375 : f32 to vector<8x256xf32>
      %994 = arith.maximumf %992, %993 : vector<8x256xf32>
      %995 = arith.mulf %116, %994 : vector<8x256xf32>
      %c14_376 = arith.constant 14 : index
      %996 = arith.index_cast %78 : i32 to index
      %997 = vector.load %arg5[%c14_376, %996] : memref<16x256xf32, #tpu.memory_space<vmem>>, vector<1x256xf32>
      %998 = vector.broadcast %997 : vector<1x256xf32> to vector<8x256xf32>
      %999 = arith.mulf %995, %998 : vector<8x256xf32>
      %cst_377 = arith.constant dense<0.000000e+00> : vector<8xf32>
      %1000 = vector.multi_reduction <add>, %999, %cst_377 [1] : vector<8x256xf32> to vector<8xf32>
      %1001 = vector.shape_cast %1000 : vector<8xf32> to vector<8x1xf32>
      %cst_378 = arith.constant 0.000000e+00 : f32
      %1002 = vector.shape_cast %30 : vector<1x16xi1> to vector<1x16xi1>
      %1003 = vector.broadcast %1002 : vector<1x16xi1> to vector<8x16xi1>
      %1004 = vector.shape_cast %1001 : vector<8x1xf32> to vector<8x1xf32>
      %1005 = vector.broadcast %1004 : vector<8x1xf32> to vector<8x16xf32>
      %1006 = vector.broadcast %cst_378 : f32 to vector<8x16xf32>
      %1007 = arith.select %1003, %1005, %1006 : vector<8x16xi1>, vector<8x16xf32>
      %1008 = arith.addf %958, %1007 : vector<8x16xf32>
      %c0_379 = arith.constant 0 : index
      %c15 = arith.constant 15 : index
      %1009 = memref.load %arg8[%c0_379, %c15] : memref<8x16xf32, #tpu.memory_space<smem>>
      %1010 = vector.broadcast %1009 : f32 to vector<8x256xf32>
      %1011 = arith.mulf %147, %1010 : vector<8x256xf32>
      %c1_380 = arith.constant 1 : index
      %c15_381 = arith.constant 15 : index
      %1012 = memref.load %arg8[%c1_380, %c15_381] : memref<8x16xf32, #tpu.memory_space<smem>>
      %1013 = vector.broadcast %1012 : f32 to vector<8x256xf32>
      %1014 = arith.mulf %163, %1013 : vector<8x256xf32>
      %1015 = arith.addf %1011, %1014 : vector<8x256xf32>
      %c2_382 = arith.constant 2 : index
      %c15_383 = arith.constant 15 : index
      %1016 = memref.load %arg8[%c2_382, %c15_383] : memref<8x16xf32, #tpu.memory_space<smem>>
      %1017 = vector.broadcast %1016 : f32 to vector<8x256xf32>
      %1018 = arith.mulf %179, %1017 : vector<8x256xf32>
      %1019 = arith.addf %1015, %1018 : vector<8x256xf32>
      %c3_384 = arith.constant 3 : index
      %c15_385 = arith.constant 15 : index
      %1020 = memref.load %arg8[%c3_384, %c15_385] : memref<8x16xf32, #tpu.memory_space<smem>>
      %1021 = vector.broadcast %1020 : f32 to vector<8x256xf32>
      %1022 = arith.mulf %195, %1021 : vector<8x256xf32>
      %1023 = arith.addf %1019, %1022 : vector<8x256xf32>
      %c4_386 = arith.constant 4 : index
      %c15_387 = arith.constant 15 : index
      %1024 = memref.load %arg8[%c4_386, %c15_387] : memref<8x16xf32, #tpu.memory_space<smem>>
      %1025 = vector.broadcast %1024 : f32 to vector<8x256xf32>
      %1026 = arith.mulf %211, %1025 : vector<8x256xf32>
      %1027 = arith.addf %1023, %1026 : vector<8x256xf32>
      %c5_388 = arith.constant 5 : index
      %c15_389 = arith.constant 15 : index
      %1028 = memref.load %arg8[%c5_388, %c15_389] : memref<8x16xf32, #tpu.memory_space<smem>>
      %1029 = vector.broadcast %1028 : f32 to vector<8x256xf32>
      %1030 = arith.mulf %227, %1029 : vector<8x256xf32>
      %1031 = arith.addf %1027, %1030 : vector<8x256xf32>
      %c6_390 = arith.constant 6 : index
      %c15_391 = arith.constant 15 : index
      %1032 = memref.load %arg8[%c6_390, %c15_391] : memref<8x16xf32, #tpu.memory_space<smem>>
      %1033 = vector.broadcast %1032 : f32 to vector<8x256xf32>
      %1034 = arith.mulf %243, %1033 : vector<8x256xf32>
      %1035 = arith.addf %1031, %1034 : vector<8x256xf32>
      %c7_392 = arith.constant 7 : index
      %c15_393 = arith.constant 15 : index
      %1036 = memref.load %arg8[%c7_392, %c15_393] : memref<8x16xf32, #tpu.memory_space<smem>>
      %1037 = vector.broadcast %1036 : f32 to vector<8x256xf32>
      %1038 = arith.mulf %259, %1037 : vector<8x256xf32>
      %1039 = arith.addf %1035, %1038 : vector<8x256xf32>
      %c15_394 = arith.constant 15 : index
      %1040 = memref.load %arg9[%c15_394] : memref<16xf32, #tpu.memory_space<smem>>
      %1041 = vector.broadcast %1040 : f32 to vector<8x256xf32>
      %1042 = arith.addf %1039, %1041 : vector<8x256xf32>
      %cst_395 = arith.constant 0.000000e+00 : f32
      %1043 = vector.broadcast %cst_395 : f32 to vector<8x256xf32>
      %1044 = arith.maximumf %1042, %1043 : vector<8x256xf32>
      %1045 = arith.mulf %116, %1044 : vector<8x256xf32>
      %c15_396 = arith.constant 15 : index
      %1046 = arith.index_cast %78 : i32 to index
      %1047 = vector.load %arg5[%c15_396, %1046] : memref<16x256xf32, #tpu.memory_space<vmem>>, vector<1x256xf32>
      %1048 = vector.broadcast %1047 : vector<1x256xf32> to vector<8x256xf32>
      %1049 = arith.mulf %1045, %1048 : vector<8x256xf32>
      %cst_397 = arith.constant dense<0.000000e+00> : vector<8xf32>
      %1050 = vector.multi_reduction <add>, %1049, %cst_397 [1] : vector<8x256xf32> to vector<8xf32>
      %1051 = vector.shape_cast %1050 : vector<8xf32> to vector<8x1xf32>
      %cst_398 = arith.constant 0.000000e+00 : f32
      %1052 = vector.shape_cast %32 : vector<1x16xi1> to vector<1x16xi1>
      %1053 = vector.broadcast %1052 : vector<1x16xi1> to vector<8x16xi1>
      %1054 = vector.shape_cast %1051 : vector<8x1xf32> to vector<8x1xf32>
      %1055 = vector.broadcast %1054 : vector<8x1xf32> to vector<8x16xf32>
      %1056 = vector.broadcast %cst_398 : f32 to vector<8x16xf32>
      %1057 = arith.select %1053, %1055, %1056 : vector<8x16xi1>, vector<8x16xf32>
      %1058 = arith.addf %1008, %1057 : vector<8x16xf32>
      %1059 = arith.addf %76, %1058 : vector<8x16xf32>
      %c1_i32_399 = arith.constant 1 : i32
      %1060 = arith.index_cast %35 : i32 to index
      %c0_400 = arith.constant 0 : index
      %1061 = vector.load %arg10[%1060, %c0_400] : memref<128x16xf32, #tpu.memory_space<vmem>>, vector<8x16xf32>
      tpu.vector_store %arg10[%1060, %c0_400], %1059 {strides = array<i32>} : memref<128x16xf32, #tpu.memory_space<vmem>>, vector<8x16xf32>,
    }
    %c16_i32_2 = arith.constant 16 : i32
    return
  }
  func.func @transform_0(%arg0: i32) -> (i32, i32) {
    %c0_i32 = arith.constant 0 : i32
    %c0_i32_0 = arith.constant 0 : i32
    return %arg0, %c0_i32 : i32, i32
  }
  func.func @transform_1(%arg0: i32) -> (i32, i32) {
    %c0_i32 = arith.constant 0 : i32
    %c0_i32_0 = arith.constant 0 : i32
    return %arg0, %c0_i32 : i32, i32
  }
  func.func @transform_2(%arg0: i32) -> (i32, i32) {
    %c0_i32 = arith.constant 0 : i32
    %c0_i32_0 = arith.constant 0 : i32
    %c0_i32_1 = arith.constant 0 : i32
    return %c0_i32, %c0_i32_0 : i32, i32
  }
  func.func @transform_3(%arg0: i32) -> (i32, i32) {
    %c0_i32 = arith.constant 0 : i32
    %c0_i32_0 = arith.constant 0 : i32
    %c0_i32_1 = arith.constant 0 : i32
    return %c0_i32, %c0_i32_0 : i32, i32
  }
  func.func @transform_4(%arg0: i32) -> (i32, i32) {
    %c0_i32 = arith.constant 0 : i32
    %c0_i32_0 = arith.constant 0 : i32
    %c0_i32_1 = arith.constant 0 : i32
    return %c0_i32, %c0_i32_0 : i32, i32
  }
  func.func @transform_5(%arg0: i32) -> (i32, i32) {
    %c0_i32 = arith.constant 0 : i32
    %c0_i32_0 = arith.constant 0 : i32
    %c0_i32_1 = arith.constant 0 : i32
    return %c0_i32, %c0_i32_0 : i32, i32
  }
  func.func @transform_6(%arg0: i32) -> i32 {
    %c0_i32 = arith.constant 0 : i32
    %c0_i32_0 = arith.constant 0 : i32
    return %c0_i32 : i32
  }
  func.func @transform_7(%arg0: i32) -> (i32, i32) {
    %c0_i32 = arith.constant 0 : i32
    %c0_i32_0 = arith.constant 0 : i32
    %c0_i32_1 = arith.constant 0 : i32
    return %c0_i32, %c0_i32_0 : i32, i32
  }
  func.func @transform_8(%arg0: i32) -> i32 {
    %c0_i32 = arith.constant 0 : i32
    %c0_i32_0 = arith.constant 0 : i32
    return %c0_i32 : i32
  }
  func.func @transform_9(%arg0: i32) -> (i32, i32) {
    %c0_i32 = arith.constant 0 : i32
    %c0_i32_0 = arith.constant 0 : i32
    return %arg0, %c0_i32 : i32, i32
  }
}

</mosaic_0001>

<bundles_post_ra>
// kernel: tpu_custom_call.1
= control target key start
LH: loop header
LB: loop body
LE: loop exit
PB: predicated region body
PF: predicated region fallthrough
CT: control target
= control target key end

     0   :  { %s4473_s0 = inlined_call_operand.vmem [shape: f32[256,3], index: 0, kind: input, shape index: {}]   ;;  %s4474_s1 = inlined_call_operand.vmem [shape: f32[256,9], index: 1, kind: input, shape index: {}]   ;;  %s4475_s2 = inlined_call_operand.vmem [shape: f32[3,256], index: 2, kind: input, shape index: {}]   ;;  %s4476_s3 = inlined_call_operand.vmem [shape: f32[3,256], index: 3, kind: input, shape index: {}]   ;;  %s4477_s4 = inlined_call_operand.vmem [shape: f32[16,256], index: 4, kind: input, shape index: {}]   ;;  %s4478_s5 = inlined_call_operand.vmem [shape: f32[8,3], index: 5, kind: input, shape index: {}]   ;;  %s4479_s6 = inlined_call_operand.vmem [shape: f32[8], index: 6, kind: input, shape index: {}]   ;;  %s4480_s7 = inlined_call_operand.vmem [shape: f32[8,16], index: 7, kind: input, shape index: {}]   ;;  %s4481_s8 = inlined_call_operand.vmem [shape: f32[16], index: 8, kind: input, shape index: {}]   ;;  %s4482_s9 = inlined_call_operand.vmem [shape: f32[256,16], index: 9, kind: output, shape index: {}]  }
   0x1   :  { %4653 = sst [smem:[#allocation114_spill]] %s4473_s0 }
   0x2   :  { %4654 = sst [smem:[#allocation115_spill]] %s4474_s1 }
   0x3   :  { %4655 = sst [smem:[#allocation116_spill]] %s4475_s2 }
   0x4   :  { %4656 = sst [smem:[#allocation117_spill]] %s4476_s3 }
   0x5   :  { %4657 = sst [smem:[#allocation118_spill]] %s4477_s4 }
   0x6   :  { %4658 = sst [smem:[#allocation119_spill]] %s4478_s5 }
   0x7   :  { %4659 = sst [smem:[#allocation120_spill]] %s4479_s6 }
   0x8   :  { %4660 = sst [smem:[#allocation121_spill]] %s4480_s7 }
   0x9   :  { %4661 = sst [smem:[#allocation122_spill]] %s4481_s8 }
   0xa   :  { %4662 = sst [smem:[#allocation123_spill]] %s4482_s9 }
   0xb   :  { %14 = vsyncpa [#allocation3], 0 }
   0xc   :  { %15 = vsyncpa [#allocation5], 0 }
   0xd   :  { %16 = vsyncpa [#allocation8], 0  ;;  %s2593_s30 = smov 0  }
   0xe LB: > { %4663 = sst [smem:[#allocation12_spill]] %s2524_s30  ;;  %s4664_s6 = sld [smem:[#allocation120_spill]]  ;;  %s2524_s30 = sphi %s2593_s30, %s22_s30  }
   0xf   : > { %s2147_s13 = sadd.s32 4294967295, %s2524_s30   ;;  %p2149_p0 = scmp.ge.s32.totalorder %s2524_s30, 1 }
  0x10   : > { %p252_p1 = scmp.lt.s32.totalorder %s2524_s30, 3  ;;  %p2606_p2 = scmp.eq.s32.totalorder %s2147_s13, 0 }
  0x11   : > { %s4667_s5 = sld [smem:[#allocation119_spill]]  ;;  %s4668_s7 = sld [smem:[#allocation121_spill]] }
  0x12   : > { %p2610_p3 = pnand %p2149_p0, %p252_p1  ;;  %s4670_s8 = sld [smem:[#allocation122_spill]] }
  0x14   : > { %s285_s12 = sshll.u32 %s4664_s6, 4  ;;  %p2376_p4 = pneg %p2610_p3  ;;  %s286_s12 = int_to_ptr.vmem [resolvable:$true] %s285_s12 }
  0x15   : > { %s2442_s26 = scalar_lea.vmem %s286_s12, 16  ;;  %p2450_p10 = scmp.lt.s32.totalorder %s286_s12, %s286_s12 }
  0x16   : > { %p2628_p5 = pnand %p2606_p2, %p2376_p4  ;;  %p2443_p6 = scmp.ne.s32.totalorder %s286_s12, %s2442_s26 }
  0x17   : > { %s274_s18 = sshll.u32 %s4667_s5, 4  ;;  %s296_s21 = sshll.u32 %s4668_s7, 4  ;;  %s2617_s18 = int_to_ptr.vmem [resolvable:$true] %s274_s18  ;;  %s2624_s21 = int_to_ptr.vmem [resolvable:$true] %s296_s21 }
  0x18   : > { %s307_s25 = sshll.u32 %s4670_s8, 4  ;;  %p2444_p7 = pneg %p2628_p5  ;;  %s2635_s25 = int_to_ptr.vmem [resolvable:$true] %s307_s25 }
  0x19   : > { %p2451_p11 = scmp.lt.s32.totalorder %s2442_s26, %s2442_s26 }
  0x1a   : > { %p2445_p8 = pnand %p2444_p7, %p2443_p6 }
  0x1b   : > { %p2452_p12 = por %p2451_p11, %p2450_p10 }
  0x1c   : > { %p2446_p9 = pneg %p2445_p8 }
  0x1e   : > { %p2453_p13 = pnand %p2452_p12, %p2446_p9 }
  0x20   : > { %2456 = shalt.err (!%p2453_p13)
}
  0x21   : > { %s2530_s27 = smov [#allocation4]   ;;  %s2457_s28 = scalar_lea.vmem %s2617_s18, 128 }
  0x22   : > { %2382 = dma.vmem_to_smem (!%p2628_p5), %s286_s12, 16, %s2530_s27, [#allocation5]  }
  0x23   : > { %p2458_p0 = scmp.ne.s32.totalorder %s2617_s18, %s2457_s28  ;;  %p2465_p6 = scmp.lt.s32.totalorder %s2617_s18, %s2617_s18 }
  0x24   : > { %p2466_p8 = scmp.lt.s32.totalorder %s2457_s28, %s2457_s28 }
  0x25   : > { %p2460_p1 = pnand %p2458_p0, %p2444_p7 }
  0x26   : > { %p2467_p10 = por %p2466_p8, %p2465_p6 }
  0x27   : > { %p2461_p4 = pneg %p2460_p1 }
  0x29   : > { %p2468_p9 = pnand %p2467_p10, %p2461_p4 }
  0x2b   : > { %2471 = shalt.err (!%p2468_p9)
}
  0x2c   : > { %s2531_s29 = smov [#allocation2]   ;;  %s2472_s10 = scalar_lea.vmem %s2624_s21, 128 }
  0x2d   : > { %2379 = dma.vmem_to_smem (!%p2628_p5), %s2617_s18, 128, %s2531_s29, [#allocation3]  }
  0x2e   : > { %p2473_p11 = scmp.ne.s32.totalorder %s2624_s21, %s2472_s10  ;;  %p2480_p0 = scmp.lt.s32.totalorder %s2624_s21, %s2624_s21 }
  0x2f   : > { %p2481_p1 = scmp.lt.s32.totalorder %s2472_s10, %s2472_s10 }
  0x30   : > { %p2475_p12 = pnand %p2473_p11, %p2444_p7 }
  0x31   : > { %p2482_p4 = por %p2481_p1, %p2480_p0 }
  0x32   : > { %p2476_p13 = pneg %p2475_p12 }
  0x34   : > { %p2483_p6 = pnand %p2482_p4, %p2476_p13 }
  0x36   : > { %2486 = shalt.err (!%p2483_p6)
}
  0x37   : > { %s2532_s11 = smov [#allocation6]   ;;  %s2487_s12 = scalar_lea.vmem %s2635_s25, 16 }
  0x38   : > { %2385 = dma.vmem_to_smem (!%p2628_p5), %s2624_s21, 128, %s2532_s11, [#allocation5]  }
  0x39   : > { %p2488_p8 = scmp.ne.s32.totalorder %s2635_s25, %s2487_s12  ;;  %p2495_p11 = scmp.lt.s32.totalorder %s2635_s25, %s2635_s25 }
  0x3a   : > { %p2496_p12 = scmp.lt.s32.totalorder %s2487_s12, %s2487_s12 }
  0x3b   : > { %p2490_p10 = pnand %p2488_p8, %p2444_p7 }
  0x3c   : > { %p2497_p13 = por %p2496_p12, %p2495_p11 }
  0x3d   : > { %p2491_p9 = pneg %p2490_p10 }
  0x3f   : > { %p2498_p0 = pnand %p2497_p13, %p2491_p9 }
  0x41   : > { %2501 = shalt.err (!%p2498_p0)
}
  0x42   : > { %s2533_s16 = smov [#allocation7]   ;;  %338 = sbr.rel (%p2610_p3) target bundleno = 671 (0x29f), region = 56 }
  0x43   : > { %2388 = dma.vmem_to_smem (!%p2628_p5), %s2635_s25, 16, %s2533_s16, [#allocation8]  }
  0x49   : > { %2511 = dma.done.wait (%p2606_p2), [#allocation3], 128  }
  0x4a   : > { %2513 = vsyncadd (%p2606_p2), [#allocation3], 4294967168 }
  0x4b   : > { %2515 = dma.done.wait (%p2606_p2), [#allocation5], 144  }
  0x4c   : > { %2517 = vsyncadd (%p2606_p2), [#allocation5], 4294967152 }
  0x4d   : > { %2519 = dma.done.wait (%p2606_p2), [#allocation8], 16  }
  0x4e   : > { %2521 = vsyncadd (%p2606_p2), [#allocation8], 4294967280 }
  0x4f   : > { %356 = sfence }
  0x50   : > { %s2160_s15 = sshll.u32 %s2147_s13, 4  ;;  %v4571_v0 = vlaneseq  ;;  %s2723_s25 = smov 0  }
  0x51   : > { %p393_p3 = scmp.lt.s32.totalorder %s2160_s15, 31 }
  0x52   : > { %v2691_v1 = vand.u32 127, %v4571_v0 }
  0x53   : > { %s5168_s15 = smov (!%p393_p3, %s2160_s15), 31 }
  0x54   : > { %4671 = vst [vmem:[#allocation13_spill] sm:$0xff] %v2691_v1  ;;  %vm413_vm1 = vcmp.eq.s32.totalorder %v2691_v1, 1  ;;  %vm414_vm2 = vcmp.eq.s32.totalorder %v2691_v1, 2  ;;  %vm415_vm3 = vcmp.eq.s32.totalorder %v2691_v1, 3  ;;  %s2697_s14 = sshll.u32 %s5168_s15, 3  ;;  %vm416_vm4 = vcmp.eq.s32.totalorder %v2691_v1, 4 }
  0x55   : > { %4672 = sst [smem:[#allocation14_spill]] %s2697_s14  ;;  %vm417_vm5 = vcmp.eq.s32.totalorder %v2691_v1, 5  ;;  %vm418_vm6 = vcmp.eq.s32.totalorder %v2691_v1, 6  ;;  %vm419_vm7 = vcmp.eq.s32.totalorder %v2691_v1, 7  ;;  %vm420_vm8 = vcmp.eq.s32.totalorder %v2691_v1, 8 }
  0x56   : > { %vm421_vm9 = vcmp.eq.s32.totalorder %v2691_v1, 9  ;;  %vm422_vm10 = vcmp.eq.s32.totalorder %v2691_v1, 10  ;;  %vm423_vm11 = vcmp.eq.s32.totalorder %v2691_v1, 11  ;;  %vm424_vm12 = vcmp.eq.s32.totalorder %v2691_v1, 12 }
  0x57   : > { %vm425_vm13 = vcmp.eq.s32.totalorder %v2691_v1, 13  ;;  %vm426_vm14 = vcmp.eq.s32.totalorder %v2691_v1, 14  ;;  %vm427_vm15 = vcmp.eq.s32.totalorder %v2691_v1, 15 }
  0x58 LB: >> { %s4676_s14 = sld [smem:[#allocation14_spill]]  ;;  %4677 = sst [smem:[#allocation15_spill]] %s2528_s25  ;;  %v2534_v2 = vmov 2   ;;  %v2535_v3 = vmov 0   ;;  %v2536_v6 = vmov 1   ;;  %v2537_v7 = vmov 3   ;;  %s2528_s25 = sphi %s2723_s25, %s433_s25  }
  0x59   : >> { %2428 = vset.pattern.permute.xlu1 %v2534_v2  ;;  %2426 = vset.pattern.permute.xlu0 %v2535_v3  ;;  %s2729_s26 = sshll.u32 %s2528_s25, 3  ;;  %s4679_s0 = sld [smem:[#allocation114_spill]]  ;;  %v2538_v8 = vmov 4   ;;  %v2539_v9 = vmov 5   ;;  %v2540_v10 = vmov 8   ;;  %v2541_v11 = vmov 6  }
  0x5a   : >> { %4678 = sst [smem:[#allocation16_spill]] %s2729_s26  ;;  %s4681_s1 = sld [smem:[#allocation115_spill]]  ;;  %v2542_v12 = vmov 7   ;;  %v4718_v0 = vlaneseq }
  0x5b   : >> { %s2743_s16 = sld [smem:[#allocation2 + $0x1]]  ;;  %s2759_s27 = sld [smem:[#allocation2]] }
  0x5c   : >> { %s2745_s15 = sld [smem:[#allocation2 + $0x81]]  ;;  %s2761_s28 = sld [smem:[#allocation2 + $0x80]]  ;;  %v492_v13 = vshrl.u32 %v4718_v0, 7 }
  0x5d   : >> { %s2747_s13 = sld [smem:[#allocation2 + $0x101]]  ;;  %s2765_s10 = sld [smem:[#allocation2 + $0x180]] }
  0x5e   : >> { %s2749_s17 = sld [smem:[#allocation2 + $0x181]]  ;;  %s2767_s11 = sld [smem:[#allocation2 + $0x200]]  ;;  %v2835_v15 = vsub.s32 0, %v492_v13  ;;  %v2851_v18 = vsub.s32 1, %v492_v13 }
  0x5f   : >> { %s4680_s18 = scalar_lea.vmem %s4679_s0, %s4676_s14  ;;  %s2751_s19 = sld [smem:[#allocation2 + $0x201]] }
  0x60   : >> { %s435_s29 = scalar_lea.vmem %s4680_s18, %s2729_s26  ;;  %s4682_s21 = scalar_lea.vmem %s4681_s1, %s4676_s14 }
  0x61   : >> { %v436_v4 = vld [vmem:[%s435_s29] sm:$0xff]  ;;  %s437_s12 = scalar_lea.vmem %s4682_s21, %s2729_s26  ;;  %4683 = sst [smem:[#allocation17_spill]] %s2743_s16  ;;  %v638_v32 = vstv %s2743_s16  ;;  %v634_v42 = vstv %s2759_s27 }
  0x62   : >> { %449 = vperm.xlu1 %2428, %v436_v4   ;;  %441 = vperm.xlu0 %2426, %v436_v4   ;;  %v438_v5 = vld [vmem:[%s437_s12] sm:$0xff]  ;;  %4684 = sst [smem:[#allocation18_spill]] %s2745_s15  ;;  %s2753_s20 = sld [smem:[#allocation2 + $0x281]]  ;;  %v660_v33 = vstv %s2745_s15  ;;  %v656_v43 = vstv %s2761_s28 }
  0x63   : >> { %4685 = sst [smem:[#allocation19_spill]] %s2747_s13  ;;  %s2755_s22 = sld [smem:[#allocation2 + $0x301]]  ;;  %v682_v35 = vstv %s2747_s13  ;;  %v700_v45 = vstv %s2765_s10 }
  0x64   : >> { %4686 = sst [smem:[#allocation20_spill]] %s2749_s17  ;;  %s2757_s23 = sld [smem:[#allocation2 + $0x381]]  ;;  %v704_v36 = vstv %s2749_s17  ;;  %v722_v46 = vstv %s2767_s11 }
  0x65   : >> { %4687 = sst [smem:[#allocation21_spill]] %s2751_s19  ;;  %s2775_s24 = sld [smem:[#allocation2 + $0x2]]  ;;  %v726_v37 = vstv %s2751_s19 }
  0x66   : >> { %2429 = vset.pattern.permute.xlu1 %v2535_v3  ;;  %2427 = vset.pattern.permute.xlu0 %v2536_v6  ;;  %4691 = sst [smem:[#allocation25_spill]] %s2759_s27  ;;  %s2763_s29 = sld [smem:[#allocation2 + $0x100]] }
  0x67   : >> { %454 = vperm.xlu1 %2429, %v438_v5   ;;  %445 = vperm.xlu0 %2427, %v436_v4   ;;  %4692 = sst [smem:[#allocation26_spill]] %s2761_s28  ;;  %s2769_s12 = sld [smem:[#allocation2 + $0x280]] }
  0x68   : >> { %4688 = sst [smem:[#allocation22_spill]] %s2753_s20  ;;  %s2771_s18 = sld [smem:[#allocation2 + $0x300]]  ;;  %v748_v39 = vstv %s2753_s20 }
  0x69   : >> { %4689 = sst [smem:[#allocation23_spill]] %s2755_s22  ;;  %s2773_s21 = sld [smem:[#allocation2 + $0x380]]  ;;  %v770_v40 = vstv %s2755_s22 }
  0x6a   : >> { %4690 = sst [smem:[#allocation24_spill]] %s2757_s23  ;;  %s2777_s0 = sld [smem:[#allocation4]]  ;;  %v792_v41 = vstv %s2757_s23 }
  0x6b   : >> { %2430 = vset.pattern.permute.xlu1 %v2536_v6  ;;  %2431 = vset.pattern.permute.xlu0 %v2537_v7  ;;  %4694 = sst [smem:[#allocation28_spill]] %s2765_s10  ;;  %s2779_s1 = sld [smem:[#allocation2 + $0x82]] }
  0x6c   : >> { %458 = vperm.xlu1 %2430, %v438_v5   ;;  %466 = vperm.xlu0 %2431, %v438_v5   ;;  %4693 = sst [smem:[#allocation27_spill]] %s2763_s29  ;;  %s2781_s5 = sld [smem:[#allocation4 + $0x1]]  ;;  %v678_v44 = vstv %s2763_s29 }
  0x6d   : >> { %4695 = sst [smem:[#allocation29_spill]] %s2767_s11  ;;  %s2783_s6 = sld [smem:[#allocation2 + $0x102]]  ;;  %v744_v47 = vstv %s2769_s12 }
  0x6e   : >> { %4696 = sst [smem:[#allocation30_spill]] %s2769_s12  ;;  %s2785_s7 = sld [smem:[#allocation4 + $0x2]]  ;;  %v766_v48 = vstv %s2771_s18 }
  0x6f   : >> { %4697 = sst [smem:[#allocation31_spill]] %s2771_s18  ;;  %s2789_s30 = sld [smem:[#allocation4 + $0x3]]  ;;  %v788_v49 = vstv %s2773_s21 }
  0x70   : >> { %2432 = vset.pattern.permute.xlu1 %v2538_v8  ;;  %2434 = vset.pattern.permute.xlu0 %v2539_v9  ;;  %4698 = sst [smem:[#allocation32_spill]] %s2773_s21  ;;  %s2787_s8 = sld [smem:[#allocation2 + $0x182]] }
  0x71   : >> { %470 = vperm.xlu1 %2432, %v438_v5   ;;  %474 = vperm.xlu0 %2434, %v438_v5   ;;  %4699 = sst [smem:[#allocation33_spill]] %s2775_s24  ;;  %s2791_s25 = sld [smem:[#allocation2 + $0x202]] }
  0x72   : >> { %4700 = sst [smem:[#allocation34_spill]] %s2777_s0  ;;  %s2793_s9 = sld [smem:[#allocation4 + $0x4]] }
  0x73   : >> { %4701 = sst [smem:[#allocation35_spill]] %s2779_s1  ;;  %s2795_s14 = sld [smem:[#allocation2 + $0x282]] }
  0x74   : >> { %4702 = sst [smem:[#allocation36_spill]] %s2781_s5  ;;  %s2797_s26 = sld [smem:[#allocation4 + $0x5]] }
  0x75   : >> { %2433 = vset.pattern.permute.xlu1 %v2534_v2  ;;  %2437 = vset.pattern.permute.xlu0 %v2540_v10  ;;  %4703 = sst [smem:[#allocation37_spill]] %s2783_s6  ;;  %s2799_s4 = sld [smem:[#allocation2 + $0x302]] }
  0x76   : >> { %462 = vperm.xlu1 %2433, %v438_v5   ;;  %486 = vperm.xlu0 %2437, %v438_v5   ;;  %4704 = sst [smem:[#allocation38_spill]] %s2785_s7  ;;  %s2801_s1 = sld [smem:[#allocation4 + $0x6]] }
  0x77   : >> { %4705 = sst [smem:[#allocation39_spill]] %s2787_s8  ;;  %s2805_s6 = sld [smem:[#allocation4 + $0x7]] }
  0x78   : >> { %4706 = sst [smem:[#allocation40_spill]] %s2789_s30  ;;  %s2803_s5 = sld [smem:[#allocation2 + $0x382]] }
  0x79   : >> { %4707 = sst [smem:[#allocation41_spill]] %s2791_s25  ;;  %s2807_s7 = sld [smem:[#allocation6 + $0x1]] }
  0x7a   : >> { %2435 = vset.pattern.permute.xlu1 %v2541_v11  ;;  %4708 = sst [smem:[#allocation42_spill]] %s2793_s9  ;;  %s2809_s8 = sld [smem:[#allocation6 + $0x81]] }
  0x7b   : >> { %478 = vperm.xlu1 %2435, %v438_v5   ;;  %4709 = sst [smem:[#allocation43_spill]] %s2795_s14  ;;  %s2811_s30 = sld [smem:[#allocation6 + $0x101]] }
  0x7c   : >> { %4710 = sst [smem:[#allocation44_spill]] %s2797_s26  ;;  %s2814_s9 = sld [smem:[#allocation6 + $0x181]] }
  0x7d   : >> { %4711 = sst [smem:[#allocation45_spill]] %s2799_s4  ;;  %s2816_s14 = sld [smem:[#allocation6 + $0x201]] }
  0x7e   : >> { %4712 = sst [smem:[#allocation46_spill]] %s2801_s1  ;;  %s4725_s2 = sld [smem:[#allocation116_spill]] }
  0x7f   : >> { %2436 = vset.pattern.permute.xlu1 %v2542_v12  ;;  %4713 = sst [smem:[#allocation47_spill]] %s2803_s5  ;;  %s2818_s26 = sld [smem:[#allocation6 + $0x281]] }
  0x80   : >> { %482 = vperm.xlu1 %2436, %v438_v5   ;;  %4714 = sst [smem:[#allocation48_spill]] %s2805_s6  ;;  %s2820_s4 = sld [smem:[#allocation6 + $0x301]] }
  0x81   : >> { %4715 = sst [smem:[#allocation49_spill]] %s2807_s7  ;;  %s2822_s1 = sld [smem:[#allocation6 + $0x381]] }
  0x82   : >> { %4716 = sst [smem:[#allocation50_spill]] %s2809_s8  ;;  %s2824_s5 = sld [smem:[#allocation6]] }
  0x83   : >> { %4717 = sst [smem:[#allocation51_spill]] %s2811_s30  ;;  %s2831_s30 = sld [smem:[#allocation6 + $0x80]] }
  0x84   : >> { %4719 = sst [smem:[#allocation52_spill]] %s2814_s9  ;;  %v2829_v14 = vld [vmem:[%s4725_s2 + $0x2] ss:$4 sm:$0x3]  ;;  %s2833_s8 = sld [smem:[#allocation6 + $0x100]] }
  0x85   : >> { %4720 = sst [smem:[#allocation53_spill]] %s2816_s14  ;;  %v2840_v16 = vld [vmem:[%s4725_s2] ss:$4 sm:$0x3]  ;;  %s4728_s3 = sld [smem:[#allocation117_spill]]  ;;  %v524_v22 = vrot.slane %v2829_v14, %v2835_v15  ;;  %v528_v23 = vrot.slane %v2829_v14, %v2851_v18 }
  0x86   : >> { %4721 = sst [smem:[#allocation54_spill]] %s2818_s26  ;;  %s2849_s6 = sld [smem:[#allocation6 + $0x200]]  ;;  %v2856_v19 = vld [vmem:[%s4725_s2 + $0x1] ss:$4 sm:$0x3]  ;;  %v494_v24 = vrot.slane %v2840_v16, %v2835_v15  ;;  %v498_v25 = vrot.slane %v2840_v16, %v2851_v18 }
  0x87   : >> { %4722 = sst [smem:[#allocation55_spill]] %s2820_s4  ;;  %s2863_s14 = sld [smem:[#allocation6 + $0x280]]  ;;  %v509_v28 = vrot.slane %v2856_v19, %v2835_v15  ;;  %v513_v29 = vrot.slane %v2856_v19, %v2851_v18 }
  0x88   : >> { %4723 = sst [smem:[#allocation56_spill]] %s2822_s1  ;;  %s2865_s1 = sld [smem:[#allocation6 + $0x300]] }
  0x89   : >> { %4724 = sst [smem:[#allocation57_spill]] %s2824_s5  ;;  %s2847_s5 = sld [smem:[#allocation6 + $0x180]] }
  0x8a   : >> { %4726 = sst [smem:[#allocation58_spill]] %s2831_s30  ;;  %s2874_s26 = sld [smem:[#allocation6 + $0x3]] }
  0x8b   : >> { %4727 = sst [smem:[#allocation59_spill]] %s2833_s8  ;;  %v2845_v17 = vld [vmem:[%s4728_s3] ss:$4 sm:$0x3]  ;;  %s2876_s8 = sld [smem:[#allocation6 + $0x83]] }
  0x8c   : >> { %4730 = sst [smem:[#allocation61_spill]] %s2849_s6  ;;  %v2861_v20 = vld [vmem:[%s4728_s3 + $0x1] ss:$4 sm:$0x3]  ;;  %s2878_s7 = sld [smem:[#allocation6 + $0x103]]  ;;  %v548_v26 = vrot.slane %v2845_v17, %v2835_v15  ;;  %v552_v27 = vrot.slane %v2845_v17, %v2851_v18 }
  0x8d   : >> { %4731 = sst [smem:[#allocation62_spill]] %s2863_s14  ;;  %v2870_v21 = vld [vmem:[%s4728_s3 + $0x2] ss:$4 sm:$0x3]  ;;  %s2872_s6 = sld [smem:[#allocation6 + $0x380]]  ;;  %v563_v30 = vrot.slane %v2861_v20, %v2835_v15  ;;  %v567_v31 = vrot.slane %v2861_v20, %v2851_v18 }
  0x8e   : >> { %4732 = sst [smem:[#allocation63_spill]] %s2865_s1  ;;  %s2882_s30 = sld [smem:[#allocation6 + $0x183]]  ;;  %v580_v34 = vrot.slane %v2870_v21, %v2835_v15  ;;  %v584_v38 = vrot.slane %v2870_v21, %v2851_v18 }
  0x8f   : >> { %4729 = sst [smem:[#allocation60_spill]] %s2847_s5  ;;  %s2884_s9 = sld [smem:[#allocation6 + $0x203]] }
  0x90   : >> { %4734 = sst [smem:[#allocation65_spill]] %s2874_s26  ;;  %s2894_s5 = sld [smem:[#allocation7 + $0x1]] }
  0x91   : >> { %4735 = sst [smem:[#allocation66_spill]] %s2876_s8  ;;  %s2896_s4 = sld [smem:[#allocation6 + $0x283]] }
  0x92   : >> { %4736 = sst [smem:[#allocation67_spill]] %s2878_s7  ;;  %s2906_s2 = sld [smem:[#allocation6 + $0x303]] }
  0x93   : >> { %4733 = sst [smem:[#allocation64_spill]] %s2872_s6  ;;  %s2925_s15 = sld [smem:[#allocation7]] }
  0x94   : >> { %4737 = sst [smem:[#allocation68_spill]] %s2882_s30  ;;  %s2908_s3 = sld [smem:[#allocation6 + $0x383]] }
  0x95   : >> { %4738 = sst [smem:[#allocation69_spill]] %s2884_s9  ;;  %s2927_s16 = sld [smem:[#allocation6 + $0x102]] }
  0x96   : >> { %4739 = sst [smem:[#allocation70_spill]] %s2894_s5  ;;  %s2918_s5 = sld [smem:[#allocation6 + $0x82]] }
  0x97   : >> { %4740 = sst [smem:[#allocation71_spill]] %s2896_s4  ;;  %s2951_s29 = sld [smem:[#allocation6 + $0x5]] }
  0x98   : >> { %4741 = sst [smem:[#allocation72_spill]] %s2906_s2  ;;  %s2916_s4 = sld [smem:[#allocation6 + $0x2]] }
  0x99   : >> { %4745 = sst [smem:[#allocation76_spill]] %s2925_s15  ;;  %s2933_s13 = sld [smem:[#allocation6 + $0x182]] }
  0x9a   : >> { %4742 = sst [smem:[#allocation73_spill]] %s2908_s3  ;;  %s2935_s17 = sld [smem:[#allocation6 + $0x202]] }
  0x9b   : >> { %4746 = sst [smem:[#allocation77_spill]] %s2927_s16  ;;  %s2941_s16 = sld [smem:[#allocation6 + $0x282]] }
  0x9c   : >> { %4744 = sst [smem:[#allocation75_spill]] %s2918_s5  ;;  %s2943_s22 = sld [smem:[#allocation6 + $0x302]] }
  0x9d   : >> { %4760 = sst [smem:[#allocation82_spill]] %s2951_s29  ;;  %s2994_s12 = sld [smem:[#allocation6 + $0x4]] }
  0x9e   : >> { %4743 = sst [smem:[#allocation74_spill]] %s2916_s4  ;;  %s2996_s21 = sld [smem:[#allocation6 + $0x84]] }
  0x9f   : >> { %s2959_s18 = sld [smem:[#allocation6 + $0x105]]  ;;  %s3002_s0 = sld [smem:[#allocation6 + $0x104]] }
  0xa0   : >> { %4749 = sst [smem:[#allocation78_spill]] %s2935_s17  ;;  %s2949_s17 = sld [smem:[#allocation6 + $0x382]] }
  0xa1   : >> { %4753 = sst [smem:[#allocation79_spill]] %s2941_s16  ;;  %s2965_s29 = sld [smem:[#allocation6 + $0x185]] }
  0xa2   : >> { %4755 = sst [smem:[#allocation80_spill]] %s2943_s22  ;;  %s2957_s22 = sld [smem:[#allocation6 + $0x85]] }
  0xa3   : >> { %s2967_s5 = sld [smem:[#allocation6 + $0x205]]  ;;  %4787 = sst [smem:[#allocation91_spill]] %s2994_s12 }
  0xa4   : >> { %s2975_s15 = sld [smem:[#allocation6 + $0x285]]  ;;  %4788 = sst [smem:[#allocation92_spill]] %s2996_s21 }
  0xa5   : >> { %4766 = sst [smem:[#allocation84_spill]] %s2959_s18  ;;  %s2983_s27 = sld [smem:[#allocation6 + $0x385]] }
  0xa6   : >> { %4758 = sst [smem:[#allocation81_spill]] %s2949_s17  ;;  %s3015_s20 = sld [smem:[#allocation7 + $0x2]] }
  0xa7   : >> { %4770 = sst [smem:[#allocation85_spill]] %s2965_s29  ;;  %s2981_s29 = sld [smem:[#allocation6 + $0x305]] }
  0xa8   : >> { %4764 = sst [smem:[#allocation83_spill]] %s2957_s22  ;;  %s2973_s22 = sld [smem:[#allocation7 + $0x3]] }
  0xa9   : >> { %4772 = sst [smem:[#allocation86_spill]] %s2967_s5  ;;  %s3004_s19 = sld [smem:[#allocation6 + $0x184]] }
  0xaa   : >> { %4777 = sst [smem:[#allocation88_spill]] %s2975_s15  ;;  %s3017_s25 = sld [smem:[#allocation6 + $0x204]] }
  0xab   : >> { %4783 = sst [smem:[#allocation90_spill]] %s2983_s27  ;;  %s3023_s3 = sld [smem:[#allocation6 + $0x284]] }
  0xac   : >> { %4789 = sst [smem:[#allocation93_spill]] %s3002_s0  ;;  %s3025_s10 = sld [smem:[#allocation6 + $0x304]] }
  0xad   : >> { %4781 = sst [smem:[#allocation89_spill]] %s2981_s29  ;;  %s3038_s26 = sld [smem:[#allocation6 + $0x7]] }
  0xae   : >> { %4775 = sst [smem:[#allocation87_spill]] %s2973_s22  ;;  %s3036_s1 = sld [smem:[#allocation6 + $0x384]] }
  0xaf   : >> { %s4786_s22 = sld [smem:[#allocation118_spill]]  ;;  %4790 = sst [smem:[#allocation94_spill]] %s3004_s19 }
  0xb0   : >> { %4792 = sst [smem:[#allocation95_spill]] %s3017_s25  ;;  %s4801_s30 = sld [smem:[#allocation78_spill]] }
  0xb1   : >> { %4794 = sst [smem:[#allocation96_spill]] %s3023_s3  ;;  %s3045_s9 = sld [smem:[#allocation6 + $0x87]] }
  0xb2   : >> { %s3047_s17 = sld [smem:[#allocation6 + $0x107]]  ;;  %s3054_s18 = sld [smem:[#allocation7 + $0x5]] }
  0xb3   : >> { %4799 = sst [smem:[#allocation97_spill]] %s3038_s26  ;;  %s3056_s8 = sld [smem:[#allocation6 + $0x187]] }
  0xb4   : >> { %s3064_s11 = sld [smem:[#allocation6 + $0x207]]  ;;  %s3087_s24 = sld [smem:[#allocation6 + $0x6]] }
  0xb5   : >> { %v2992_v9 = vld [vmem:[%s4786_s22 + $0x1] ss:$8 sm:$0x3]  ;;  %v3013_v10 = vld [vmem:[%s4786_s22] ss:$8 sm:$0x3] }
  0xb6   : >> { %v3034_v13 = vld [vmem:[%s4786_s22 + $0x3] ss:$8 sm:$0x3]  ;;  %s4812_s28 = sld [smem:[#allocation84_spill]]  ;;  %s3095_s23 = sld [smem:[#allocation6 + $0x106]] }
  0xb7   : >> { %4802 = sst [smem:[#allocation78_spill]] %s3045_s9  ;;  %s3066_s5 = sld [smem:[#allocation6 + $0x287]]  ;;  %v3075_v7 = vld [vmem:[%s4786_s22 + $0x2] ss:$8 sm:$0x3] }
  0xb8   : >> { %4804 = sst [smem:[#allocation98_spill]] %s3047_s17  ;;  %s4815_s17 = sld [smem:[#allocation87_spill]]  ;;  %v3106_v63 = vld [vmem:[%s4786_s22 + $0x5] ss:$8 sm:$0x3] }
  0xb9   : >> { %4806 = sst [smem:[#allocation99_spill]] %s3054_s18  ;;  %s3077_s6 = sld [smem:[#allocation6 + $0x307]]  ;;  %v3143_v12 = vld [vmem:[%s4786_s22 + $0x4] ss:$8 sm:$0x3] }
  0xba   : >> { %4807 = sst [smem:[#allocation100_spill]] %s3056_s8  ;;  %s3089_s8 = sld [smem:[#allocation6 + $0x86]] }
  0xbb   : >> { %4811 = sst [smem:[#allocation101_spill]] %s3064_s11  ;;  %s3079_s11 = sld [smem:[#allocation6 + $0x387]] }
  0xbc   : >> { %4817 = sst [smem:[#allocation84_spill]] %s3095_s23  ;;  %s3097_s7 = sld [smem:[#allocation6 + $0x186]] }
  0xbd   : >> { %s3108_s14 = sld [smem:[#allocation7 + $0x4]]  ;;  %s3110_s16 = sld [smem:[#allocation6 + $0x206]] }
  0xbe   : >> { %s3116_s18 = sld [smem:[#allocation6 + $0x286]]  ;;  %s4823_s2 = sld [smem:[#allocation98_spill]] }
  0xbf   : >> { %s3118_s27 = sld [smem:[#allocation6 + $0x306]]  ;;  %s4824_s4 = sld [smem:[#allocation100_spill]] }
  0xc0   : >> { %s4822_s29 = sld [smem:[#allocation99_spill]]  ;;  %s3127_s12 = sld [smem:[#allocation6 + $0x9]] }
  0xc1   : >> { %s3125_s15 = sld [smem:[#allocation6 + $0x386]]  ;;  %s4827_s0 = sld [smem:[#allocation101_spill]] }
  0xc2   : >> { %4818 = sst [smem:[#allocation87_spill]] %s3097_s7  ;;  %s3133_s19 = sld [smem:[#allocation6 + $0x89]] }
  0xc3   : >> { %4819 = sst [smem:[#allocation102_spill]] %s3110_s16  ;;  %s3155_s26 = sld [smem:[#allocation7 + $0x7]] }
  0xc4   : >> { %4820 = sst [smem:[#allocation103_spill]] %s3116_s18  ;;  %s3135_s25 = sld [smem:[#allocation6 + $0x109]] }
  0xc5   : >> { %4821 = sst [smem:[#allocation104_spill]] %s3118_s27  ;;  %s3147_s9 = sld [smem:[#allocation6 + $0x189]] }
  0xc6   : >> { %4826 = sst [smem:[#allocation98_spill]] %s3127_s12  ;;  %s3161_s3 = sld [smem:[#allocation6 + $0x209]] }
  0xc7   : >> { %4825 = sst [smem:[#allocation99_spill]] %s3125_s15  ;;  %s3181_s21 = sld [smem:[#allocation6 + $0x289]] }
  0xc8   : >> { %4828 = sst [smem:[#allocation100_spill]] %s3133_s19  ;;  %s3195_s7 = sld [smem:[#allocation6 + $0x309]] }
  0xc9   : >> { %4831 = sst [smem:[#allocation106_spill]] %s3155_s26  ;;  %s3197_s16 = sld [smem:[#allocation6 + $0x389]] }
  0xca   : >> { %4829 = sst [smem:[#allocation101_spill]] %s3135_s25  ;;  %s3230_s18 = sld [smem:[#allocation7 + $0x6]] }
  0xcb   : >> { %4830 = sst [smem:[#allocation105_spill]] %s3147_s9  ;;  %s3217_s23 = sld [smem:[#allocation6 + $0x8]] }
  0xcc   : >> { %4832 = sst [smem:[#allocation107_spill]] %s3161_s3  ;;  %s3240_s27 = sld [smem:[#allocation6 + $0x88]] }
  0xcd   : >> { %s3242_s25 = sld [smem:[#allocation6 + $0x108]]  ;;  %s4855_s26 = sld [smem:[#allocation33_spill]] }
  0xce   : >> { %4833 = sst [smem:[#allocation108_spill]] %s3195_s7  ;;  %s3251_s9 = sld [smem:[#allocation6 + $0x188]] }
  0xcf   : >> { %4834 = sst [smem:[#allocation109_spill]] %s3197_s16  ;;  %s4858_s7 = sld [smem:[#allocation39_spill]] }
  0xd0   : >> { %s3253_s19 = sld [smem:[#allocation6 + $0x208]]  ;;  %s4869_s15 = sld [smem:[#allocation40_spill]] }
  0xd1   : >> { %4835 = sst [smem:[#allocation110_spill]] %s3217_s23  ;;  %s3262_s12 = sld [smem:[#allocation6 + $0x288]] }
  0xd2   : >> { %s3264_s3 = sld [smem:[#allocation6 + $0x308]]  ;;  %s4867_s23 = sld [smem:[#allocation38_spill]] }
  0xd3   : >> { %s4857_s16 = sld [smem:[#allocation37_spill]] }
  0xd4   : >> { %4836 = sst [smem:[#allocation111_spill]] %s3251_s9  ;;  %s4863_s9 = sld [smem:[#allocation36_spill]] }
  0xd6   : >> { %4837 = sst [smem:[#allocation112_spill]] %s3253_s19  ;;  %s4860_s19 = sld [smem:[#allocation34_spill]] }
  0xe1   : >> { %v450_v5 = vpop.permute.xlu1 %449  ;;  %v442_v6 = vpop.permute.xlu0 %441 }
  0xe2   : >> { %v3172_v3 = vsub.f32 %v524_v22, %v450_v5  ;;  %v3177_v4 = vsub.f32 %v494_v24, %v442_v6  ;;  %v3186_v22 = vsub.f32 %v528_v23, %v450_v5  ;;  %v3191_v24 = vsub.f32 %v498_v25, %v442_v6  ;;  %v3214_v23 = vld [vmem:[%s4786_s22 + $0x7] ss:$8 sm:$0x3] }
  0xe4   : >> { %v533_v2 = vmul.f32 %v3177_v4, %v3177_v4  ;;  %v534_v5 = vmul.f32 %v3191_v24, %v3191_v24  ;;  %v539_v19 = vmul.f32 %v3172_v3, %v3172_v3  ;;  %v540_v11 = vmul.f32 %v3186_v22, %v3186_v22 }
  0xe6   : >> { %v455_v62 = vpop.permute.xlu1 %454  ;;  %v446_v59 = vpop.permute.xlu0 %445 }
  0xe7   : >> { %v3204_v14 = vsub.f32 %v509_v28, %v446_v59  ;;  %v3209_v16 = vsub.f32 %v513_v29, %v446_v59  ;;  %v555_v8 = vmul.f32 %v548_v26, %v455_v62  ;;  %v603_v20 = vmul.f32 %v3177_v4, %v455_v62 }
  0xe9   : >> { %v535_v29 = vmul.f32 %v3204_v14, %v3204_v14  ;;  %v536_v59 = vmul.f32 %v3209_v16, %v3209_v16 }
  0xeb   : >> { %v459_v0 = vpop.permute.xlu1 %458  ;;  %v467_v6 = vpop.permute.xlu0 %466  ;;  %v537_v60 = vadd.f32 %v535_v29, %v533_v2  ;;  %v556_v2 = vmul.f32 %v552_v27, %v455_v62  ;;  %v3275_v27 = vld [vmem:[%s4786_s22 + $0x6] ss:$8 sm:$0x3]  ;;  %s4856_s22 = sld [smem:[#allocation35_spill]] }
  0xec   : >> { %v570_v25 = vmul.f32 %v563_v30, %v459_v0  ;;  %v571_v28 = vmul.f32 %v567_v31, %v459_v0  ;;  %v538_v30 = vadd.f32 %v536_v59, %v534_v5  ;;  %v605_v29 = vmul.f32 %v3204_v14, %v459_v0  ;;  %4838 = vst [vmem:[#allocation113_spill] sm:$0xff] %v3275_v27 }
  0xed   : >> { %v604_v31 = vmul.f32 %v3191_v24, %v455_v62  ;;  %v606_v58 = vmul.f32 %v3209_v16, %v459_v0  ;;  %v613_v26 = vmul.f32 %v3177_v4, %v467_v6  ;;  %v614_v17 = vmul.f32 %v3191_v24, %v467_v6 }
  0xee   : >> { %v572_v57 = vadd.f32 %v570_v25, %v555_v8  ;;  %v573_v55 = vadd.f32 %v571_v28, %v556_v2  ;;  %v3279_v0 = vadd.f32 %v539_v19, %v537_v60  ;;  %v607_v51 = vadd.f32 %v605_v29, %v603_v20 }
  0xef   : >> { %v3284_v54 = vadd.f32 %v540_v11, %v538_v30  ;;  %v608_v59 = vadd.f32 %v606_v58, %v604_v31 }
  0xf0   : >> { %v471_v53 = vpop.permute.xlu1 %470  ;;  %v475_v62 = vpop.permute.xlu0 %474 }
  0xf1   : >> { %v615_v6 = vmul.f32 %v3204_v14, %v471_v53  ;;  %v616_v56 = vmul.f32 %v3209_v16, %v471_v53  ;;  %v619_v2 = vmul.f32 %v3172_v3, %v475_v62  ;;  %v620_v53 = vmul.f32 %v3186_v22, %v475_v62 }
  0xf3   : >> { %v617_v28 = vadd.f32 %v615_v6, %v613_v26  ;;  %v618_v19 = vadd.f32 %v616_v56, %v614_v17 }
  0xf5   : >> { %v621_v20 = vadd.f32 %v619_v2, %v617_v28  ;;  %v622_v31 = vadd.f32 %v620_v53, %v618_v19  ;;  %v463_v56 = vpop.permute.xlu1 %462  ;;  %v487_v58 = vpop.permute.xlu0 %486 }
  0xf6   : >> { %v587_v62 = vmul.f32 %v580_v34, %v463_v56  ;;  %v588_v6 = vmul.f32 %v584_v38, %v463_v56  ;;  %v609_v28 = vmul.f32 %v3172_v3, %v463_v56  ;;  %v610_v19 = vmul.f32 %v3186_v22, %v463_v56 }
  0xf7   : >> { %v639_v2 = vmul.f32 %v638_v32, %v621_v20  ;;  %v640_v53 = vmul.f32 %v638_v32, %v622_v31  ;;  %v661_v17 = vmul.f32 %v660_v33, %v621_v20  ;;  %v662_v34 = vmul.f32 %v660_v33, %v622_v31 }
  0xf8   : >> { %v683_v26 = vmul.f32 %v682_v35, %v621_v20  ;;  %v684_v21 = vmul.f32 %v682_v35, %v622_v31  ;;  %v705_v38 = vmul.f32 %v704_v36, %v621_v20  ;;  %v706_v29 = vmul.f32 %v704_v36, %v622_v31 }
  0xf9   : >> { %v727_v56 = vmul.f32 %v726_v37, %v621_v20  ;;  %v728_v30 = vmul.f32 %v726_v37, %v622_v31  ;;  %v749_v60 = vmul.f32 %v748_v39, %v621_v20  ;;  %v3331_v32 = vmul.f32 %v748_v39, %v622_v31 }
  0xfa   : >> { %v3335_v33 = vmul.f32 %v770_v40, %v621_v20  ;;  %v3339_v35 = vmul.f32 %v770_v40, %v622_v31  ;;  %v3343_v36 = vmul.f32 %v792_v41, %v621_v20  ;;  %v3347_v37 = vmul.f32 %v792_v41, %v622_v31  ;;  %v479_v39 = vpop.permute.xlu1 %478 }
  0xfb   : >> { %v589_v25 = vadd.f32 %v587_v62, %v572_v57  ;;  %v590_v11 = vadd.f32 %v588_v6, %v573_v55  ;;  %v611_v61 = vadd.f32 %v609_v28, %v607_v51  ;;  %v612_v5 = vadd.f32 %v610_v19, %v608_v59 }
  0xfc   : >> { %v629_v40 = vmul.f32 %v3172_v3, %v487_v58  ;;  %v630_v8 = vmul.f32 %v3186_v22, %v487_v58  ;;  %v623_v20 = vmul.f32 %v3177_v4, %v479_v39  ;;  %v624_v41 = vmul.f32 %v3191_v24, %v479_v39 }
  0xfd   : >> { %v591_v31 = vsub.f32 2.0, %v589_v25  ;;  %v592_v52 = vsub.f32 2.0, %v590_v11  ;;  %v635_v55 = vmul.f32 %v634_v42, %v611_v61  ;;  %v636_v51 = vmul.f32 %v634_v42, %v612_v5 }
  0xfe   : >> { %v657_v57 = vmul.f32 %v656_v43, %v611_v61  ;;  %v658_v3 = vmul.f32 %v656_v43, %v612_v5  ;;  %v679_v4 = vmul.f32 %v678_v44, %v611_v61  ;;  %v680_v22 = vmul.f32 %v678_v44, %v612_v5 }
  0xff   : >> { %v593_v24 = vmul.f32 %v591_v31, %v591_v31  ;;  %v594_v59 = vmul.f32 %v592_v52, %v592_v52  ;;  %v701_v25 = vmul.f32 %v700_v45, %v611_v61  ;;  %v702_v11 = vmul.f32 %v700_v45, %v612_v5  ;;  %v483_v58 = vpop.permute.xlu1 %482 }
 0x100   : >> { %v723_v42 = vmul.f32 %v722_v46, %v611_v61  ;;  %v724_v62 = vmul.f32 %v722_v46, %v612_v5  ;;  %v745_v6 = vmul.f32 %v744_v47, %v611_v61  ;;  %v3377_v43 = vmul.f32 %v744_v47, %v612_v5 }
 0x101   : >> { %v595_v28 = vmul.f32 %v593_v24, %v3279_v0  ;;  %v596_v44 = vmul.f32 %v594_v59, %v3284_v54  ;;  %v3383_v52 = vmul.f32 %v766_v48, %v611_v61  ;;  %v3387_v19 = vmul.f32 %v766_v48, %v612_v5 }
 0x102   : >> { %v3391_v45 = vmul.f32 %v788_v49, %v611_v61  ;;  %v3395_v46 = vmul.f32 %v788_v49, %v612_v5  ;;  %v625_v39 = vmul.f32 %v3204_v14, %v483_v58  ;;  %v626_v47 = vmul.f32 %v3209_v16, %v483_v58 }
 0x103   : >> { %v597_v31 = vsub.f32 0.0, %v595_v28  ;;  %v598_v0 = vsub.f32 0.0, %v596_v44  ;;  %v641_v24 = vadd.f32 %v639_v2, %v635_v55  ;;  %v642_v54 = vadd.f32 %v640_v53, %v636_v51 }
 0x104   : >> { %v627_v59 = vadd.f32 %v625_v39, %v623_v20  ;;  %v628_v50 = vadd.f32 %v626_v47, %v624_v41  ;;  %v663_v1 = vadd.f32 %v661_v17, %v657_v57  ;;  %v664_v48 = vadd.f32 %v662_v34, %v658_v3 }
 0x105   : >> { %v599_v61 = vmul.f32 1.442695, %v597_v31  ;;  %v601_v27 = vmul.f32 1.442695, %v598_v0  ;;  %v685_v49 = vadd.f32 %v683_v26, %v679_v4  ;;  %v686_v14 = vadd.f32 %v684_v21, %v680_v22 }
 0x106   : >> { %v3399_v16 = vadd.f32 %v629_v40, %v627_v59  ;;  %v3401_v5 = vadd.f32 %v630_v8, %v628_v50  ;;  %v707_v2 = vadd.f32 %v705_v38, %v701_v25  ;;  %v708_v53 = vadd.f32 %v706_v29, %v702_v11 }
 0x107   : >> { %2438 = vpow2.f32 %v599_v61  ;;  %v729_v17 = vadd.f32 %v727_v56, %v723_v42  ;;  %v730_v20 = vadd.f32 %v728_v30, %v724_v62  ;;  %v751_v34 = vadd.f32 %v749_v60, %v745_v6 }
 0x108   : >> { %2440 = vpow2.f32 %v601_v27  ;;  %v4859_v41 = vstv %s4855_s26  ;;  %v4862_v40 = vstv %s4856_s22  ;;  %v4865_v38 = vstv %s4857_s16  ;;  %s4874_s26 = sld [smem:[#allocation41_spill]]  ;;  %s4878_s22 = sld [smem:[#allocation43_spill]] }
 0x109   : >> { %v645_v55 = vmul.f32 %v4859_v41, %v3399_v16  ;;  %v4861_v26 = vmov %v4859_v41  ;;  %v667_v50 = vmul.f32 %v4862_v40, %v3399_v16  ;;  %v4864_v8 = vmov %v4862_v40  ;;  %s4881_s16 = sld [smem:[#allocation45_spill]] }
 0x10a   : >> { %v646_v21 = vmul.f32 %v4861_v26, %v3401_v5  ;;  %v668_v29 = vmul.f32 %v4864_v8, %v3401_v5  ;;  %v689_v60 = vmul.f32 %v4865_v38, %v3399_v16  ;;  %v4866_v27 = vmov %v4865_v38 }
 0x10b   : >> { %v690_v30 = vmul.f32 %v4866_v27, %v3401_v5  ;;  %v4868_v56 = vstv %s4858_s7  ;;  %v647_v57 = vadd.f32 %v645_v55, %v641_v24  ;;  %v669_v4 = vadd.f32 %v667_v50, %v663_v1  ;;  %s4884_s7 = sld [smem:[#allocation42_spill]] }
 0x10c   : >> { %v711_v51 = vmul.f32 %v4868_v56, %v3399_v16  ;;  %v648_v3 = vadd.f32 %v646_v21, %v642_v54  ;;  %v4870_v22 = vmov %v4868_v56  ;;  %v670_v11 = vadd.f32 %v668_v29, %v664_v48 }
 0x10d   : >> { %v712_v25 = vmul.f32 %v4870_v22, %v3401_v5  ;;  %v691_v58 = vadd.f32 %v689_v60, %v685_v49  ;;  %v692_v42 = vadd.f32 %v690_v30, %v686_v14  ;;  %v4871_v6 = vstv %s4860_s19  ;;  %s4887_s19 = sld [smem:[#allocation44_spill]] }
 0x10e   : >> { %v713_v62 = vadd.f32 %v711_v51, %v707_v2  ;;  %v651_v28 = vadd.f32 %v4871_v6, %v647_v57  ;;  %v4872_v44 = vmov %v4871_v6  ;;  %v4873_v47 = vstv %s4863_s9  ;;  %s4888_s9 = sld [smem:[#allocation47_spill]] }
 0x10f   : >> { %v652_v39 = vadd.f32 %v4872_v44, %v648_v3  ;;  %v673_v31 = vadd.f32 %v4873_v47, %v669_v4  ;;  %v714_v0 = vadd.f32 %v712_v25, %v708_v53  ;;  %v4875_v24 = vmov %v4873_v47 }
 0x110   : >> { %v674_v54 = vadd.f32 %v4875_v24, %v670_v11  ;;  %v4876_v1 = vstv %s4867_s23  ;;  %v4879_v48 = vstv %s4869_s15  ;;  %v3441_v14 = vmax.f32 %v651_v28, 0.0  ;;  %s4891_s23 = sld [smem:[#allocation46_spill]]  ;;  %s4894_s15 = sld [smem:[#allocation49_spill]] }
 0x111   : >> { %v695_v59 = vadd.f32 %v4876_v1, %v691_v58  ;;  %v4877_v61 = vmov %v4876_v1  ;;  %v717_v49 = vadd.f32 %v4879_v48, %v713_v62  ;;  %v3443_v2 = vmax.f32 %v652_v39, 0.0  ;;  %v3467_v51 = vpop.eup %2438 }
 0x112   : >> { %v696_v41 = vadd.f32 %v4877_v61, %v692_v42  ;;  %v3445_v55 = vmax.f32 %v673_v31, 0.0  ;;  %v4880_v26 = vmov %v4879_v48  ;;  %v3449_v40 = vmax.f32 %v674_v54, 0.0  ;;  %v3479_v58 = vpop.eup %2440 }
 0x113   : >> { %v718_v21 = vadd.f32 %v4880_v26, %v714_v0  ;;  %v3451_v53 = vmax.f32 %v695_v59, 0.0  ;;  %v3455_v8 = vmax.f32 %v717_v49, 0.0  ;;  %v4882_v38 = vstv %s4874_s26  ;;  %s4897_s26 = sld [smem:[#allocation48_spill]] }
 0x114   : >> { %v3453_v50 = vmax.f32 %v696_v41, 0.0  ;;  %v733_v60 = vmul.f32 %v4882_v38, %v3399_v16  ;;  %v4883_v27 = vmov %v4882_v38  ;;  %v752_v56 = vadd.f32 %v3331_v32, %v3377_v43 }
 0x115   : >> { %v3457_v29 = vmax.f32 %v718_v21, 0.0  ;;  %v734_v30 = vmul.f32 %v4883_v27, %v3401_v5  ;;  %v4885_v57 = vstv %s4878_s22  ;;  %v773_v25 = vadd.f32 %v3335_v33, %v3383_v52  ;;  %s4900_s22 = sld [smem:[#allocation50_spill]] }
 0x116   : >> { %v755_v3 = vmul.f32 %v4885_v57, %v3399_v16  ;;  %v4886_v4 = vmov %v4885_v57  ;;  %v774_v11 = vadd.f32 %v3339_v35, %v3387_v19  ;;  %v735_v32 = vadd.f32 %v733_v60, %v729_v17 }
 0x117   : >> { %v756_v22 = vmul.f32 %v4886_v4, %v3401_v5  ;;  %v736_v43 = vadd.f32 %v734_v30, %v730_v20  ;;  %v4889_v42 = vstv %s4881_s16  ;;  %v795_v52 = vadd.f32 %v3343_v36, %v3391_v45  ;;  %s4901_s16 = sld [smem:[#allocation51_spill]] }
 0x118   : >> { %v777_v62 = vmul.f32 %v4889_v42, %v3399_v16  ;;  %v4890_v6 = vmov %v4889_v42  ;;  %v757_v44 = vadd.f32 %v755_v3, %v751_v34  ;;  %v796_v35 = vadd.f32 %v3347_v37, %v3395_v46 }
 0x119   : >> { %v778_v28 = vmul.f32 %v4890_v6, %v3401_v5  ;;  %v758_v33 = vadd.f32 %v756_v22, %v752_v56  ;;  %v4892_v19 = vstv %s4884_s7  ;;  %v4895_v0 = vstv %s4887_s19  ;;  %s4904_s7 = sld [smem:[#allocation52_spill]]  ;;  %s4905_s19 = sld [smem:[#allocation53_spill]] }
 0x11a   : >> { %v739_v39 = vadd.f32 %v4892_v19, %v735_v32  ;;  %v4893_v17 = vmov %v4892_v19  ;;  %v779_v47 = vadd.f32 %v777_v62, %v773_v25  ;;  %v761_v24 = vadd.f32 %v4895_v0, %v757_v44 }
 0x11b   : >> { %v740_v20 = vadd.f32 %v4893_v17, %v736_v43  ;;  %v780_v31 = vadd.f32 %v778_v28, %v774_v11  ;;  %v4896_v54 = vmov %v4895_v0  ;;  %v4898_v1 = vstv %s4888_s9  ;;  %s4908_s9 = sld [smem:[#allocation54_spill]] }
 0x11c   : >> { %v762_v34 = vadd.f32 %v4896_v54, %v758_v33  ;;  %v799_v36 = vmul.f32 %v4898_v1, %v3399_v16  ;;  %v4899_v45 = vmov %v4898_v1  ;;  %v3505_v46 = vmax.f32 %v739_v39, 0.0 }
 0x11d   : >> { %v800_v37 = vmul.f32 %v4899_v45, %v3401_v5  ;;  %v3507_v59 = vmax.f32 %v740_v20, 0.0  ;;  %v4902_v61 = vstv %s4891_s23  ;;  %v3513_v26 = vmax.f32 %v761_v24, 0.0  ;;  %s4913_s23 = sld [smem:[#allocation55_spill]] }
 0x11e   : >> { %v783_v41 = vadd.f32 %v4902_v61, %v779_v47  ;;  %v4903_v48 = vmov %v4902_v61  ;;  %v3515_v16 = vmax.f32 %v762_v34, 0.0  ;;  %v801_v21 = vadd.f32 %v799_v36, %v795_v52 }
 0x11f   : >> { %v784_v49 = vadd.f32 %v4903_v48, %v780_v31  ;;  %v802_v38 = vadd.f32 %v800_v37, %v796_v35  ;;  %v4906_v27 = vstv %s4894_s15  ;;  %v4909_v3 = vstv %s4897_s26  ;;  %s4916_s15 = sld [smem:[#allocation56_spill]]  ;;  %s4919_s26 = sld [smem:[#allocation57_spill]] }
 0x120   : >> { %v3517_v5 = vmax.f32 %v783_v41, 0.0  ;;  %v885_v30 = vmul.f32 %v4906_v27, %v3441_v14  ;;  %v4907_v56 = vmov %v4906_v27  ;;  %v805_v4 = vadd.f32 %v4909_v3, %v801_v21 }
 0x121   : >> { %v3519_v60 = vmax.f32 %v784_v49, 0.0  ;;  %v886_v57 = vmul.f32 %v4907_v56, %v3443_v2  ;;  %v4910_v22 = vmov %v4909_v3  ;;  %v4911_v11 = vstv %s4900_s22  ;;  %s4920_s22 = sld [smem:[#allocation58_spill]] }
 0x122   : >> { %v806_v25 = vadd.f32 %v4910_v22, %v802_v38  ;;  %v889_v32 = vmul.f32 %v4911_v11, %v3445_v55  ;;  %v4912_v43 = vmov %v4911_v11  ;;  %v4914_v62 = vstv %s4901_s16  ;;  %s4923_s16 = sld [smem:[#allocation59_spill]] }
 0x123   : >> { %v890_v42 = vmul.f32 %v4912_v43, %v3449_v40  ;;  %v895_v6 = vmul.f32 %v4914_v62, %v3451_v53  ;;  %v4915_v28 = vmov %v4914_v62  ;;  %v4917_v33 = vstv %s4904_s7  ;;  %s4926_s7 = sld [smem:[#allocation60_spill]] }
 0x124   : >> { %v896_v44 = vmul.f32 %v4915_v28, %v3453_v50  ;;  %v901_v52 = vmul.f32 %v4917_v33, %v3455_v8  ;;  %v4918_v35 = vmov %v4917_v33  ;;  %v3549_v39 = vmax.f32 %v805_v4, 0.0 }
 0x125   : >> { %v902_v19 = vmul.f32 %v4918_v35, %v3457_v29  ;;  %v3551_v17 = vmax.f32 %v806_v25, 0.0  ;;  %v891_v20 = vadd.f32 %v889_v32, %v885_v30  ;;  %v892_v47 = vadd.f32 %v890_v42, %v886_v57 }
 0x126   : >> { %v4921_v31 = vstv %s4905_s19  ;;  %v4924_v34 = vstv %s4908_s9  ;;  %v4927_v41 = vstv %s4913_s23  ;;  %v4929_v38 = vstv %s4916_s15  ;;  %s4931_s19 = sld [smem:[#allocation61_spill]]  ;;  %s4934_s9 = sld [smem:[#allocation62_spill]] }
 0x127   : >> { %v907_v0 = vmul.f32 %v4921_v31, %v3505_v46  ;;  %v4922_v24 = vmov %v4921_v31  ;;  %v913_v1 = vmul.f32 %v4924_v34, %v3513_v26  ;;  %v4925_v36 = vmov %v4924_v34  ;;  %s4939_s23 = sld [smem:[#allocation63_spill]]  ;;  %s4942_s15 = sld [smem:[#allocation64_spill]] }
 0x128   : >> { %v908_v54 = vmul.f32 %v4922_v24, %v3507_v59  ;;  %v914_v45 = vmul.f32 %v4925_v36, %v3515_v16  ;;  %v897_v37 = vadd.f32 %v895_v6, %v891_v20  ;;  %v898_v61 = vadd.f32 %v896_v44, %v892_v47 }
 0x129   : >> { %v919_v48 = vmul.f32 %v4927_v41, %v3517_v5  ;;  %v4928_v49 = vmov %v4927_v41  ;;  %v925_v27 = vmul.f32 %v4929_v38, %v3549_v39  ;;  %v4930_v30 = vmov %v4929_v38 }
 0x12a   : >> { %v920_v21 = vmul.f32 %v4928_v49, %v3519_v60  ;;  %v926_v56 = vmul.f32 %v4930_v30, %v3551_v17  ;;  %v4932_v57 = vstv %s4919_s26  ;;  %v903_v25 = vadd.f32 %v901_v52, %v897_v37  ;;  %s4945_s26 = sld [smem:[#allocation65_spill]] }
 0x12b   : >> { %v811_v3 = vmul.f32 %v4932_v57, %v3441_v14  ;;  %v4933_v4 = vmov %v4932_v57  ;;  %v904_v11 = vadd.f32 %v902_v19, %v898_v61  ;;  %v4935_v32 = vstv %s4920_s22  ;;  %s4948_s22 = sld [smem:[#allocation66_spill]] }
 0x12c   : >> { %v812_v22 = vmul.f32 %v4933_v4, %v3443_v2  ;;  %v815_v43 = vmul.f32 %v4935_v32, %v3445_v55  ;;  %v4936_v42 = vmov %v4935_v32  ;;  %v4937_v6 = vstv %s4923_s16  ;;  %s4953_s16 = sld [smem:[#allocation67_spill]] }
 0x12d   : >> { %v816_v62 = vmul.f32 %v4936_v42, %v3449_v40  ;;  %v821_v28 = vmul.f32 %v4937_v6, %v3451_v53  ;;  %v4938_v44 = vmov %v4937_v6  ;;  %v4940_v35 = vstv %s4926_s7  ;;  %s4954_s7 = sld [smem:[#allocation70_spill]] }
 0x12e   : >> { %v822_v33 = vmul.f32 %v4938_v44, %v3453_v50  ;;  %v827_v20 = vmul.f32 %v4940_v35, %v3455_v8  ;;  %v4941_v52 = vmov %v4940_v35  ;;  %v909_v47 = vadd.f32 %v907_v0, %v903_v25 }
 0x12f   : >> { %v828_v19 = vmul.f32 %v4941_v52, %v3457_v29  ;;  %v910_v31 = vadd.f32 %v908_v54, %v904_v11  ;;  %v817_v24 = vadd.f32 %v815_v43, %v811_v3  ;;  %v818_v34 = vadd.f32 %v816_v62, %v812_v22 }
 0x130   : >> { %v4943_v36 = vstv %s4931_s19  ;;  %v4946_v49 = vstv %s4934_s9  ;;  %v915_v0 = vadd.f32 %v913_v1, %v909_v47  ;;  %v4949_v22 = vstv %s4939_s23  ;;  %s4959_s19 = sld [smem:[#allocation68_spill]]  ;;  %s4962_s9 = sld [smem:[#allocation69_spill]] }
 0x131   : >> { %v833_v37 = vmul.f32 %v4943_v36, %v3505_v46  ;;  %v4944_v61 = vmov %v4943_v36  ;;  %v839_v38 = vmul.f32 %v4946_v49, %v3513_v26  ;;  %v4947_v30 = vmov %v4946_v49  ;;  %s4967_s23 = sld [smem:[#allocation71_spill]] }
 0x132   : >> { %v834_v41 = vmul.f32 %v4944_v61, %v3507_v59  ;;  %v840_v57 = vmul.f32 %v4947_v30, %v3515_v16  ;;  %v916_v54 = vadd.f32 %v914_v45, %v910_v31  ;;  %v823_v3 = vadd.f32 %v821_v28, %v817_v24 }
 0x133   : >> { %v824_v4 = vadd.f32 %v822_v33, %v818_v34  ;;  %v845_v25 = vmul.f32 %v4949_v22, %v3517_v5  ;;  %v4950_v11 = vmov %v4949_v22  ;;  %v4951_v43 = vstv %s4942_s15  ;;  %s4968_s15 = sld [smem:[#allocation76_spill]] }
 0x134   : >> { %v846_v32 = vmul.f32 %v4950_v11, %v3519_v60  ;;  %v851_v42 = vmul.f32 %v4951_v43, %v3549_v39  ;;  %v4952_v62 = vmov %v4951_v43  ;;  %v921_v44 = vadd.f32 %v919_v48, %v915_v0 }
 0x135   : >> { %v852_v6 = vmul.f32 %v4952_v62, %v3551_v17  ;;  %v922_v1 = vadd.f32 %v920_v21, %v916_v54  ;;  %v829_v45 = vadd.f32 %v827_v20, %v823_v3  ;;  %v830_v28 = vadd.f32 %v828_v19, %v824_v4 }
 0x136   : >> { %v4955_v33 = vstv %s4945_s26  ;;  %v4957_v31 = vstv %s4948_s22  ;;  %v927_v48 = vadd.f32 %v925_v27, %v921_v44  ;;  %v4960_v30 = vstv %s4953_s16  ;;  %s4971_s26 = sld [smem:[#allocation72_spill]]  ;;  %s4972_s22 = sld [smem:[#allocation73_spill]] }
 0x137   : >> { %v1037_v35 = vmul.f32 %v4955_v33, %v3441_v14  ;;  %v4956_v52 = vmov %v4955_v33  ;;  %v1041_v24 = vmul.f32 %v4957_v31, %v3445_v55  ;;  %v4958_v34 = vmov %v4957_v31  ;;  %s4976_s16 = sld [smem:[#allocation74_spill]] }
 0x138   : >> { %v1038_v47 = vmul.f32 %v4956_v52, %v3443_v2  ;;  %v1042_v36 = vmul.f32 %v4958_v34, %v3449_v40  ;;  %v928_v61 = vadd.f32 %v926_v56, %v922_v1  ;;  %v835_v21 = vadd.f32 %v833_v37, %v829_v45 }
 0x139   : >> { %v836_v49 = vadd.f32 %v834_v41, %v830_v28  ;;  %v1043_v20 = vadd.f32 %v1041_v24, %v1037_v35  ;;  %v1047_v0 = vmul.f32 %v4960_v30, %v3451_v53  ;;  %v4961_v54 = vmov %v4960_v30 }
 0x13a   : >> { %v1044_v19 = vadd.f32 %v1042_v36, %v1038_v47  ;;  %v1048_v3 = vmul.f32 %v4961_v54, %v3453_v50  ;;  %v4963_v4 = vstv %s4954_s7  ;;  %v841_v62 = vadd.f32 %v839_v38, %v835_v21  ;;  %s4980_s7 = sld [smem:[#allocation75_spill]] }
 0x13b   : >> { %v931_v22 = vadd.f32 %v4963_v4, %v927_v48  ;;  %v4964_v11 = vmov %v4963_v4  ;;  %v842_v33 = vadd.f32 %v840_v57, %v836_v49  ;;  %v1049_v27 = vadd.f32 %v1047_v0, %v1043_v20 }
 0x13c   : >> { %v932_v43 = vadd.f32 %v4964_v11, %v928_v61  ;;  %v1050_v56 = vadd.f32 %v1048_v3, %v1044_v19  ;;  %v4965_v37 = vstv %s4959_s19  ;;  %v847_v35 = vadd.f32 %v845_v25, %v841_v62  ;;  %s4983_s19 = sld [smem:[#allocation77_spill]] }
 0x13d   : >> { %v1053_v41 = vmul.f32 %v4965_v37, %v3455_v8  ;;  %v4966_v44 = vmov %v4965_v37  ;;  %v933_v45 = vmax.f32 %v931_v22, 0.0  ;;  %v848_v52 = vadd.f32 %v846_v32, %v842_v33 }
 0x13e   : >> { %v1054_v1 = vmul.f32 %v4966_v44, %v3457_v29  ;;  %v934_v28 = vmax.f32 %v932_v43, 0.0  ;;  %v4969_v38 = vstv %s4962_s9  ;;  %v853_v61 = vadd.f32 %v851_v42, %v847_v35  ;;  %s4994_s9 = sld [smem:[#allocation79_spill]] }
 0x13f   : >> { %v1055_v47 = vadd.f32 %v1053_v41, %v1049_v27  ;;  %v1059_v57 = vmul.f32 %v4969_v38, %v3505_v46  ;;  %v4970_v24 = vmov %v4969_v38  ;;  %v935_v36 = vmul.f32 %v3467_v51, %v933_v45 }
 0x140   : >> { %v1056_v31 = vadd.f32 %v1054_v1, %v1050_v56  ;;  %v1060_v34 = vmul.f32 %v4970_v24, %v3507_v59  ;;  %v936_v48 = vmul.f32 %v3479_v58, %v934_v28  ;;  %v854_v21 = vadd.f32 %v852_v6, %v848_v52 }
 0x141   : >> { %v1061_v25 = vadd.f32 %v1059_v57, %v1055_v47  ;;  %v4973_v49 = vstv %s4967_s23  ;;  %v4975_v0 = vrot.slane %v2992_v9, %v2835_v15  ;;  %v4977_v3 = vrot.slane %v2992_v9, %v2851_v18  ;;  %s4997_s23 = sld [smem:[#allocation80_spill]] }
 0x142   : >> { %v1062_v32 = vadd.f32 %v1060_v34, %v1056_v31  ;;  %v1065_v20 = vmul.f32 %v4973_v49, %v3513_v26  ;;  %v4974_v19 = vmov %v4973_v49  ;;  %v4978_v6 = vstv %s4968_s15  ;;  %s5001_s15 = sld [smem:[#allocation81_spill]] }
 0x143   : >> { %v1066_v30 = vmul.f32 %v4974_v19, %v3515_v16  ;;  %v950_v54 = vmul.f32 %v4975_v0, %v935_v36  ;;  %v951_v42 = vmul.f32 %v4977_v3, %v936_v48  ;;  %v857_v4 = vadd.f32 %v4978_v6, %v853_v61 }
 0x144   : >> { %v4979_v22 = vmov %v4978_v6  ;;  %v1067_v43 = vadd.f32 %v1065_v20, %v1061_v25  ;;  %v4981_v33 = vstv %s4971_s26  ;;  %v4984_v1 = vstv %s4972_s22  ;;  %s5002_s26 = sld [smem:[#allocation82_spill]]  ;;  %s5018_s22 = sld [smem:[#allocation88_spill]] }
 0x145   : >> { %v858_v11 = vadd.f32 %v4979_v22, %v854_v21  ;;  %v1068_v62 = vadd.f32 %v1066_v30, %v1062_v32  ;;  %v1071_v27 = vmul.f32 %v4981_v33, %v3517_v5  ;;  %v4982_v56 = vmov %v4981_v33 }
 0x146   : >> { %v1072_v37 = vmul.f32 %v4982_v56, %v3519_v60  ;;  %v952_v41 = vadd.f32 %v951_v42, %v950_v54  ;;  %v859_v44 = vmax.f32 %v857_v4, 0.0  ;;  %v1077_v45 = vmul.f32 %v4984_v1, %v3549_v39 }
 0x147   : >> { %v860_v9 = vmax.f32 %v858_v11, 0.0  ;;  %v1073_v28 = vadd.f32 %v1071_v27, %v1067_v43  ;;  %v4985_v52 = vmov %v4984_v1  ;;  %v4986_v31 = vstv %s4976_s16  ;;  %s5023_s16 = sld [smem:[#allocation89_spill]] }
 0x148   : >> { %v1074_v35 = vadd.f32 %v1072_v37, %v1068_v62  ;;  %v1078_v47 = vmul.f32 %v4985_v52, %v3551_v17  ;;  %v961_v38 = vmul.f32 %v4986_v31, %v3441_v14  ;;  %953 = vadd.xlane.f32.xlu0 %v952_v41  ;;  %v861_v57 = vmul.f32 %v3467_v51, %v859_v44 }
 0x149   : >> { %v862_v24 = vmul.f32 %v3479_v58, %v860_v9  ;;  %v4987_v34 = vmov %v4986_v31  ;;  %v4988_v48 = vstv %s4980_s7  ;;  %v1079_v21 = vadd.f32 %v1077_v45, %v1073_v28  ;;  %s5024_s7 = sld [smem:[#allocation90_spill]] }
 0x14a   : >> { %v962_v36 = vmul.f32 %v4987_v34, %v3443_v2  ;;  %v965_v61 = vmul.f32 %v4988_v48, %v3445_v55  ;;  %v1080_v25 = vadd.f32 %v1078_v47, %v1074_v35  ;;  %v4989_v32 = vmov %v4988_v48 }
 0x14b   : >> { %v966_v49 = vmul.f32 %v4989_v32, %v3449_v40  ;;  %v4990_v20 = vstv %s4983_s19  ;;  %v4991_v30 = vrot.slane %v3013_v10, %v2835_v15  ;;  %v4992_v54 = vrot.slane %v3013_v10, %v2851_v18  ;;  %s5030_s19 = sld [smem:[#allocation92_spill]] }
 0x14c   : >> { %v971_v19 = vmul.f32 %v4990_v20, %v3451_v53  ;;  %v967_v42 = vadd.f32 %v965_v61, %v961_v38  ;;  %v4993_v6 = vmov %v4990_v20  ;;  %v4995_v22 = vstv %s4815_s17  ;;  %s5016_s17 = sld [smem:[#allocation86_spill]] }
 0x14d   : >> { %v875_v0 = vmul.f32 %v4991_v30, %v861_v57  ;;  %v876_v3 = vmul.f32 %v4992_v54, %v862_v24  ;;  %v972_v4 = vmul.f32 %v4993_v6, %v3453_v50  ;;  %v1083_v11 = vadd.f32 %v4995_v22, %v1079_v21 }
 0x14e   : >> { %v4996_v43 = vmov %v4995_v22  ;;  %v968_v33 = vadd.f32 %v966_v49, %v962_v36  ;;  %v4998_v27 = vstv %s2933_s13  ;;  %v973_v41 = vadd.f32 %v971_v19, %v967_v42  ;;  %s5006_s13 = sld [smem:[#allocation83_spill]] }
 0x14f   : >> { %v1084_v62 = vadd.f32 %v4996_v43, %v1080_v25  ;;  %v977_v56 = vmul.f32 %v4998_v27, %v3455_v8  ;;  %v877_v37 = vadd.f32 %v876_v3, %v875_v0  ;;  %v4999_v10 = vmov %v4998_v27 }
 0x150   : >> { %v978_v44 = vmul.f32 %v4999_v10, %v3457_v29  ;;  %v5000_v9 = vstv %s4801_s30  ;;  %v1085_v45 = vmax.f32 %v1083_v11, 0.0  ;;  %v974_v35 = vadd.f32 %v972_v4, %v968_v33  ;;  %s5009_s30 = sld [smem:[#allocation85_spill]] }
 0x151   : >> { %v983_v1 = vmul.f32 %v5000_v9, %v3505_v46  ;;  %v1086_v28 = vmax.f32 %v1084_v62, 0.0  ;;  %v5003_v52 = vmov %v5000_v9  ;;  %878 = vadd.xlane.f32.xlu1 %v877_v37  ;;  %v979_v31 = vadd.f32 %v977_v56, %v973_v41 }
 0x152   : >> { %v984_v47 = vmul.f32 %v5003_v52, %v3507_v59  ;;  %v5004_v38 = vstv %s4994_s9  ;;  %v5007_v36 = vstv %s4997_s23  ;;  %v1087_v61 = vmul.f32 %v3467_v51, %v1085_v45  ;;  %s5035_s9 = sld [smem:[#allocation93_spill]] }
 0x153   : >> { %v989_v57 = vmul.f32 %v5004_v38, %v3513_v26  ;;  %v5005_v24 = vmov %v5004_v38  ;;  %v995_v48 = vmul.f32 %v5007_v36, %v3517_v5  ;;  %v1088_v21 = vmul.f32 %v3479_v58, %v1086_v28  ;;  %s3802_s23 = sld [smem:[#allocation6 + $0x388]] }
 0x154   : >> { %v990_v34 = vmul.f32 %v5005_v24, %v3515_v16  ;;  %v980_v25 = vadd.f32 %v978_v44, %v974_v35  ;;  %v5008_v32 = vmov %v5007_v36  ;;  %v985_v20 = vadd.f32 %v983_v1, %v979_v31 }
 0x155   : >> { %v996_v49 = vmul.f32 %v5008_v32, %v3519_v60  ;;  %v5010_v19 = vstv %s5001_s15  ;;  %v5012_v3 = vstv %s5002_s26  ;;  %v5013_v6 = vrot.slane %v3034_v13, %v2835_v15  ;;  %s5042_s15 = sld [smem:[#allocation94_spill]]  ;;  %s5049_s26 = sld [smem:[#allocation96_spill]] }
 0x156   : >> { %v1001_v30 = vmul.f32 %v5010_v19, %v3549_v39  ;;  %v5011_v0 = vmov %v5010_v19  ;;  %v1189_v42 = vmul.f32 %v5012_v3, %v3441_v14  ;;  %v5014_v22 = vrot.slane %v3034_v13, %v2851_v18 }
 0x157   : >> { %v1002_v54 = vmul.f32 %v5011_v0, %v3551_v17  ;;  %v1102_v4 = vmul.f32 %v5013_v6, %v1087_v61  ;;  %v986_v43 = vadd.f32 %v984_v47, %v980_v25  ;;  %v5015_v62 = vmov %v5012_v3 }
 0x158   : >> { %v1103_v11 = vmul.f32 %v5014_v22, %v1088_v21  ;;  %v1190_v33 = vmul.f32 %v5015_v62, %v3443_v2  ;;  %v991_v27 = vadd.f32 %v989_v57, %v985_v20  ;;  %v5017_v56 = vstv %s5006_s13  ;;  %s5053_s13 = sld [smem:[#allocation97_spill]] }
 0x159   : >> { %v1193_v37 = vmul.f32 %v5017_v56, %v3445_v55  ;;  %v5019_v41 = vmov %v5017_v56  ;;  %v5020_v44 = vstv %s4812_s28  ;;  %v992_v13 = vadd.f32 %v990_v34, %v986_v43  ;;  %s5029_s28 = sld [smem:[#allocation91_spill]] }
 0x15a   : >> { %v1194_v10 = vmul.f32 %v5019_v41, %v3449_v40  ;;  %v1199_v9 = vmul.f32 %v5020_v44, %v3451_v53  ;;  %v1104_v1 = vadd.f32 %v1103_v11, %v1102_v4  ;;  %v5021_v45 = vmov %v5020_v44 }
 0x15b   : >> { %v1200_v28 = vmul.f32 %v5021_v45, %v3453_v50  ;;  %v5022_v35 = vstv %s5009_s30  ;;  %v997_v47 = vadd.f32 %v995_v48, %v991_v27  ;;  %v1195_v31 = vadd.f32 %v1193_v37, %v1189_v42  ;;  %s5058_s30 = sld [smem:[#allocation78_spill]] }
 0x15c   : >> { %v1205_v52 = vmul.f32 %v5022_v35, %v3455_v8  ;;  %v1196_v38 = vadd.f32 %v1194_v10, %v1190_v33  ;;  %v5025_v57 = vmov %v5022_v35  ;;  %1105 = vadd.xlane.f32.xlu0 %v1104_v1  ;;  %v998_v36 = vadd.f32 %v996_v49, %v992_v13 }
 0x15d   : >> { %v1206_v24 = vmul.f32 %v5025_v57, %v3457_v29  ;;  %v5026_v34 = vstv %s5016_s17  ;;  %v5028_v32 = vstv %s5018_s22  ;;  %v1003_v20 = vadd.f32 %v1001_v30, %v997_v47  ;;  %s5120_s17 = sld [smem:[#allocation107_spill]]  ;;  %s4011_s22 = sld [smem:[#allocation7 + $0x9]] }
 0x15e   : >> { %v1211_v61 = vmul.f32 %v5026_v34, %v3505_v46  ;;  %v5027_v21 = vmov %v5026_v34  ;;  %v1217_v48 = vmul.f32 %v5028_v32, %v3513_v26  ;;  %v1201_v19 = vadd.f32 %v1199_v9, %v1195_v31 }
 0x15f   : >> { %v1212_v25 = vmul.f32 %v5027_v21, %v3507_v59  ;;  %v1202_v0 = vadd.f32 %v1200_v28, %v1196_v38  ;;  %v5031_v3 = vmov %v5028_v32  ;;  %v1004_v42 = vadd.f32 %v1002_v54, %v998_v36 }
 0x160   : >> { %v1218_v49 = vmul.f32 %v5031_v3, %v3515_v16  ;;  %v5032_v6 = vstv %s5023_s16  ;;  %v5034_v43 = vstv %s5024_s7  ;;  %v5036_v30 = vstv %s3015_s20  ;;  %s5046_s20 = sld [smem:[#allocation95_spill]]  ;;  %s5125_s16 = sld [smem:[#allocation108_spill]] }
 0x161   : >> { %v1223_v4 = vmul.f32 %v5032_v6, %v3517_v5  ;;  %v5033_v22 = vmov %v5032_v6  ;;  %v1229_v62 = vmul.f32 %v5034_v43, %v3549_v39  ;;  %v1007_v33 = vadd.f32 %v5036_v30, %v1003_v20  ;;  %s5128_s7 = sld [smem:[#allocation109_spill]] }
 0x162   : >> { %v1224_v11 = vmul.f32 %v5033_v22, %v3519_v60  ;;  %v1207_v27 = vadd.f32 %v1205_v52, %v1201_v19  ;;  %v1208_v56 = vadd.f32 %v1206_v24, %v1202_v0  ;;  %v5037_v54 = vmov %v5034_v43 }
 0x163   : >> { %v1230_v37 = vmul.f32 %v5037_v54, %v3551_v17  ;;  %v5038_v41 = vmov %v5036_v30  ;;  %v5039_v44 = vstv %s5029_s28  ;;  %v5041_v45 = vstv %s5030_s19  ;;  %s5132_s28 = sld [smem:[#allocation110_spill]]  ;;  %s5140_s19 = sld [smem:[#allocation118_spill]] }
 0x164   : >> { %v1008_v10 = vadd.f32 %v5038_v41, %v1004_v42  ;;  %v1113_v9 = vmul.f32 %v5039_v44, %v3441_v14  ;;  %v5040_v1 = vmov %v5039_v44  ;;  %v1117_v28 = vmul.f32 %v5041_v45, %v3445_v55 }
 0x165   : >> { %v1114_v13 = vmul.f32 %v5040_v1, %v3443_v2  ;;  %v1009_v35 = vmax.f32 %v1007_v33, 0.0  ;;  %v1213_v47 = vadd.f32 %v1211_v61, %v1207_v27  ;;  %v1214_v52 = vadd.f32 %v1212_v25, %v1208_v56 }
 0x166   : >> { %v5043_v31 = vmov %v5041_v45  ;;  %v1010_v57 = vmax.f32 %v1008_v10, 0.0  ;;  %v1119_v24 = vadd.f32 %v1117_v28, %v1113_v9  ;;  %v5044_v36 = vstv %s5035_s9  ;;  %s5142_s9 = sld [smem:[#allocation111_spill]] }
 0x167   : >> { %v1118_v38 = vmul.f32 %v5043_v31, %v3449_v40  ;;  %v1123_v34 = vmul.f32 %v5044_v36, %v3451_v53  ;;  %v5045_v21 = vmov %v5044_v36  ;;  %v1011_v20 = vmul.f32 %v3467_v51, %v1009_v35 }
 0x168   : >> { %v1124_v32 = vmul.f32 %v5045_v21, %v3453_v50  ;;  %v1219_v19 = vadd.f32 %v1217_v48, %v1213_v47  ;;  %v1220_v0 = vadd.f32 %v1218_v49, %v1214_v52  ;;  %v1012_v61 = vmul.f32 %v3479_v58, %v1010_v57 }
 0x169   : >> { %v1120_v3 = vadd.f32 %v1118_v38, %v1114_v13  ;;  %v1125_v25 = vadd.f32 %v1123_v34, %v1119_v24  ;;  %v5047_v42 = vstv %s5042_s15  ;;  %v5050_v30 = vrot.slane %v3075_v7, %v2835_v15  ;;  %s4081_s15 = sld [smem:[#allocation7 + $0x8]] }
 0x16a   : >> { %v1129_v6 = vmul.f32 %v5047_v42, %v3455_v8  ;;  %v5048_v22 = vmov %v5047_v42  ;;  %v1225_v48 = vadd.f32 %v1223_v4, %v1219_v19  ;;  %v1226_v49 = vadd.f32 %v1224_v11, %v1220_v0 }
 0x16b   : >> { %v1130_v43 = vmul.f32 %v5048_v22, %v3457_v29  ;;  %v1026_v33 = vmul.f32 %v5050_v30, %v1011_v20  ;;  %v1126_v27 = vadd.f32 %v1124_v32, %v1120_v3  ;;  %v5051_v56 = vrot.slane %v3075_v7, %v2851_v18 }
 0x16c   : >> { %v1131_v41 = vadd.f32 %v1129_v6, %v1125_v25  ;;  %v5052_v10 = vstv %s5046_s20  ;;  %v1456_v9 = vstv %s3802_s23  ;;  %v1231_v1 = vadd.f32 %v1229_v62, %v1225_v48  ;;  %s5149_s20 = sld [smem:[#allocation112_spill]] }
 0x16d   : >> { %v1027_v54 = vmul.f32 %v5051_v56, %v1012_v61  ;;  %v1135_v44 = vmul.f32 %v5052_v10, %v3505_v46  ;;  %v1232_v13 = vadd.f32 %v1230_v37, %v1226_v49  ;;  %v1132_v45 = vadd.f32 %v1130_v43, %v1126_v27  ;;  %s4151_s23 = sld [smem:[#allocation7 + $0xb]] }
 0x16e   : >> { %v5054_v4 = vmov %v5052_v10  ;;  %v5055_v7 = vstv %s5049_s26  ;;  %v5057_v38 = vstv %s4822_s29  ;;  %v5060_v36 = vstv %s3025_s10  ;;  %s5087_s29 = sld [smem:[#allocation87_spill]]  ;;  %s5091_s10 = sld [smem:[#allocation102_spill]] }
 0x16f   : >> { %v1136_v11 = vmul.f32 %v5054_v4, %v3507_v59  ;;  %v1028_v28 = vadd.f32 %v1027_v54, %v1026_v33  ;;  %v1137_v35 = vadd.f32 %v1135_v44, %v1131_v41  ;;  %v1141_v47 = vmul.f32 %v5055_v7, %v3513_v26  ;;  %s4095_s26 = sld [smem:[#allocation6 + $0x10b]] }
 0x170   : >> { %v5056_v52 = vmov %v5055_v7  ;;  %v1235_v57 = vadd.f32 %v5057_v38, %v1231_v1  ;;  %v5059_v62 = vmov %v5057_v38  ;;  %v1147_v34 = vmul.f32 %v5060_v36, %v3517_v5 }
 0x171   : >> { %v1142_v31 = vmul.f32 %v5056_v52, %v3515_v16  ;;  %v1236_v37 = vadd.f32 %v5059_v62, %v1232_v13  ;;  %v1138_v24 = vadd.f32 %v1136_v11, %v1132_v45  ;;  %1029 = vadd.xlane.f32.xlu1 %v1028_v28  ;;  %v1143_v21 = vadd.f32 %v1141_v47, %v1137_v35 }
 0x172   : >> { %v5061_v32 = vmov %v5060_v36  ;;  %v5062_v19 = vstv %s3036_s1  ;;  %v5063_v3 = vstv %s5053_s13  ;;  %v1237_v25 = vmax.f32 %v1235_v57, 0.0  ;;  %s5097_s1 = sld [smem:[#allocation104_spill]] }
 0x173   : >> { %v1148_v20 = vmul.f32 %v5061_v32, %v3519_v60  ;;  %v1153_v0 = vmul.f32 %v5062_v19, %v3549_v39  ;;  %v1341_v61 = vmul.f32 %v5063_v3, %v3441_v14  ;;  %v1238_v42 = vmax.f32 %v1236_v37, 0.0  ;;  %s4118_s13 = sld [smem:[#allocation6 + $0x20b]] }
 0x174   : >> { %v1144_v6 = vadd.f32 %v1142_v31, %v1138_v24  ;;  %v5064_v22 = vmov %v5063_v3  ;;  %v1149_v30 = vadd.f32 %v1147_v34, %v1143_v21  ;;  %v5065_v33 = vmov %v5062_v19 }
 0x175   : >> { %v1342_v43 = vmul.f32 %v5064_v22, %v3443_v2  ;;  %v1154_v48 = vmul.f32 %v5065_v33, %v3551_v17  ;;  %v5066_v49 = vstv %s5058_s30  ;;  %v1239_v41 = vmul.f32 %v3467_v51, %v1237_v25  ;;  %s4120_s30 = sld [smem:[#allocation6 + $0x28b]] }
 0x176   : >> { %v1345_v27 = vmul.f32 %v5066_v49, %v3445_v55  ;;  %v5067_v56 = vmov %v5066_v49  ;;  %v1240_v10 = vmul.f32 %v3479_v58, %v1238_v42  ;;  %v1150_v44 = vadd.f32 %v1148_v20, %v1144_v6 }
 0x177   : >> { %v1346_v54 = vmul.f32 %v5067_v56, %v3449_v40  ;;  %v5068_v1 = vstv %s4823_s2  ;;  %v1155_v45 = vadd.f32 %v1153_v0, %v1149_v30  ;;  %v5070_v7 = vrot.slane %v3106_v63, %v2835_v15  ;;  %s5110_s2 = sld [smem:[#allocation101_spill]] }
 0x178   : >> { %v1351_v13 = vmul.f32 %v5068_v1, %v3451_v53  ;;  %v1347_v4 = vadd.f32 %v1345_v27, %v1341_v61  ;;  %v5069_v28 = vmov %v5068_v1  ;;  %v5071_v52 = vrot.slane %v3106_v63, %v2851_v18 }
 0x179   : >> { %v1348_v11 = vadd.f32 %v1346_v54, %v1342_v43  ;;  %v1352_v35 = vmul.f32 %v5069_v28, %v3453_v50  ;;  %v1254_v47 = vmul.f32 %v5070_v7, %v1239_v41  ;;  %v1156_v38 = vadd.f32 %v1154_v48, %v1150_v44 }
 0x17a   : >> { %v1255_v31 = vmul.f32 %v5071_v52, %v1240_v10  ;;  %v5072_v57 = vstv %s4824_s4  ;;  %v5073_v37 = vstv %s3108_s14  ;;  %v1353_v36 = vadd.f32 %v1351_v13, %v1347_v4  ;;  %s5095_s14 = sld [smem:[#allocation106_spill]]  ;;  %s5116_s4 = sld [smem:[#allocation105_spill]] }
 0x17b   : >> { %v1357_v62 = vmul.f32 %v5072_v57, %v3455_v8  ;;  %v1159_v24 = vadd.f32 %v5073_v37, %v1155_v45  ;;  %v1354_v34 = vadd.f32 %v1352_v35, %v1348_v11  ;;  %v5074_v21 = vmov %v5072_v57 }
 0x17c   : >> { %v1358_v32 = vmul.f32 %v5074_v21, %v3457_v29  ;;  %v1256_v20 = vadd.f32 %v1255_v31, %v1254_v47  ;;  %v5075_v19 = vmov %v5073_v37  ;;  %v5076_v63 = vstv %s4827_s0  ;;  %s5082_s0 = sld [smem:[#allocation84_spill]] }
 0x17d   : >> { %v1160_v0 = vadd.f32 %v5075_v19, %v1156_v38  ;;  %v1363_v3 = vmul.f32 %v5076_v63, %v3505_v46  ;;  %v5077_v61 = vmov %v5076_v63  ;;  %v1161_v42 = vmax.f32 %v1159_v24, 0.0 }
 0x17e   : >> { %v1364_v25 = vmul.f32 %v5077_v61, %v3507_v59  ;;  %v1359_v6 = vadd.f32 %v1357_v62, %v1353_v36  ;;  %v1360_v22 = vadd.f32 %v1358_v32, %v1354_v34  ;;  %v5078_v43 = vstv %s3066_s5  ;;  %1257 = vadd.xlane.f32.xlu0 %v1256_v20  ;;  %s5101_s5 = sld [smem:[#allocation98_spill]] }
 0x17f   : >> { %v1369_v30 = vmul.f32 %v5078_v43, %v3513_v26  ;;  %v1162_v33 = vmax.f32 %v1160_v0, 0.0  ;;  %v5079_v48 = vmov %v5078_v43  ;;  %v5080_v27 = vstv %s3077_s6  ;;  %s5094_s6 = sld [smem:[#allocation103_spill]] }
 0x180   : >> { %v1370_v49 = vmul.f32 %v5079_v48, %v3515_v16  ;;  %v1375_v56 = vmul.f32 %v5080_v27, %v3517_v5  ;;  %v5081_v54 = vmov %v5080_v27  ;;  %v1163_v10 = vmul.f32 %v3467_v51, %v1161_v42 }
 0x181   : >> { %v1376_v41 = vmul.f32 %v5081_v54, %v3519_v60  ;;  %v1365_v44 = vadd.f32 %v1363_v3, %v1359_v6  ;;  %v1366_v1 = vadd.f32 %v1364_v25, %v1360_v22  ;;  %v5083_v13 = vstv %s3079_s11  ;;  %s5100_s11 = sld [smem:[#allocation99_spill]] }
 0x182   : >> { %v1381_v45 = vmul.f32 %v5083_v13, %v3549_v39  ;;  %v1164_v4 = vmul.f32 %v3479_v58, %v1162_v33  ;;  %v5084_v11 = vstv %s3087_s24  ;;  %v5086_v47 = vstv %s3089_s8  ;;  %s5107_s24 = sld [smem:[#allocation100_spill]]  ;;  %s3983_s8 = sld [smem:[#allocation6 + $0xb]] }
 0x183   : >> { %v1265_v28 = vmul.f32 %v5084_v11, %v3441_v14  ;;  %v5085_v35 = vmov %v5084_v11  ;;  %v1269_v52 = vmul.f32 %v5086_v47, %v3445_v55  ;;  %v5088_v31 = vrot.slane %v3143_v12, %v2835_v15 }
 0x184   : >> { %v1266_v7 = vmul.f32 %v5085_v35, %v3443_v2  ;;  %v1371_v57 = vadd.f32 %v1369_v30, %v1365_v44  ;;  %v1372_v62 = vadd.f32 %v1370_v49, %v1366_v1  ;;  %v5089_v37 = vmov %v5086_v47 }
 0x185   : >> { %v1178_v38 = vmul.f32 %v5088_v31, %v1163_v10  ;;  %v1270_v24 = vmul.f32 %v5089_v37, %v3449_v40  ;;  %v5090_v36 = vrot.slane %v3143_v12, %v2851_v18  ;;  %v5092_v21 = vmov %v5083_v13 }
 0x186   : >> { %v1382_v32 = vmul.f32 %v5092_v21, %v3551_v17  ;;  %v1271_v20 = vadd.f32 %v1269_v52, %v1265_v28  ;;  %v5093_v19 = vstv %s5082_s0  ;;  %v1377_v63 = vadd.f32 %v1375_v56, %v1371_v57  ;;  %s4284_s0 = sld [smem:[#allocation6 + $0x30c]] }
 0x187   : >> { %v1179_v34 = vmul.f32 %v5090_v36, %v1164_v4  ;;  %v1275_v0 = vmul.f32 %v5093_v19, %v3451_v53  ;;  %v1378_v3 = vadd.f32 %v1376_v41, %v1372_v62  ;;  %v1272_v61 = vadd.f32 %v1270_v24, %v1266_v7 }
 0x188   : >> { %v5096_v25 = vmov %v5093_v19  ;;  %v5098_v22 = vstv %s5087_s29  ;;  %v1383_v48 = vadd.f32 %v1381_v45, %v1377_v63  ;;  %v5102_v56 = vstv %s5091_s10  ;;  %s4156_s10 = sld [smem:[#allocation6 + $0xa]]  ;;  %s4290_s29 = sld [smem:[#allocation6 + $0x38c]] }
 0x189   : >> { %v1276_v12 = vmul.f32 %v5096_v25, %v3453_v50  ;;  %v1180_v42 = vadd.f32 %v1179_v34, %v1178_v38  ;;  %v1277_v6 = vadd.f32 %v1275_v0, %v1271_v20  ;;  %v1281_v43 = vmul.f32 %v5098_v22, %v3455_v8 }
 0x18a   : >> { %v5099_v30 = vmov %v5098_v22  ;;  %v1384_v49 = vadd.f32 %v1382_v32, %v1378_v3  ;;  %v1287_v54 = vmul.f32 %v5102_v56, %v3505_v46  ;;  %v5103_v10 = vmov %v5102_v56 }
 0x18b   : >> { %v1282_v33 = vmul.f32 %v5099_v30, %v3457_v29  ;;  %v1278_v27 = vadd.f32 %v1276_v12, %v1272_v61  ;;  %1181 = vadd.xlane.f32.xlu1 %v1180_v42  ;;  %v1283_v41 = vadd.f32 %v1281_v43, %v1277_v6  ;;  %v1288_v44 = vmul.f32 %v5103_v10, %v3507_v59 }
 0x18c   : >> { %v5104_v1 = vstv %s5094_s6  ;;  %v5106_v11 = vstv %s5095_s14  ;;  %v5109_v52 = vstv %s5097_s1  ;;  %v5112_v37 = vstv %s5100_s11  ;;  %s4162_s6 = sld [smem:[#allocation6 + $0x8a]] }
 0x18d   : >> { %v1293_v13 = vmul.f32 %v5104_v1, %v3513_v26  ;;  %v5105_v4 = vmov %v5104_v1  ;;  %v1387_v28 = vadd.f32 %v5106_v11, %v1383_v48  ;;  %v5108_v35 = vmov %v5106_v11  ;;  %s4164_s14 = sld [smem:[#allocation6 + $0x10a]] }
 0x18e   : >> { %v1294_v45 = vmul.f32 %v5105_v4, %v3515_v16  ;;  %v1388_v7 = vadd.f32 %v5108_v35, %v1384_v49  ;;  %v1284_v47 = vadd.f32 %v1282_v33, %v1278_v27  ;;  %v1299_v31 = vmul.f32 %v5109_v52, %v3517_v5  ;;  %s4170_s1 = sld [smem:[#allocation6 + $0x18a]] }
 0x18f   : >> { %v1289_v38 = vadd.f32 %v1287_v54, %v1283_v41  ;;  %v5111_v57 = vmov %v5109_v52  ;;  %v1305_v24 = vmul.f32 %v5112_v37, %v3549_v39  ;;  %v5113_v36 = vstv %s5101_s5  ;;  %s4178_s11 = sld [smem:[#allocation6 + $0x20a]] }
 0x190   : >> { %v1300_v62 = vmul.f32 %v5111_v57, %v3519_v60  ;;  %v1493_v34 = vmul.f32 %v5113_v36, %v3441_v14  ;;  %v1389_v21 = vmax.f32 %v1387_v28, 0.0  ;;  %v1390_v32 = vmax.f32 %v1388_v7, 0.0  ;;  %s4184_s5 = sld [smem:[#allocation6 + $0x28a]] }
 0x191   : >> { %v1290_v20 = vadd.f32 %v1288_v44, %v1284_v47  ;;  %v5114_v19 = vmov %v5113_v36  ;;  %v1295_v63 = vadd.f32 %v1293_v13, %v1289_v38  ;;  %v5115_v3 = vmov %v5112_v37 }
 0x192   : >> { %v1494_v0 = vmul.f32 %v5114_v19, %v3443_v2  ;;  %v1306_v61 = vmul.f32 %v5115_v3, %v3551_v17  ;;  %v5117_v25 = vstv %s5107_s24  ;;  %v1391_v22 = vmul.f32 %v3467_v51, %v1389_v21  ;;  %s4322_s24 = sld [smem:[#allocation6 + $0x18f]] }
 0x193   : >> { %v1497_v12 = vmul.f32 %v5117_v25, %v3445_v55  ;;  %v5118_v42 = vmov %v5117_v25  ;;  %v1392_v43 = vmul.f32 %v3479_v58, %v1390_v32  ;;  %v1296_v30 = vadd.f32 %v1294_v45, %v1290_v20 }
 0x194   : >> { %v1498_v6 = vmul.f32 %v5118_v42, %v3449_v40  ;;  %v5119_v33 = vstv %s5110_s2  ;;  %v1301_v49 = vadd.f32 %v1299_v31, %v1295_v63  ;;  %v5122_v10 = vrot.slane %v3214_v23, %v2835_v15  ;;  %s4193_s2 = sld [smem:[#allocation6 + $0x30a]] }
 0x195   : >> { %v1503_v48 = vmul.f32 %v5119_v33, %v3451_v53  ;;  %v1499_v27 = vadd.f32 %v1497_v12, %v1493_v34  ;;  %v5121_v54 = vmov %v5119_v33  ;;  %v5123_v1 = vrot.slane %v3214_v23, %v2851_v18 }
 0x196   : >> { %v1500_v56 = vadd.f32 %v1498_v6, %v1494_v0  ;;  %v1504_v41 = vmul.f32 %v5121_v54, %v3453_v50  ;;  %v1406_v44 = vmul.f32 %v5122_v10, %v1391_v22  ;;  %v1302_v4 = vadd.f32 %v1300_v62, %v1296_v30 }
 0x197   : >> { %v1407_v13 = vmul.f32 %v5123_v1, %v1392_v43  ;;  %v5124_v45 = vstv %s5116_s4  ;;  %v1307_v28 = vadd.f32 %v1305_v24, %v1301_v49  ;;  %v1505_v35 = vadd.f32 %v1503_v48, %v1499_v27  ;;  %s4195_s4 = sld [smem:[#allocation6 + $0x38a]] }
 0x198   : >> { %v1509_v11 = vmul.f32 %v5124_v45, %v3455_v8  ;;  %v1506_v7 = vadd.f32 %v1504_v41, %v1500_v56  ;;  %v5126_v47 = vmov %v5124_v45  ;;  %v1308_v38 = vadd.f32 %v1306_v61, %v1302_v4  ;;  %v2297_v45 = vld [vmem:[%s5140_s19 + $0x11] ss:$8 sm:$0x3] }
 0x199   : >> { %v1510_v52 = vmul.f32 %v5126_v47, %v3457_v29  ;;  %v1408_v31 = vadd.f32 %v1407_v13, %v1406_v44  ;;  %v5127_v23 = vstv %s5120_s17  ;;  %v1644_v62 = vstv %s3983_s8  ;;  %s4206_s17 = sld [smem:[#allocation7 + $0xa]]  ;;  %s4327_s8 = sld [smem:[#allocation6 + $0x20f]] }
 0x19a   : >> { %v1515_v57 = vmul.f32 %v5127_v23, %v3505_v46  ;;  %v5129_v37 = vstv %s3230_s18  ;;  %v1511_v34 = vadd.f32 %v1509_v11, %v1505_v35  ;;  %v5130_v21 = vmov %v5127_v23  ;;  %s4230_s18 = sld [smem:[#allocation6 + $0x28d]] }
 0x19b   : >> { %v1311_v36 = vadd.f32 %v5129_v37, %v1307_v28  ;;  %v1512_v24 = vadd.f32 %v1510_v52, %v1506_v7  ;;  %v1516_v32 = vmul.f32 %v5130_v21, %v3507_v59  ;;  %1409 = vadd.xlane.f32.xlu0 %v1408_v31  ;;  %v5131_v20 = vmov %v5129_v37  ;;  %v5145_v31 = vld [vmem:[#allocation113_spill] sm:$0xff] }
 0x19c   : >> { %v1312_v19 = vadd.f32 %v5131_v20, %v1308_v38  ;;  %v5133_v0 = vstv %s3181_s21  ;;  %v5135_v25 = vstv %s5125_s16  ;;  %v1517_v6 = vadd.f32 %v1515_v57, %v1511_v34  ;;  %s4212_s16 = sld [smem:[#allocation6 + $0x8d]] }
 0x19d   : >> { %v1521_v63 = vmul.f32 %v5133_v0, %v3513_v26  ;;  %v5134_v3 = vmov %v5133_v0  ;;  %v1527_v12 = vmul.f32 %v5135_v25, %v3517_v5  ;;  %v1313_v42 = vmax.f32 %v1311_v36, 0.0  ;;  %s4222_s21 = sld [smem:[#allocation6 + $0x20d]] }
 0x19e   : >> { %v1522_v61 = vmul.f32 %v5134_v3, %v3515_v16  ;;  %v1518_v22 = vadd.f32 %v1516_v32, %v1512_v24  ;;  %v5136_v43 = vmov %v5135_v25  ;;  %v1314_v33 = vmax.f32 %v1312_v19, 0.0 }
 0x19f   : >> { %v1528_v30 = vmul.f32 %v5136_v43, %v3519_v60  ;;  %v5137_v48 = vstv %s5128_s7  ;;  %v1538_v54 = vstv %s4011_s22  ;;  %v1315_v41 = vmul.f32 %v3467_v51, %v1313_v42  ;;  %s4208_s22 = sld [smem:[#allocation6 + $0xd]] }
 0x1a0   : >> { %v1533_v49 = vmul.f32 %v5137_v48, %v3549_v39  ;;  %v5138_v27 = vmov %v5137_v48  ;;  %v1523_v10 = vadd.f32 %v1521_v63, %v1517_v6  ;;  %v1524_v44 = vadd.f32 %v1522_v61, %v1518_v22  ;;  %s4216_s7 = sld [smem:[#allocation6 + $0x10d]] }
 0x1a1   : >> { %v1534_v56 = vmul.f32 %v5138_v27, %v3551_v17  ;;  %v5139_v1 = vstv %s5132_s28  ;;  %v1316_v4 = vmul.f32 %v3479_v58, %v1314_v33  ;;  %v5143_v35 = vstv %s3240_s27  ;;  %s4093_s27 = sld [smem:[#allocation6 + $0x8b]]  ;;  %s4220_s28 = sld [smem:[#allocation6 + $0x18d]] }
 0x1a2   : >> { %v1417_v13 = vmul.f32 %v5139_v1, %v3441_v14  ;;  %v5141_v11 = vmov %v5139_v1  ;;  %v1421_v7 = vmul.f32 %v5143_v35, %v3445_v55  ;;  %v5144_v47 = vmov %v5143_v35 }
 0x1a3   : >> { %v1418_v28 = vmul.f32 %v5141_v11, %v3443_v2  ;;  %v1422_v52 = vmul.f32 %v5144_v47, %v3449_v40  ;;  %v5146_v38 = vrot.slane %v5145_v31, %v2835_v15  ;;  %v1529_v57 = vadd.f32 %v1527_v12, %v1523_v10 }
 0x1a4   : >> { %v1530_v37 = vadd.f32 %v1528_v30, %v1524_v44  ;;  %v5147_v36 = vstv %s3242_s25  ;;  %v5148_v24 = vrot.slane %v5145_v31, %v2851_v18  ;;  %v1423_v32 = vadd.f32 %v1421_v7, %v1417_v13  ;;  %s4104_s25 = sld [smem:[#allocation6 + $0x18b]] }
 0x1a5   : >> { %v1330_v23 = vmul.f32 %v5146_v38, %v1315_v41  ;;  %v1427_v34 = vmul.f32 %v5147_v36, %v3451_v53  ;;  %v1424_v20 = vadd.f32 %v1422_v52, %v1418_v28  ;;  %v5150_v19 = vmov %v5147_v36 }
 0x1a6   : >> { %v1331_v21 = vmul.f32 %v5148_v24, %v1316_v4  ;;  %v1428_v0 = vmul.f32 %v5150_v19, %v3453_v50  ;;  %v1535_v63 = vadd.f32 %v1533_v49, %v1529_v57  ;;  %v1536_v3 = vadd.f32 %v1534_v56, %v1530_v37 }
 0x1a7   : >> { %v1551_v61 = vrot.slane %v2297_v45, %v2835_v15  ;;  %v5151_v25 = vstv %s5142_s9  ;;  %v1429_v6 = vadd.f32 %v1427_v34, %v1423_v32  ;;  %v1555_v49 = vrot.slane %v2297_v45, %v2851_v18  ;;  %s4236_s9 = sld [smem:[#allocation6 + $0x30d]] }
 0x1a8   : >> { %v1433_v12 = vmul.f32 %v5151_v25, %v3455_v8  ;;  %v1332_v42 = vadd.f32 %v1331_v21, %v1330_v23  ;;  %v1430_v22 = vadd.f32 %v1428_v0, %v1424_v20  ;;  %v5152_v43 = vmov %v5151_v25 }
 0x1a9   : >> { %v1434_v30 = vmul.f32 %v5152_v43, %v3457_v29  ;;  %v1539_v33 = vadd.f32 %v1538_v54, %v1535_v63  ;;  %v1540_v48 = vadd.f32 %v1538_v54, %v1536_v3  ;;  %v5153_v27 = vstv %s5149_s20  ;;  %s4383_s20 = sld [smem:[#allocation6 + $0x28e]] }
 0x1aa   : >> { %v1439_v56 = vmul.f32 %v5153_v27, %v3505_v46  ;;  %1333 = vadd.xlane.f32.xlu1 %v1332_v42  ;;  %v1435_v41 = vadd.f32 %v1433_v12, %v1429_v6  ;;  %v5154_v44 = vmov %v5153_v27  ;;  %v5155_v13 = vstv %s3262_s12  ;;  %s4142_s12 = sld [smem:[#allocation6 + $0x30b]] }
 0x1ab   : >> { %v1436_v10 = vadd.f32 %v1434_v30, %v1430_v22  ;;  %v1440_v1 = vmul.f32 %v5154_v44, %v3507_v59  ;;  %v1445_v54 = vmul.f32 %v5155_v13, %v3513_v26  ;;  %v1541_v4 = vmax.f32 %v1539_v33, 0.0  ;;  %v2287_v33 = vld [vmem:[%s5140_s19 + $0x10] ss:$8 sm:$0x3] }
 0x1ac   : >> { %v1542_v45 = vmax.f32 %v1540_v48, 0.0  ;;  %v5156_v11 = vmov %v5155_v13  ;;  %v5157_v35 = vstv %s3264_s3  ;;  %v1441_v47 = vadd.f32 %v1439_v56, %v1435_v41  ;;  %s4144_s3 = sld [smem:[#allocation6 + $0x38b]] }
 0x1ad   : >> { %v1446_v28 = vmul.f32 %v5156_v11, %v3515_v16  ;;  %v1451_v7 = vmul.f32 %v5157_v35, %v3517_v5  ;;  %v1442_v52 = vadd.f32 %v1440_v1, %v1436_v10  ;;  %v5158_v31 = vmov %v5157_v35 }
 0x1ae   : >> { %v1452_v38 = vmul.f32 %v5158_v31, %v3519_v60  ;;  %v1457_v23 = vmul.f32 %v1456_v9, %v3549_v39  ;;  %v1543_v57 = vmul.f32 %v3467_v51, %v1541_v4  ;;  %v1544_v37 = vmul.f32 %v3479_v58, %v1542_v45 }
 0x1af   : >> { %v1458_v36 = vmul.f32 %v1456_v9, %v3551_v17  ;;  %v1462_v34 = vstv %s4081_s15  ;;  %v1447_v24 = vadd.f32 %v1445_v54, %v1441_v47  ;;  %v1448_v21 = vadd.f32 %v1446_v28, %v1442_v52  ;;  %s4375_s15 = sld [smem:[#allocation6 + $0x20e]] }
 0x1b0   : >> { %v1645_v32 = vmul.f32 %v1644_v62, %v3441_v14  ;;  %v1646_v20 = vmul.f32 %v1644_v62, %v3443_v2  ;;  %v1558_v19 = vmul.f32 %v1551_v61, %v1543_v57  ;;  %v1559_v0 = vmul.f32 %v1555_v49, %v1544_v37 }
 0x1b1   : >> { %v1648_v63 = vstv %s4093_s27  ;;  %v1654_v3 = vstv %s4095_s26  ;;  %v1453_v25 = vadd.f32 %v1451_v7, %v1447_v24  ;;  %v1454_v9 = vadd.f32 %v1452_v38, %v1448_v21  ;;  %s4243_s27 = sld [smem:[#allocation6 + $0x38d]] }
 0x1b2   : >> { %v1649_v12 = vmul.f32 %v1648_v63, %v3445_v55  ;;  %v1650_v42 = vmul.f32 %v1648_v63, %v3449_v40  ;;  %v1560_v6 = vadd.f32 %v1559_v0, %v1558_v19  ;;  %v1655_v22 = vmul.f32 %v1654_v3, %v3451_v53  ;;  %s4254_s26 = sld [smem:[#allocation7 + $0xd]] }
 0x1b3   : >> { %v1656_v62 = vmul.f32 %v1654_v3, %v3453_v50  ;;  %v1660_v61 = vstv %s4104_s25  ;;  %v1459_v43 = vadd.f32 %v1457_v23, %v1453_v25  ;;  %v1460_v30 = vadd.f32 %v1458_v36, %v1454_v9  ;;  %v2317_v9 = vld [vmem:[%s5140_s19 + $0x13] ss:$8 sm:$0x3]  ;;  %s4256_s25 = sld [smem:[#allocation6 + $0xc]] }
 0x1b4   : >> { %v1651_v48 = vadd.f32 %v1649_v12, %v1645_v32  ;;  %v1652_v49 = vadd.f32 %v1650_v42, %v1646_v20  ;;  %1561 = vadd.xlane.f32.xlu0 %v1560_v6  ;;  %v1661_v27 = vmul.f32 %v1660_v61, %v3455_v8  ;;  %v1662_v56 = vmul.f32 %v1660_v61, %v3457_v29 }
 0x1b5   : >> { %v1666_v41 = vstv %s4118_s13  ;;  %v1672_v10 = vstv %s4120_s30  ;;  %v1463_v44 = vadd.f32 %v1462_v34, %v1459_v43  ;;  %v1464_v1 = vadd.f32 %v1462_v34, %v1460_v30  ;;  %s4262_s13 = sld [smem:[#allocation6 + $0x8c]] }
 0x1b6   : >> { %v1657_v13 = vadd.f32 %v1655_v22, %v1651_v48  ;;  %v1658_v54 = vadd.f32 %v1656_v62, %v1652_v49  ;;  %v1475_v4 = vrot.slane %v2287_v33, %v2835_v15  ;;  %v1479_v45 = vrot.slane %v2287_v33, %v2851_v18  ;;  %s4266_s30 = sld [smem:[#allocation6 + $0x10c]] }
 0x1b7   : >> { %v1667_v11 = vmul.f32 %v1666_v41, %v3505_v46  ;;  %v1668_v28 = vmul.f32 %v1666_v41, %v3507_v59  ;;  %v1465_v35 = vmax.f32 %v1463_v44, 0.0  ;;  %v1466_v7 = vmax.f32 %v1464_v1, 0.0 }
 0x1b8   : >> { %v1663_v47 = vadd.f32 %v1661_v27, %v1657_v13  ;;  %v1664_v52 = vadd.f32 %v1662_v56, %v1658_v54  ;;  %v1673_v31 = vmul.f32 %v1672_v10, %v3513_v26  ;;  %v1674_v38 = vmul.f32 %v1672_v10, %v3515_v16 }
 0x1b9   : >> { %v1678_v23 = vstv %s4142_s12  ;;  %v1684_v57 = vstv %s4144_s3  ;;  %v1467_v37 = vmul.f32 %v3467_v51, %v1465_v35  ;;  %v1468_v36 = vmul.f32 %v3479_v58, %v1466_v7  ;;  %s4268_s12 = sld [smem:[#allocation6 + $0x18c]] }
 0x1ba   : >> { %v1669_v34 = vadd.f32 %v1667_v11, %v1663_v47  ;;  %v1670_v24 = vadd.f32 %v1668_v28, %v1664_v52  ;;  %v1679_v21 = vmul.f32 %v1678_v23, %v3517_v5  ;;  %v1680_v32 = vmul.f32 %v1678_v23, %v3519_v60  ;;  %s4276_s3 = sld [smem:[#allocation6 + $0x20c]] }
 0x1bb   : >> { %v1685_v20 = vmul.f32 %v1684_v57, %v3549_v39  ;;  %v1690_v19 = vstv %s4151_s23  ;;  %v1482_v0 = vmul.f32 %v1475_v4, %v1467_v37  ;;  %v1483_v63 = vmul.f32 %v1479_v45, %v1468_v36  ;;  %s4282_s23 = sld [smem:[#allocation6 + $0x28c]] }
 0x1bc   : >> { %v1675_v3 = vadd.f32 %v1673_v31, %v1669_v34  ;;  %v1676_v25 = vadd.f32 %v1674_v38, %v1670_v24  ;;  %v1686_v12 = vmul.f32 %v1684_v57, %v3551_v17  ;;  %v1568_v42 = vstv %s4156_s10 }
 0x1bd   : >> { %v1572_v6 = vstv %s4162_s6  ;;  %v1578_v22 = vstv %s4164_s14  ;;  %v1484_v62 = vadd.f32 %v1483_v63, %v1482_v0  ;;  %v1569_v30 = vmul.f32 %v1568_v42, %v3441_v14  ;;  %s4306_s14 = sld [smem:[#allocation6 + $0xf]] }
 0x1be   : >> { %v1681_v61 = vadd.f32 %v1679_v21, %v1675_v3  ;;  %v1682_v43 = vadd.f32 %v1680_v32, %v1676_v25  ;;  %v1703_v33 = vrot.slane %v2317_v9, %v2835_v15  ;;  %v1570_v48 = vmul.f32 %v1568_v42, %v3443_v2  ;;  %s5163_s6 = sld [smem:[#allocation123_spill]] }
 0x1bf   : >> { %v1573_v49 = vmul.f32 %v1572_v6, %v3445_v55  ;;  %v1574_v27 = vmul.f32 %v1572_v6, %v3449_v40  ;;  %1485 = vadd.xlane.f32.xlu1 %v1484_v62  ;;  %v1707_v10 = vrot.slane %v2317_v9, %v2851_v18  ;;  %v1584_v44 = vstv %s4170_s1  ;;  %s4312_s1 = sld [smem:[#allocation6 + $0x8f]] }
 0x1c0   : >> { %v1687_v56 = vadd.f32 %v1685_v20, %v1681_v61  ;;  %v1688_v41 = vadd.f32 %v1686_v12, %v1682_v43  ;;  %v1579_v54 = vmul.f32 %v1578_v22, %v3451_v53  ;;  %v1580_v4 = vmul.f32 %v1578_v22, %v3453_v50 }
 0x1c1   : >> { %v1575_v1 = vadd.f32 %v1573_v49, %v1569_v30  ;;  %v1576_v13 = vadd.f32 %v1574_v27, %v1570_v48  ;;  %v1585_v28 = vmul.f32 %v1584_v44, %v3455_v8  ;;  %v1590_v35 = vstv %s4178_s11  ;;  %v2307_v30 = vld [vmem:[%s5140_s19 + $0x12] ss:$8 sm:$0x3]  ;;  %s4314_s11 = sld [smem:[#allocation6 + $0x10f]] }
 0x1c2   : >> { %v1691_v45 = vadd.f32 %v1690_v19, %v1687_v56  ;;  %v1692_v11 = vadd.f32 %v1690_v19, %v1688_v41  ;;  %v1586_v52 = vmul.f32 %v1584_v44, %v3457_v29  ;;  %v1596_v31 = vstv %s4184_s5  ;;  %s4320_s5 = sld [smem:[#allocation7 + $0xc]] }
 0x1c3   : >> { %v1581_v7 = vadd.f32 %v1579_v54, %v1575_v1  ;;  %v1582_v47 = vadd.f32 %v1580_v4, %v1576_v13  ;;  %v1591_v57 = vmul.f32 %v1590_v35, %v3505_v46  ;;  %v1592_v37 = vmul.f32 %v1590_v35, %v3507_v59 }
 0x1c4   : >> { %v1693_v38 = vmax.f32 %v1691_v45, 0.0  ;;  %v1694_v23 = vmax.f32 %v1692_v11, 0.0  ;;  %v1602_v24 = vstv %s4193_s2  ;;  %v1608_v21 = vstv %s4195_s4  ;;  %s4331_s2 = sld [smem:[#allocation6 + $0x28f]] }
 0x1c5   : >> { %v1587_v36 = vadd.f32 %v1585_v28, %v1581_v7  ;;  %v1588_v34 = vadd.f32 %v1586_v52, %v1582_v47  ;;  %v1597_v19 = vmul.f32 %v1596_v31, %v3513_v26  ;;  %v1598_v0 = vmul.f32 %v1596_v31, %v3515_v16 }
 0x1c6   : >> { %v1695_v32 = vmul.f32 %v3467_v51, %v1693_v38  ;;  %v1696_v20 = vmul.f32 %v3479_v58, %v1694_v23  ;;  %v1603_v25 = vmul.f32 %v1602_v24, %v3517_v5  ;;  %v1604_v9 = vmul.f32 %v1602_v24, %v3519_v60 }
 0x1c7   : >> { %v1593_v63 = vadd.f32 %v1591_v57, %v1587_v36  ;;  %v1594_v3 = vadd.f32 %v1592_v37, %v1588_v34  ;;  %v1609_v6 = vmul.f32 %v1608_v21, %v3549_v39  ;;  %v1610_v22 = vmul.f32 %v1608_v21, %v3551_v17 }
 0x1c8   : >> { %v1710_v12 = vmul.f32 %v1703_v33, %v1695_v32  ;;  %v1711_v42 = vmul.f32 %v1707_v10, %v1696_v20  ;;  %v1614_v43 = vstv %s4206_s17  ;;  %v1796_v48 = vstv %s4208_s22  ;;  %s4340_s22 = sld [smem:[#allocation6 + $0x30f]] }
 0x1c9   : >> { %v1599_v62 = vadd.f32 %v1597_v19, %v1593_v63  ;;  %v1600_v61 = vadd.f32 %v1598_v0, %v1594_v3  ;;  %v1797_v49 = vmul.f32 %v1796_v48, %v3441_v14  ;;  %v1798_v27 = vmul.f32 %v1796_v48, %v3443_v2 }
 0x1ca   : >> { %v1712_v33 = vadd.f32 %v1711_v42, %v1710_v12  ;;  %v1800_v56 = vstv %s4212_s16  ;;  %v1627_v13 = vrot.slane %v2307_v30, %v2835_v15  ;;  %v1806_v54 = vstv %s4216_s7  ;;  %s4346_s16 = sld [smem:[#allocation6 + $0x38f]]  ;;  %s4354_s7 = sld [smem:[#allocation6 + $0xe]] }
 0x1cb   : >> { %v1605_v41 = vadd.f32 %v1603_v25, %v1599_v62  ;;  %v1606_v10 = vadd.f32 %v1604_v9, %v1600_v61  ;;  %v1801_v44 = vmul.f32 %v1800_v56, %v3445_v55  ;;  %v1802_v1 = vmul.f32 %v1800_v56, %v3449_v40 }
 0x1cc   : >> { %1713 = vadd.xlane.f32.xlu0 %v1712_v33  ;;  %v1812_v4 = vstv %s4220_s28  ;;  %v1818_v45 = vstv %s4222_s21  ;;  %v1631_v47 = vrot.slane %v2307_v30, %v2851_v18  ;;  %v1807_v52 = vmul.f32 %v1806_v54, %v3451_v53  ;;  %s4359_s28 = sld [smem:[#allocation6 + $0x8e]] }
 0x1cd   : >> { %v1611_v11 = vadd.f32 %v1609_v6, %v1605_v41  ;;  %v1612_v28 = vadd.f32 %v1610_v22, %v1606_v10  ;;  %v1803_v35 = vadd.f32 %v1801_v44, %v1797_v49  ;;  %v1804_v7 = vadd.f32 %v1802_v1, %v1798_v27  ;;  %v2337_v44 = vld [vmem:[%s5140_s19 + $0x15] ss:$8 sm:$0x3]  ;;  %s4361_s21 = sld [smem:[#allocation6 + $0x10e]] }
 0x1ce   : >> { %v1808_v31 = vmul.f32 %v1806_v54, %v3453_v50  ;;  %v1824_v38 = vstv %s4230_s18  ;;  %v1813_v37 = vmul.f32 %v1812_v4, %v3455_v8  ;;  %v1814_v36 = vmul.f32 %v1812_v4, %v3457_v29  ;;  %s4367_s18 = sld [smem:[#allocation7 + $0xf]] }
 0x1cf   : >> { %v1615_v23 = vadd.f32 %v1614_v43, %v1611_v11  ;;  %v1616_v57 = vadd.f32 %v1614_v43, %v1612_v28  ;;  %v1809_v34 = vadd.f32 %v1807_v52, %v1803_v35  ;;  %v1819_v21 = vmul.f32 %v1818_v45, %v3505_v46 }
 0x1d0   : >> { %v1810_v24 = vadd.f32 %v1808_v31, %v1804_v7  ;;  %v1820_v32 = vmul.f32 %v1818_v45, %v3507_v59  ;;  %v1830_v0 = vstv %s4236_s9  ;;  %v1836_v63 = vstv %s4243_s27  ;;  %s4370_s9 = sld [smem:[#allocation6 + $0x18e]] }
 0x1d1   : >> { %v1617_v20 = vmax.f32 %v1615_v23, 0.0  ;;  %v1618_v19 = vmax.f32 %v1616_v57, 0.0  ;;  %v1815_v3 = vadd.f32 %v1813_v37, %v1809_v34  ;;  %v1825_v9 = vmul.f32 %v1824_v38, %v3513_v26  ;;  %s4389_s27 = sld [smem:[#allocation6 + $0x30e]] }
 0x1d2   : >> { %v1816_v25 = vadd.f32 %v1814_v36, %v1810_v24  ;;  %v1826_v12 = vmul.f32 %v1824_v38, %v3515_v16  ;;  %v1831_v22 = vmul.f32 %v1830_v0, %v3517_v5  ;;  %v1832_v62 = vmul.f32 %v1830_v0, %v3519_v60 }
 0x1d3   : >> { %v1619_v42 = vmul.f32 %v3467_v51, %v1617_v20  ;;  %v1620_v6 = vmul.f32 %v3479_v58, %v1618_v19  ;;  %v1821_v61 = vadd.f32 %v1819_v21, %v1815_v3  ;;  %v1837_v30 = vmul.f32 %v1836_v63, %v3549_v39 }
 0x1d4   : >> { %v1822_v43 = vadd.f32 %v1820_v32, %v1816_v25  ;;  %v1838_v48 = vmul.f32 %v1836_v63, %v3551_v17  ;;  %v1842_v27 = vstv %s4254_s26  ;;  %v1720_v56 = vstv %s4256_s25 }
 0x1d5   : >> { %v1634_v33 = vmul.f32 %v1627_v13, %v1619_v42  ;;  %v1635_v49 = vmul.f32 %v1631_v47, %v1620_v6  ;;  %v1827_v41 = vadd.f32 %v1825_v9, %v1821_v61  ;;  %v1721_v1 = vmul.f32 %v1720_v56, %v3441_v14 }
 0x1d6   : >> { %v1828_v10 = vadd.f32 %v1826_v12, %v1822_v43  ;;  %v1722_v54 = vmul.f32 %v1720_v56, %v3443_v2  ;;  %v1724_v45 = vstv %s4262_s13  ;;  %v1730_v11 = vstv %s4266_s30  ;;  %s4399_s13 = sld [smem:[#allocation6 + $0x38e]] }
 0x1d7   : >> { %v1636_v4 = vadd.f32 %v1635_v49, %v1634_v33  ;;  %v1736_v28 = vstv %s4268_s12  ;;  %v1833_v13 = vadd.f32 %v1831_v22, %v1827_v41  ;;  %v1725_v7 = vmul.f32 %v1724_v45, %v3445_v55  ;;  %s2346_s30 = sld [smem:[#allocation7 + $0xe]] }
 0x1d8   : >> { %v1834_v35 = vadd.f32 %v1832_v62, %v1828_v10  ;;  %v1726_v47 = vmul.f32 %v1724_v45, %v3449_v40  ;;  %v1855_v52 = vrot.slane %v2337_v44, %v2835_v15  ;;  %v1731_v31 = vmul.f32 %v1730_v11, %v3451_v53 }
 0x1d9   : >> { %1637 = vadd.xlane.f32.xlu1 %v1636_v4  ;;  %v1732_v38 = vmul.f32 %v1730_v11, %v3453_v50  ;;  %v1737_v23 = vmul.f32 %v1736_v28, %v3455_v8  ;;  %v1839_v57 = vadd.f32 %v1837_v30, %v1833_v13  ;;  %v1727_v36 = vadd.f32 %v1725_v7, %v1721_v1 }
 0x1da   : >> { %v1840_v37 = vadd.f32 %v1838_v48, %v1834_v35  ;;  %v1728_v34 = vadd.f32 %v1726_v47, %v1722_v54  ;;  %v1738_v24 = vmul.f32 %v1736_v28, %v3457_v29  ;;  %v1742_v21 = vstv %s4276_s3  ;;  %v2327_v28 = vld [vmem:[%s5140_s19 + $0x14] ss:$8 sm:$0x3] }
 0x1db   : >> { %v1748_v32 = vstv %s4282_s23  ;;  %v1754_v20 = vstv %s4284_s0  ;;  %v1843_v19 = vadd.f32 %v1842_v27, %v1839_v57  ;;  %v1733_v63 = vadd.f32 %v1731_v31, %v1727_v36  ;;  %s5161_s23 = sld [smem:[#allocation16_spill]]  ;;  %s5162_s0 = sld [smem:[#allocation14_spill]] }
 0x1dc   : >> { %v1844_v0 = vadd.f32 %v1842_v27, %v1840_v37  ;;  %v1734_v3 = vadd.f32 %v1732_v38, %v1728_v34  ;;  %v1859_v25 = vrot.slane %v2337_v44, %v2851_v18  ;;  %v1743_v9 = vmul.f32 %v1742_v21, %v3505_v46 }
 0x1dd   : >> { %v1744_v12 = vmul.f32 %v1742_v21, %v3507_v59  ;;  %v1760_v42 = vstv %s4290_s29  ;;  %v1845_v6 = vmax.f32 %v1843_v19, 0.0  ;;  %v1739_v62 = vadd.f32 %v1737_v23, %v1733_v63 }
 0x1de   : >> { %v1846_v22 = vmax.f32 %v1844_v0, 0.0  ;;  %v1740_v61 = vadd.f32 %v1738_v24, %v1734_v3  ;;  %v1749_v43 = vmul.f32 %v1748_v32, %v3513_v26  ;;  %v1750_v30 = vmul.f32 %v1748_v32, %v3515_v16 }
 0x1df   : >> { %v1755_v48 = vmul.f32 %v1754_v20, %v3517_v5  ;;  %v1847_v33 = vmul.f32 %v3467_v51, %v1845_v6  ;;  %v1745_v27 = vadd.f32 %v1743_v9, %v1739_v62  ;;  %v1756_v41 = vmul.f32 %v1754_v20, %v3519_v60 }
 0x1e0   : >> { %v1848_v49 = vmul.f32 %v3479_v58, %v1846_v22  ;;  %v1746_v56 = vadd.f32 %v1744_v12, %v1740_v61  ;;  %v1761_v10 = vmul.f32 %v1760_v42, %v3549_v39  ;;  %v1762_v44 = vmul.f32 %v1760_v42, %v3551_v17 }
 0x1e1   : >> { %v1948_v1 = vstv %s4306_s14  ;;  %v1862_v54 = vmul.f32 %v1855_v52, %v1847_v33  ;;  %v1751_v45 = vadd.f32 %v1749_v43, %v1745_v27  ;;  %v1952_v7 = vstv %s4312_s1  ;;  %s5164_s14 = scalar_lea.vmem %s5163_s6, %s5162_s0 }
 0x1e2   : >> { %v1863_v4 = vmul.f32 %v1859_v25, %v1848_v49  ;;  %v1752_v11 = vadd.f32 %v1750_v30, %v1746_v56  ;;  %v1949_v13 = vmul.f32 %v1948_v1, %v3441_v14  ;;  %v1950_v35 = vmul.f32 %v1948_v1, %v3443_v2  ;;  %s2024_s1 = scalar_lea.vmem %s5164_s14, %s5161_s23 }
 0x1e3   : >> { %v1958_v47 = vstv %s4314_s11  ;;  %v1757_v52 = vadd.f32 %v1755_v48, %v1751_v45  ;;  %v1953_v23 = vmul.f32 %v1952_v7, %v3445_v55  ;;  %v1766_v57 = vstv %s4320_s5  ;;  %s5165_s11 = sld [smem:[#allocation15_spill]] }
 0x1e4   : >> { %v1864_v31 = vadd.f32 %v1863_v4, %v1862_v54  ;;  %v1758_v38 = vadd.f32 %v1756_v41, %v1752_v11  ;;  %v1779_v37 = vrot.slane %v2327_v28, %v2835_v15  ;;  %v1954_v36 = vmul.f32 %v1952_v7, %v3449_v40 }
 0x1e5   : >> { %v1964_v34 = vstv %s4322_s24  ;;  %v1763_v24 = vadd.f32 %v1761_v10, %v1757_v52  ;;  %v1955_v32 = vadd.f32 %v1953_v23, %v1949_v13  ;;  %v1959_v20 = vmul.f32 %v1958_v47, %v3451_v53 }
 0x1e6   : >> { %1865 = vadd.xlane.f32.xlu0 %v1864_v31  ;;  %v1764_v21 = vadd.f32 %v1762_v44, %v1758_v38  ;;  %v1956_v19 = vadd.f32 %v1954_v36, %v1950_v35  ;;  %v1960_v0 = vmul.f32 %v1958_v47, %v3453_v50  ;;  %v1965_v63 = vmul.f32 %v1964_v34, %v3455_v8 }
 0x1e7   : >> { %v1970_v3 = vstv %s4327_s8  ;;  %v1767_v25 = vadd.f32 %v1766_v57, %v1763_v24  ;;  %v1961_v12 = vadd.f32 %v1959_v20, %v1955_v32  ;;  %v1976_v42 = vstv %s4331_s2  ;;  %v2357_v32 = vld [vmem:[%s5140_s19 + $0x17] ss:$8 sm:$0x3] }
 0x1e8   : >> { %v1768_v9 = vadd.f32 %v1766_v57, %v1764_v21  ;;  %v1783_v6 = vrot.slane %v2327_v28, %v2851_v18  ;;  %v1962_v22 = vadd.f32 %v1960_v0, %v1956_v19  ;;  %v1966_v62 = vmul.f32 %v1964_v34, %v3457_v29 }
 0x1e9   : >> { %v1971_v61 = vmul.f32 %v1970_v3, %v3505_v46  ;;  %v1769_v43 = vmax.f32 %v1767_v25, 0.0  ;;  %v1967_v48 = vadd.f32 %v1965_v63, %v1961_v12  ;;  %v1982_v33 = vstv %s4340_s22  ;;  %s433_s25 = sadd.s32 1, %s5165_s11  }
 0x1ea   : >> { %v1770_v30 = vmax.f32 %v1768_v9, 0.0  ;;  %v1968_v49 = vadd.f32 %v1966_v62, %v1962_v22  ;;  %v1972_v27 = vmul.f32 %v1970_v3, %v3507_v59  ;;  %v1977_v56 = vmul.f32 %v1976_v42, %v3513_v26  ;;  %p430_p2 = scmp.ge.s32.totalorder %s433_s25, 16  }
 0x1eb   : >> { %v1988_v41 = vstv %s4346_s16  ;;  %v1771_v10 = vmul.f32 %v3467_v51, %v1769_v43  ;;  %v1973_v1 = vadd.f32 %v1971_v61, %v1967_v48  ;;  %v1978_v54 = vmul.f32 %v1976_v42, %v3515_v16 }
 0x1ec   : >> { %v1772_v44 = vmul.f32 %v3479_v58, %v1770_v30  ;;  %v1974_v4 = vadd.f32 %v1972_v27, %v1968_v49  ;;  %v1983_v45 = vmul.f32 %v1982_v33, %v3517_v5  ;;  %v1984_v11 = vmul.f32 %v1982_v33, %v3519_v60 }
 0x1ed   : >> { %v1989_v28 = vmul.f32 %v1988_v41, %v3549_v39  ;;  %v1786_v13 = vmul.f32 %v1779_v37, %v1771_v10  ;;  %v1979_v7 = vadd.f32 %v1977_v56, %v1973_v1  ;;  %v1990_v47 = vmul.f32 %v1988_v41, %v3551_v17 }
 0x1ee   : >> { %v1787_v35 = vmul.f32 %v1783_v6, %v1772_v44  ;;  %v1980_v31 = vadd.f32 %v1978_v54, %v1974_v4  ;;  %v1872_v52 = vstv %s4354_s7  ;;  %v1876_v38 = vstv %s4359_s28 }
 0x1ef   : >> { %v1882_v23 = vstv %s4361_s21  ;;  %v1985_v36 = vadd.f32 %v1983_v45, %v1979_v7  ;;  %v1873_v34 = vmul.f32 %v1872_v52, %v3441_v14  ;;  %v1874_v24 = vmul.f32 %v1872_v52, %v3443_v2 }
 0x1f0   : >> { %v1788_v57 = vadd.f32 %v1787_v35, %v1786_v13  ;;  %v1986_v21 = vadd.f32 %v1984_v11, %v1980_v31  ;;  %v1994_v37 = vstv %s4367_s18  ;;  %v1877_v20 = vmul.f32 %v1876_v38, %v3445_v55 }
 0x1f1   : >> { %v1878_v19 = vmul.f32 %v1876_v38, %v3449_v40  ;;  %v1991_v0 = vadd.f32 %v1989_v28, %v1985_v36  ;;  %v1883_v14 = vmul.f32 %v1882_v23, %v3451_v53  ;;  %v1884_v63 = vmul.f32 %v1882_v23, %v3453_v50 }
 0x1f2   : >> { %1789 = vadd.xlane.f32.xlu1 %v1788_v57  ;;  %v1888_v2 = vstv %s4370_s9  ;;  %v1992_v3 = vadd.f32 %v1990_v47, %v1986_v21  ;;  %v1879_v25 = vadd.f32 %v1877_v20, %v1873_v34  ;;  %v1894_v12 = vstv %s4375_s15  ;;  %v954_v20 = vpop.xlane.xlu0 %953 }
 0x1f3   : >> { %v1880_v9 = vadd.f32 %v1878_v19, %v1874_v24  ;;  %v1995_v42 = vadd.f32 %v1994_v37, %v1991_v0  ;;  %v2007_v55 = vrot.slane %v2357_v32, %v2835_v15  ;;  %v1889_v40 = vmul.f32 %v1888_v2, %v3455_v8  ;;  %v5159_v0 = vld [vmem:[#allocation13_spill] sm:$0xff] }
 0x1f4   : >> { %v1890_v6 = vmul.f32 %v1888_v2, %v3457_v29  ;;  %v1996_v22 = vadd.f32 %v1994_v37, %v1992_v3  ;;  %v1885_v62 = vadd.f32 %v1883_v14, %v1879_v25  ;;  %v1900_v43 = vstv %s4383_s20 }
 0x1f5   : >> { %v1886_v61 = vadd.f32 %v1884_v63, %v1880_v9  ;;  %v1997_v53 = vmax.f32 %v1995_v42, 0.0  ;;  %v2011_v50 = vrot.slane %v2357_v32, %v2851_v18  ;;  %v1895_v30 = vmul.f32 %v1894_v12, %v3505_v46  ;;  %v879_v32 = vpop.xlane.xlu1 %878 }
 0x1f6   : >> { %v1896_v48 = vmul.f32 %v1894_v12, %v3507_v59  ;;  %v1998_v33 = vmax.f32 %v1996_v22, 0.0  ;;  %v1891_v49 = vadd.f32 %v1889_v40, %v1885_v62  ;;  %v1906_v56 = vstv %s4389_s27 }
 0x1f7   : >> { %v1892_v27 = vadd.f32 %v1890_v6, %v1886_v61  ;;  %v1999_v8 = vmul.f32 %v3467_v51, %v1997_v53  ;;  %v1901_v29 = vmul.f32 %v1900_v43, %v3513_v26  ;;  %v1902_v41 = vmul.f32 %v1900_v43, %v3515_v16 }
 0x1f8   : >> { %v2000_v10 = vmul.f32 %v3479_v58, %v1998_v33  ;;  %v1897_v44 = vadd.f32 %v1895_v30, %v1891_v49  ;;  %v1912_v54 = vstv %s4399_s13  ;;  %v1907_v46 = vmul.f32 %v1906_v56, %v3517_v5  ;;  %v2347_v5 = vld [vmem:[%s5140_s19 + $0x16] ss:$8 sm:$0x3] }
 0x1f9   : >> { %v1898_v1 = vadd.f32 %v1896_v48, %v1892_v27  ;;  %v2014_v4 = vmul.f32 %v2007_v55, %v1999_v8  ;;  %v1908_v28 = vmul.f32 %v1906_v56, %v3519_v60  ;;  %v1913_v13 = vmul.f32 %v1912_v54, %v3549_v39 }
 0x1fa   : >> { %v2015_v59 = vmul.f32 %v2011_v50, %v2000_v10  ;;  %v1903_v45 = vadd.f32 %v1901_v29, %v1897_v44  ;;  %v1914_v16 = vmul.f32 %v1912_v54, %v3551_v17  ;;  %v1918_v47 = vstv %s2346_s30 }
 0x1fb   : >> { %v1904_v11 = vadd.f32 %v1902_v41, %v1898_v1  ;;  %v1931_v60 = vrot.slane %v2347_v5, %v2835_v15  ;;  %v1935_v39 = vrot.slane %v2347_v5, %v2851_v18  ;;  %v957_v14 = vsel %vm413_vm1, %v954_v20, 0.0 }
 0x1fc   : >> { %v2016_v35 = vadd.f32 %v2015_v59, %v2014_v4  ;;  %v1909_v7 = vadd.f32 %v1907_v46, %v1903_v45  ;;  %vm5160_vm0 = vcmp.eq.s32.totalorder %v5159_v0, 0 }
 0x1fd   : >> { %v1910_v26 = vadd.f32 %v1908_v28, %v1904_v11  ;;  %v882_v63 = vsel %vm5160_vm0, %v879_v32, 0.0  ;;  %vm2025_vm0 = vcmask 130048  }
 0x1fe   : >> { %2017 = vadd.xlane.f32.xlu0 %v2016_v35  ;;  %v1915_v31 = vadd.f32 %v1913_v13, %v1909_v7  ;;  %v1030_v19 = vpop.xlane.xlu1 %1029  ;;  %v958_v18 = vadd.f32 %v957_v14, %v882_v63 }
 0x1ff   : >> { %v1916_v52 = vadd.f32 %v1914_v16, %v1910_v26  ;;  %v1033_v15 = vsel %vm414_vm2, %v1030_v19, 0.0 }
 0x200   : >> { %v1919_v38 = vadd.f32 %v1918_v47, %v1915_v31  ;;  %v1034_v2 = vadd.f32 %v1033_v15, %v958_v18 }
 0x201   : >> { %v1920_v23 = vadd.f32 %v1918_v47, %v1916_v52 }
 0x202   : >> { %v1921_v57 = vmax.f32 %v1919_v38, 0.0 }
 0x203   : >> { %v1922_v36 = vmax.f32 %v1920_v23, 0.0 }
 0x204   : >> { %v1923_v34 = vmul.f32 %v3467_v51, %v1921_v57  ;;  %v1106_v51 = vpop.xlane.xlu0 %1105 }
 0x205   : >> { %v1924_v17 = vmul.f32 %v3479_v58, %v1922_v36  ;;  %v1109_v3 = vsel %vm415_vm3, %v1106_v51, 0.0 }
 0x206   : >> { %v1938_v24 = vmul.f32 %v1931_v60, %v1923_v34  ;;  %v1110_v25 = vadd.f32 %v1109_v3, %v1034_v2 }
 0x207   : >> { %v1939_v21 = vmul.f32 %v1935_v39, %v1924_v17 }
 0x209   : >> { %v1940_v37 = vadd.f32 %v1939_v21, %v1938_v24 }
 0x20b   : >> { %1941 = vadd.xlane.f32.xlu1 %v1940_v37  ;;  %v1258_v12 = vpop.xlane.xlu0 %1257 }
 0x20c   : >> { %v1261_v40 = vsel %vm417_vm5, %v1258_v12, 0.0 }
 0x218   : >> { %v1182_v58 = vpop.xlane.xlu1 %1181 }
 0x219   : >> { %v1185_v9 = vsel %vm416_vm4, %v1182_v58, 0.0 }
 0x21a   : >> { %v1186_v42 = vadd.f32 %v1185_v9, %v1110_v25 }
 0x21c   : >> { %v1262_v6 = vadd.f32 %v1261_v40, %v1186_v42 }
 0x228   : >> { %v1410_v62 = vpop.xlane.xlu0 %1409 }
 0x229   : >> { %v1413_v53 = vsel %vm419_vm7, %v1410_v62, 0.0 }
 0x237   : >> { %v1334_v55 = vpop.xlane.xlu1 %1333 }
 0x238   : >> { %v1337_v22 = vsel %vm418_vm6, %v1334_v55, 0.0 }
 0x239   : >> { %v1338_v61 = vadd.f32 %v1337_v22, %v1262_v6 }
 0x23b   : >> { %v1414_v50 = vadd.f32 %v1413_v53, %v1338_v61 }
 0x241   : >> { %v1562_v48 = vpop.xlane.xlu0 %1561 }
 0x242   : >> { %v1565_v27 = vsel %vm421_vm9, %v1562_v48, 0.0 }
 0x24c   : >> { %v1486_v43 = vpop.xlane.xlu1 %1485 }
 0x24d   : >> { %v1489_v30 = vsel %vm420_vm8, %v1486_v43, 0.0 }
 0x24e   : >> { %v1490_v33 = vadd.f32 %v1489_v30, %v1414_v50 }
 0x250   : >> { %v1566_v56 = vadd.f32 %v1565_v27, %v1490_v33 }
 0x259   : >> { %v1714_v29 = vpop.xlane.xlu0 %1713 }
 0x25a   : >> { %v1717_v44 = vsel %vm423_vm11, %v1714_v29, 0.0 }
 0x266   : >> { %v1638_v49 = vpop.xlane.xlu1 %1637 }
 0x267   : >> { %v1641_v8 = vsel %vm422_vm10, %v1638_v49, 0.0 }
 0x268   : >> { %v1642_v41 = vadd.f32 %v1641_v8, %v1566_v56 }
 0x26a   : >> { %v1718_v1 = vadd.f32 %v1717_v44, %v1642_v41 }
 0x273   : >> { %v1866_v4 = vpop.xlane.xlu0 %1865 }
 0x274   : >> { %v1869_v59 = vsel %vm425_vm13, %v1866_v4, 0.0 }
 0x27f   : >> { %v1790_v10 = vpop.xlane.xlu1 %1789 }
 0x280   : >> { %v1793_v54 = vsel %vm424_vm12, %v1790_v10, 0.0 }
 0x281   : >> { %v1794_v46 = vadd.f32 %v1793_v54, %v1718_v1 }
 0x283   : >> { %v1870_v45 = vadd.f32 %v1869_v59, %v1794_v46 }
 0x28b   : >> { %v2018_v11 = vpop.xlane.xlu0 %2017 }
 0x28c   : >> { %v2021_v7 = vsel %vm427_vm15, %v2018_v11, 0.0 }
 0x298   : >> { %v1942_v28 = vpop.xlane.xlu1 %1941  ;;  %432 = sbr.rel (!%p430_p2) target bundleno = 88 (0x58), region = 135 }
 0x299   : >> { %v1945_v13 = vsel %vm426_vm14, %v1942_v28, 0.0 }
 0x29a   : >> { %v1946_v35 = vadd.f32 %v1945_v13, %v1870_v45 }
 0x29c   : >> { %v2022_v26 = vadd.f32 %v2021_v7, %v1946_v35 }
 0x29e   : >> { %2026 = vst.msk [vmem:[%s2024_s1] sm:$0xff] %vm2025_vm0, %v2022_v26 }
 0x29f PF: > { %s5166_s5 = sld [smem:[#allocation12_spill]] }
 0x2a5   : > { %s22_s30 = sadd.s32 1, %s5166_s5  }
 0x2a6   : > { %p19_p5 = scmp.ge.s32.totalorder %s22_s30, 4  }
 0x2a8   :  { %21 = sbr.rel (!%p19_p5) target bundleno = 14 (0xe), region = 146 }
 0x2af   :  { %2049 = vsyncpa [#allocation3], 1 }
 0x2b0   :  { %2051 = vsyncpa [#allocation3 + $0x1], 1 }
 0x2b1   :  { %2052 = vsyncpa [#allocation5], 1 }
 0x2b2   :  { %2053 = vsyncpa [#allocation8], 1 }

</bundles_post_ra>
